<compile_context>
chip_gen: v7x
topology: tpu7x:2x2x1
jax: 0.10.0
libtpu: 0.0.40
codegen_flags: <defaults>
</compile_context>

<pallas_src>
import jax
import jax.numpy as jnp
from jax import lax
from jax.experimental import pallas as pl
from jax.experimental.pallas import tpu as pltpu

IMAGE_SHAPE = (1, 28, 28)
IN_DIM = IMAGE_SHAPE[0] * IMAGE_SHAPE[1] * IMAGE_SHAPE[2]  # 784
K_PAD = 896          # 7 * 128, lane-aligned contraction dim
H1 = 512
H2 = 256
OUT_DIM = 1

TB = 256             # batch tile (fills the MXU on v5e/v6e/v7x)


def _leaky_relu(x, slope=0.2):
    return jnp.where(x > 0, x, slope * x)


def disc_kernel(x_ref, w1_ref, b1_ref, w2_ref, b2_ref, w3_ref, b3_ref, out_ref):
    # Whole MLP for one (TB, K_PAD) batch tile; weights are VMEM-resident.
    # MXU feeds are bf16 with f32 accumulation; elementwise math stays f32.
    h1 = jnp.dot(x_ref[...], w1_ref[...],
                 preferred_element_type=jnp.float32)             # (TB, 512) f32
    h1 = _leaky_relu(h1 + b1_ref[...])

    h2 = jnp.dot(h1.astype(jnp.bfloat16), w2_ref[...],
                 preferred_element_type=jnp.float32)             # (TB, 256) f32
    h2 = _leaky_relu(h2 + b2_ref[...])

    # Final 256 -> 1 layer folded into the lane-dense output transpose:
    #   logits^T = w3_row (1, 256) . h2^T (256, TB) -> (1, TB)
    logits = lax.dot_general(
        w3_ref[...], h2.astype(jnp.bfloat16),
        dimension_numbers=(((1,), (1,)), ((), ())),
        preferred_element_type=jnp.float32)                      # (1, TB) f32
    logits = logits + b3_ref[...]                                # (1,1) broadcast
    out_ref[...] = jax.nn.sigmoid(logits).astype(out_ref.dtype)  # full-lane store


def discriminator_forward(img, params):
    """img: (B, 1, 28, 28) float32 -> validity (B, 1) float32."""
    w1, b1, w2, b2, w3, b3 = params
    B = img.shape[0]
    x = img.reshape(B, -1).astype(jnp.float32)                   # (B, 784)

    # Pad batch to a multiple of TB and the feature dim to 7*128 lanes.
    B_pad = ((B + TB - 1) // TB) * TB
    x = jnp.pad(x, ((0, B_pad - B), (0, K_PAD - IN_DIM)))
    x = x.astype(jnp.bfloat16)                                   # (B_pad, 896)

    # bf16 weight feeds; W1's input dim zero-padded to K_PAD; biases stay f32.
    w1p = jnp.pad(w1, ((0, K_PAD - IN_DIM), (0, 0))).astype(jnp.bfloat16)  # (896, 512)
    w2b = w2.astype(jnp.bfloat16)                                           # (512, 256)
    w3r = w3.reshape(1, H2).astype(jnp.bfloat16)                            # (1, 256)

    num_tiles = B_pad // TB

    out = pl.pallas_call(
        disc_kernel,
        out_shape=jax.ShapeDtypeStruct((num_tiles, TB), jnp.float32),
        grid_spec=pltpu.PrefetchScalarGridSpec(
            num_scalar_prefetch=0,
            grid=(num_tiles,),
            in_specs=[
                pl.BlockSpec((TB, K_PAD),  lambda i: (i, 0)),    # x tile
                pl.BlockSpec((K_PAD, H1),  lambda i: (0, 0)),    # W1 (resident)
                pl.BlockSpec((1, H1),      lambda i: (0, 0)),    # b1
                pl.BlockSpec((H1, H2),     lambda i: (0, 0)),    # W2
                pl.BlockSpec((1, H2),      lambda i: (0, 0)),    # b2
                pl.BlockSpec((1, H2),      lambda i: (0, 0)),    # W3 row
                pl.BlockSpec((1, OUT_DIM), lambda i: (0, 0)),    # b3
            ],
            out_specs=pl.BlockSpec((1, TB), lambda i: (i, 0)),   # lane-dense out
        ),
        compiler_params=pltpu.CompilerParams(
            dimension_semantics=("parallel",),
        ),
    )(x, w1p, b1, w2b, b2, w3r, b3)

    return out.reshape(B_pad, 1)[:B]


def init_params(key):
    """Deterministic init mirroring torch.nn.Linear default (U(-1/sqrt(fan_in), +1/sqrt(fan_in)))."""
    keys = jax.random.split(key, 6)

    def linear(kw, kb, fan_in, fan_out):
        bound = 1.0 / jnp.sqrt(fan_in)
        # stored as (in_features, out_features) so the kernel does x @ W
        w = jax.random.uniform(kw, (fan_in, fan_out), jnp.float32, -bound, bound)
        b = jax.random.uniform(kb, (1, fan_out), jnp.float32, -bound, bound)
        return w, b

    w1, b1 = linear(keys[0], keys[1], IN_DIM, H1)
    w2, b2 = linear(keys[2], keys[3], H1, H2)
    w3, b3 = linear(keys[4], keys[5], H2, OUT_DIM)
    return (w1, b1, w2, b2, w3, b3)


def reference_forward(img, params):
    """Pure-JAX reference using the same bf16-feed / f32-accumulate math."""
    w1, b1, w2, b2, w3, b3 = params
    x = img.reshape(img.shape[0], -1).astype(jnp.float32)

    def mm(a, w):
        return jnp.dot(a.astype(jnp.bfloat16), w.astype(jnp.bfloat16),
                       preferred_element_type=jnp.float32)

    h1 = _leaky_relu(mm(x, w1) + b1)
    h2 = _leaky_relu(mm(h1, w2) + b2)
    return jax.nn.sigmoid(mm(h2, w3) + b3)


if __name__ == "__main__":
    key = jax.random.PRNGKey(0)
    k_img, k_params = jax.random.split(key)

    B = 2
    img = jax.random.normal(k_img, (B, *IMAGE_SHAPE), dtype=jnp.float32)
    params = init_params(k_params)

    validity = discriminator_forward(img, params)
    validity = jax.block_until_ready(validity)

    ref = reference_forward(img, params)
    assert validity.shape == (B, 1), validity.shape
    assert jnp.allclose(validity, ref, atol=1e-3, rtol=1e-3), (
        f"mismatch: {validity} vs {ref}"
    )

    print("KERNEL_OK")
</pallas_src>

<mosaic_0001>
module attributes {stable_mosaic.version = 11 : i64} {
  func.func @disc_kernel(%arg0: i32, %arg1: memref<256x896xbf16, #tpu.memory_space<vmem>>, %arg2: memref<896x512xbf16, #tpu.memory_space<vmem>>, %arg3: memref<1x512xf32, #tpu.memory_space<vmem>>, %arg4: memref<512x256xbf16, #tpu.memory_space<vmem>>, %arg5: memref<1x256xf32, #tpu.memory_space<vmem>>, %arg6: memref<1x256xbf16, #tpu.memory_space<vmem>>, %arg7: memref<1x1xf32, #tpu.memory_space<vmem>>, %arg8: memref<1x256xf32, #tpu.memory_space<vmem>>) attributes {dimension_semantics = [#tpu.dimension_semantics<parallel>], iteration_bounds = array<i64: 1>, scalar_prefetch = 0 : i64, scratch_operands = 0 : i64, tpu.core_type = #tpu.core_type<tc>, window_params = [{transform_indices = @transform_0, window_bounds = array<i64: 256, 896>}, {pipeline_mode = #tpu.pipeline_mode<synchronous>, transform_indices = @transform_1, window_bounds = array<i64: 896, 512>}, {pipeline_mode = #tpu.pipeline_mode<synchronous>, transform_indices = @transform_2, window_bounds = array<i64: 1, 512>}, {pipeline_mode = #tpu.pipeline_mode<synchronous>, transform_indices = @transform_3, window_bounds = array<i64: 512, 256>}, {pipeline_mode = #tpu.pipeline_mode<synchronous>, transform_indices = @transform_4, window_bounds = array<i64: 1, 256>}, {pipeline_mode = #tpu.pipeline_mode<synchronous>, transform_indices = @transform_5, window_bounds = array<i64: 1, 256>}, {pipeline_mode = #tpu.pipeline_mode<synchronous>, transform_indices = @transform_6, window_bounds = array<i64: 1, 1>}, {transform_indices = @transform_7, window_bounds = array<i64: 1, 256>}]} {
    %c0 = arith.constant 0 : index
    %c0_0 = arith.constant 0 : index
    %0 = vector.load %arg1[%c0, %c0_0] : memref<256x896xbf16, #tpu.memory_space<vmem>>, vector<256x896xbf16>
    %c0_1 = arith.constant 0 : index
    %c0_2 = arith.constant 0 : index
    %1 = vector.load %arg2[%c0_1, %c0_2] : memref<896x512xbf16, #tpu.memory_space<vmem>>, vector<896x512xbf16>
    %cst = arith.constant dense<0.000000e+00> : vector<256x512xf32>
    %2 = tpu.matmul %0, %1, %cst {dimension_numbers = #tpu.dot_dimension_numbers<[1], [0], [0], [1], [0, 0, 1, 1], [], []>} : vector<256x896xbf16>, vector<896x512xbf16>, vector<256x512xf32> -> vector<256x512xf32>
    %c0_3 = arith.constant 0 : index
    %c0_4 = arith.constant 0 : index
    %3 = vector.load %arg3[%c0_3, %c0_4] : memref<1x512xf32, #tpu.memory_space<vmem>>, vector<1x512xf32>
    %4 = vector.broadcast %3 : vector<1x512xf32> to vector<256x512xf32>
    %5 = arith.addf %2, %4 : vector<256x512xf32>
    %cst_5 = arith.constant 0.000000e+00 : f32
    %6 = vector.broadcast %cst_5 : f32 to vector<256x512xf32>
    %7 = arith.cmpf ogt, %5, %6 : vector<256x512xf32>
    %cst_6 = arith.constant 2.000000e-01 : f32
    %8 = vector.broadcast %cst_6 : f32 to vector<256x512xf32>
    %9 = arith.mulf %8, %5 : vector<256x512xf32>
    %10 = arith.select %7, %5, %9 : vector<256x512xi1>, vector<256x512xf32>
    %11 = arith.truncf %10 : vector<256x512xf32> to vector<256x512xbf16>
    %c0_7 = arith.constant 0 : index
    %c0_8 = arith.constant 0 : index
    %12 = vector.load %arg4[%c0_7, %c0_8] : memref<512x256xbf16, #tpu.memory_space<vmem>>, vector<512x256xbf16>
    %cst_9 = arith.constant dense<0.000000e+00> : vector<256x256xf32>
    %13 = tpu.matmul %11, %12, %cst_9 {dimension_numbers = #tpu.dot_dimension_numbers<[1], [0], [0], [1], [0, 0, 1, 1], [], []>} : vector<256x512xbf16>, vector<512x256xbf16>, vector<256x256xf32> -> vector<256x256xf32>
    %c0_10 = arith.constant 0 : index
    %c0_11 = arith.constant 0 : index
    %14 = vector.load %arg5[%c0_10, %c0_11] : memref<1x256xf32, #tpu.memory_space<vmem>>, vector<1x256xf32>
    %15 = vector.broadcast %14 : vector<1x256xf32> to vector<256x256xf32>
    %16 = arith.addf %13, %15 : vector<256x256xf32>
    %cst_12 = arith.constant 0.000000e+00 : f32
    %17 = vector.broadcast %cst_12 : f32 to vector<256x256xf32>
    %18 = arith.cmpf ogt, %16, %17 : vector<256x256xf32>
    %cst_13 = arith.constant 2.000000e-01 : f32
    %19 = vector.broadcast %cst_13 : f32 to vector<256x256xf32>
    %20 = arith.mulf %19, %16 : vector<256x256xf32>
    %21 = arith.select %18, %16, %20 : vector<256x256xi1>, vector<256x256xf32>
    %c0_14 = arith.constant 0 : index
    %c0_15 = arith.constant 0 : index
    %22 = vector.load %arg6[%c0_14, %c0_15] : memref<1x256xbf16, #tpu.memory_space<vmem>>, vector<1x256xbf16>
    %23 = arith.truncf %21 : vector<256x256xf32> to vector<256x256xbf16>
    %cst_16 = arith.constant dense<0.000000e+00> : vector<1x256xf32>
    %24 = tpu.matmul %22, %23, %cst_16 {dimension_numbers = #tpu.dot_dimension_numbers<[1], [1], [0], [0], [0, 0, 1, 0], [], []>} : vector<1x256xbf16>, vector<256x256xbf16>, vector<1x256xf32> -> vector<1x256xf32>
    %c0_17 = arith.constant 0 : index
    %c0_18 = arith.constant 0 : index
    %25 = vector.load %arg7[%c0_17, %c0_18] : memref<1x1xf32, #tpu.memory_space<vmem>>, vector<1x1xf32>
    %26 = vector.broadcast %25 : vector<1x1xf32> to vector<1x256xf32>
    %27 = arith.addf %24, %26 : vector<1x256xf32>
    %28 = arith.negf %27 : vector<1x256xf32>
    %29 = math.exp %28 : vector<1x256xf32>
    %cst_19 = arith.constant 1.000000e+00 : f32
    %30 = vector.broadcast %cst_19 : f32 to vector<1x256xf32>
    %31 = arith.addf %30, %29 : vector<1x256xf32>
    %32 = arith.divf %30, %31 : vector<1x256xf32>
    %c0_20 = arith.constant 0 : index
    %c0_21 = arith.constant 0 : index
    %33 = vector.load %arg8[%c0_20, %c0_21] : memref<1x256xf32, #tpu.memory_space<vmem>>, vector<1x256xf32>
    tpu.vector_store %arg8[%c0_20, %c0_21], %32 {strides = array<i32>} : memref<1x256xf32, #tpu.memory_space<vmem>>, vector<1x256xf32>,
    return
  }
  func.func @transform_0(%arg0: i32) -> (i32, i32) {
    %c0_i32 = arith.constant 0 : i32
    %c0_i32_0 = arith.constant 0 : i32
    return %arg0, %c0_i32 : i32, i32
  }
  func.func @transform_1(%arg0: i32) -> (i32, i32) {
    %c0_i32 = arith.constant 0 : i32
    %c0_i32_0 = arith.constant 0 : i32
    %c0_i32_1 = arith.constant 0 : i32
    return %c0_i32, %c0_i32_0 : i32, i32
  }
  func.func @transform_2(%arg0: i32) -> (i32, i32) {
    %c0_i32 = arith.constant 0 : i32
    %c0_i32_0 = arith.constant 0 : i32
    %c0_i32_1 = arith.constant 0 : i32
    return %c0_i32, %c0_i32_0 : i32, i32
  }
  func.func @transform_3(%arg0: i32) -> (i32, i32) {
    %c0_i32 = arith.constant 0 : i32
    %c0_i32_0 = arith.constant 0 : i32
    %c0_i32_1 = arith.constant 0 : i32
    return %c0_i32, %c0_i32_0 : i32, i32
  }
  func.func @transform_4(%arg0: i32) -> (i32, i32) {
    %c0_i32 = arith.constant 0 : i32
    %c0_i32_0 = arith.constant 0 : i32
    %c0_i32_1 = arith.constant 0 : i32
    return %c0_i32, %c0_i32_0 : i32, i32
  }
  func.func @transform_5(%arg0: i32) -> (i32, i32) {
    %c0_i32 = arith.constant 0 : i32
    %c0_i32_0 = arith.constant 0 : i32
    %c0_i32_1 = arith.constant 0 : i32
    return %c0_i32, %c0_i32_0 : i32, i32
  }
  func.func @transform_6(%arg0: i32) -> (i32, i32) {
    %c0_i32 = arith.constant 0 : i32
    %c0_i32_0 = arith.constant 0 : i32
    %c0_i32_1 = arith.constant 0 : i32
    return %c0_i32, %c0_i32_0 : i32, i32
  }
  func.func @transform_7(%arg0: i32) -> (i32, i32) {
    %c0_i32 = arith.constant 0 : i32
    %c0_i32_0 = arith.constant 0 : i32
    return %arg0, %c0_i32 : i32, i32
  }
}

</mosaic_0001>

<bundles_post_ra>
// kernel: tpu_custom_call.1
= control target key start
LH: loop header
LB: loop body
LE: loop exit
PB: predicated region body
PF: predicated region fallthrough
CT: control target
= control target key end

     0   :  { %s7986_s0 = inlined_call_operand.hbm [shape: bf16[256,896], index: 0, kind: input, shape index: {}]   ;;  %s7987_s1 = inlined_call_operand.hbm [shape: bf16[896,512], index: 1, kind: input, shape index: {}]   ;;  %s7988_s2 = inlined_call_operand.vmem [shape: f32[1,512], index: 2, kind: input, shape index: {}]   ;;  %s7989_s3 = inlined_call_operand.hbm [shape: bf16[512,256], index: 3, kind: input, shape index: {}]   ;;  %s7990_s4 = inlined_call_operand.vmem [shape: f32[1,256], index: 4, kind: input, shape index: {}]   ;;  %s7991_s5 = inlined_call_operand.vmem [shape: bf16[1,256], index: 5, kind: input, shape index: {}]   ;;  %s7992_s6 = inlined_call_operand.<no memory space> [shape: f32[1,1], index: 6, kind: input, shape index: {}]   ;;  %s7993_s7 = inlined_call_operand.hbm [shape: f32[1,256], index: 7, kind: output, shape index: {}]  }
   0x1   :  { %v12_v0 = vstv %s7992_s6 }
   0x2   :  { %13 = vst [vmem:[#allocation2] sm:$0x1] %v12_v0 }
   0x3   :  { %14 = vsyncpa [#allocation4], 0 }
   0x4   :  { %15 = vsyncpa [#allocation7], 0 }
   0x5   :  { %16 = vsyncpa [#allocation5], 0  ;;  %s7034_s26 = smov [#allocation6]   ;;  %s6940_s30 = scalar_lea.hbm %s7987_s1, 28672 }
   0x6   :  { %s34_s27 = sshll.u32 %s7034_s26, 4  ;;  %p6941_p0 = scmp.ne.s32.totalorder %s7987_s1, %s6940_s30  ;;  %s35_s27 = int_to_ptr.vmem [resolvable:$true] %s34_s27 }
   0x7   :  { %p6944_p1 = scmp.lt.u32.totalorder %s6940_s30, %s7987_s1 }
   0x9   :  { %p6946_p2 = pnand %p6944_p1, %p6941_p0 }
   0xb   :  { %6949 = shalt.err (!%p6946_p2)
}
   0xc   :  { %s6950_s6 = scalar_lea.vmem %s35_s27, 28672  ;;  %p6955_p4 = scmp.lt.s32.totalorder %s35_s27, %s35_s27 }
   0xd   :  { %p6951_p3 = scmp.ne.s32.totalorder %s35_s27, %s6950_s6  ;;  %p6956_p5 = scmp.lt.s32.totalorder %s6950_s6, %s6950_s6 }
   0xf   :  { %p6957_p6 = por %p6956_p5, %p6955_p4 }
  0x11   :  { %p6958_p7 = pnand %p6957_p6, %p6951_p3 }
  0x13   :  { %6961 = shalt.err (!%p6958_p7)
}
  0x14   :  { %s7035_s12 = smov 256   ;;  %s7036_s13 = smov 16  }
  0x15   :  { %40 = dma.hbm_to_vmem [thread:$0]  %s7987_s1, 28672, %s35_s27, [#allocation7], %s7035_s12, %s7035_s12, %s7036_s13  }
  0x16   :  { %s7037_s16 = smov [#allocation3]   ;;  %s6962_s20 = scalar_lea.hbm %s7986_s0, 14336 }
  0x17   :  { %s22_s17 = sshll.u32 %s7037_s16, 4  ;;  %p6963_p8 = scmp.ne.s32.totalorder %s7986_s0, %s6962_s20  ;;  %s23_s17 = int_to_ptr.vmem [resolvable:$true] %s22_s17 }
  0x18   :  { %p6966_p9 = scmp.lt.u32.totalorder %s6962_s20, %s7986_s0 }
  0x1a   :  { %p6968_p10 = pnand %p6966_p9, %p6963_p8 }
  0x1c   :  { %6971 = shalt.err (!%p6968_p10)
}
  0x1d   :  { %s6972_s25 = scalar_lea.vmem %s23_s17, 14336  ;;  %p6977_p12 = scmp.lt.s32.totalorder %s23_s17, %s23_s17 }
  0x1e   :  { %p6973_p11 = scmp.ne.s32.totalorder %s23_s17, %s6972_s25  ;;  %p6978_p13 = scmp.lt.s32.totalorder %s6972_s25, %s6972_s25 }
  0x20   :  { %p6979_p0 = por %p6978_p13, %p6977_p12 }
  0x22   :  { %p6980_p1 = pnand %p6979_p0, %p6973_p11 }
  0x24   :  { %6983 = shalt.err (!%p6980_p1)
}
  0x25   :  { %s7038_s1 = smov 448   ;;  %s7039_s26 = smov 28  }
  0x26   :  { %28 = dma.hbm_to_vmem [thread:$0]  %s7986_s0, 14336, %s23_s17, [#allocation4], %s7038_s1, %s7038_s1, %s7039_s26  }
  0x27   :  { %s7040_s29 = smov [#allocation8]   ;;  %s6984_s10 = scalar_lea.hbm %s7989_s3, 8192 }
  0x28   :  { %s48_s30 = sshll.u32 %s7040_s29, 4  ;;  %p6985_p2 = scmp.ne.s32.totalorder %s7989_s3, %s6984_s10  ;;  %s49_s30 = int_to_ptr.vmem [resolvable:$true] %s48_s30 }
  0x29   :  { %p6988_p3 = scmp.lt.u32.totalorder %s6984_s10, %s7989_s3 }
  0x2b   :  { %p6990_p4 = pnand %p6988_p3, %p6985_p2 }
  0x2d   :  { %6993 = shalt.err (!%p6990_p4)
}
  0x2e   :  { %s6994_s14 = scalar_lea.vmem %s49_s30, 8192  ;;  %p6999_p6 = scmp.lt.s32.totalorder %s49_s30, %s49_s30 }
  0x2f   :  { %p6995_p5 = scmp.ne.s32.totalorder %s49_s30, %s6994_s14  ;;  %p7000_p7 = scmp.lt.s32.totalorder %s6994_s14, %s6994_s14 }
  0x31   :  { %p7001_p8 = por %p7000_p7, %p6999_p6 }
  0x33   :  { %p7002_p9 = pnand %p7001_p8, %p6995_p5 }
  0x35   :  { %7005 = shalt.err (!%p7002_p9)
}
  0x36   :  { %s7041_s0 = smov 128   ;;  %s7042_s15 = smov 8  }
  0x37   :  { %54 = dma.hbm_to_vmem [thread:$0]  %s7989_s3, 8192, %s49_s30, [#allocation7], %s7041_s0, %s7041_s0, %s7042_s15  }
  0x38   :  { %7028 = dma.done.wait [#allocation4], 14336  }
  0x39   :  { %7029 = vsyncadd [#allocation4], 4294952960 }
  0x3a   :  { %7030 = dma.done.wait [#allocation7], 36864  }
  0x3b   :  { %7031 = vsyncadd [#allocation7], 4294930432  ;;  %v7994_v1 = vmov 0   ;;  %v6323_v2 = vld [vmem:[#allocation6 + $0x4] ss:$16 sps:$4 sm:$0xff]  }
  0x3c   :  { %2752 = vmatprep.mubr.bf16.mxu1 %v7994_v1  ;;  %6322 = vset.pattern.permute.xlu0 %v7994_v1  ;;  %v6325_v3 = vld [vmem:[#allocation6 + $0x604] ss:$16 sps:$4 sm:$0xff]   ;;  %v6327_v4 = vld [vmem:[#allocation6] ss:$16 sps:$4 sm:$0xff]   ;;  %v6376_v35 = vld [vmem:[#allocation6 + $0xc] ss:$16 sps:$4 sm:$0xff]  }
  0x3d   :  { %2141 = vmatprep.subr.bf16.mxu0 %v6323_v2  ;;  %v6328_v5 = vld [vmem:[#allocation6 + $0x600] ss:$16 sps:$4 sm:$0xff]   ;;  %2720 = vmatprep.subr.bf16.mxu1 %v6325_v3  ;;  %v6329_v6 = vld [vmem:[#allocation6 + $0x24] ss:$16 sps:$4 sm:$0xff]   ;;  %v6374_v37 = vld [vmem:[#allocation6 + $0x8] ss:$16 sps:$4 sm:$0xff]  }
  0x3e   :  { %2142 = vmatpush1.bf16.msra.mxu0 %v6327_v4  ;;  %2721 = vmatpush1.bf16.msra.mxu1 %v6328_v5  ;;  %v6331_v7 = vld [vmem:[#allocation6 + $0x624] ss:$16 sps:$4 sm:$0xff]   ;;  %v6333_v8 = vld [vmem:[#allocation6 + $0x20] ss:$16 sps:$4 sm:$0xff]   ;;  %v6386_v41 = vld [vmem:[#allocation6 + $0x2c] ss:$16 sps:$4 sm:$0xff]  }
  0x3f   :  { %2143 = vmatprep.subr.bf16.mxu0 %v6329_v6  ;;  %v6334_v9 = vld [vmem:[#allocation6 + $0x620] ss:$16 sps:$4 sm:$0xff]   ;;  %2722 = vmatprep.subr.bf16.mxu1 %v6331_v7  ;;  %v6335_v10 = vld [vmem:[#allocation6 + $0x44] ss:$16 sps:$4 sm:$0xff]   ;;  %v6384_v43 = vld [vmem:[#allocation6 + $0x28] ss:$16 sps:$4 sm:$0xff]  }
  0x40   :  { %v6337_v11 = vld [vmem:[#allocation6 + $0x644] ss:$16 sps:$4 sm:$0xff]   ;;  %v6339_v12 = vld [vmem:[#allocation6 + $0x40] ss:$16 sps:$4 sm:$0xff]   ;;  %v6396_v44 = vld [vmem:[#allocation6 + $0x4c] ss:$16 sps:$4 sm:$0xff]  }
  0x41   :  { %v6340_v13 = vld [vmem:[#allocation6 + $0x640] ss:$16 sps:$4 sm:$0xff]   ;;  %v6341_v14 = vld [vmem:[#allocation6 + $0x64] ss:$16 sps:$4 sm:$0xff]   ;;  %v6394_v48 = vld [vmem:[#allocation6 + $0x48] ss:$16 sps:$4 sm:$0xff]  }
  0x42   :  { %2144 = vmatpush1.bf16.msra.mxu0 %v6333_v8  ;;  %2723 = vmatpush1.bf16.msra.mxu1 %v6334_v9  ;;  %v6343_v15 = vld [vmem:[#allocation6 + $0x664] ss:$16 sps:$4 sm:$0xff]   ;;  %v6345_v16 = vld [vmem:[#allocation6 + $0x60] ss:$16 sps:$4 sm:$0xff]   ;;  %v6406_v49 = vld [vmem:[#allocation6 + $0x6c] ss:$16 sps:$4 sm:$0xff]  }
  0x43   :  { %2145 = vmatprep.subr.bf16.mxu0 %v6335_v10  ;;  %2724 = vmatprep.subr.bf16.mxu1 %v6337_v11  ;;  %v6346_v17 = vld [vmem:[#allocation6 + $0x660] ss:$16 sps:$4 sm:$0xff]   ;;  %v6347_v18 = vld [vmem:[#allocation6 + $0x84] ss:$16 sps:$4 sm:$0xff]   ;;  %v6404_v53 = vld [vmem:[#allocation6 + $0x68] ss:$16 sps:$4 sm:$0xff]  }
  0x44   :  { %v6349_v19 = vld [vmem:[#allocation6 + $0x684] ss:$16 sps:$4 sm:$0xff]   ;;  %v6351_v20 = vld [vmem:[#allocation6 + $0x80] ss:$16 sps:$4 sm:$0xff]   ;;  %v6417_v54 = vld [vmem:[#allocation6 + $0x8c] ss:$16 sps:$4 sm:$0xff]  }
  0x45   :  { %v6352_v21 = vld [vmem:[#allocation6 + $0x680] ss:$16 sps:$4 sm:$0xff]   ;;  %v6353_v22 = vld [vmem:[#allocation6 + $0xa4] ss:$16 sps:$4 sm:$0xff]   ;;  %v6415_v58 = vld [vmem:[#allocation6 + $0x88] ss:$16 sps:$4 sm:$0xff]  }
  0x46   :  { %2146 = vmatpush1.bf16.msra.mxu0 %v6339_v12  ;;  %2725 = vmatpush1.bf16.msra.mxu1 %v6340_v13  ;;  %v6355_v23 = vld [vmem:[#allocation6 + $0x6a4] ss:$16 sps:$4 sm:$0xff]   ;;  %v6357_v24 = vld [vmem:[#allocation6 + $0xa0] ss:$16 sps:$4 sm:$0xff]   ;;  %v6424_v59 = vld [vmem:[#allocation6 + $0xac] ss:$16 sps:$4 sm:$0xff]  }
  0x47   :  { %2147 = vmatprep.subr.bf16.mxu0 %v6341_v14  ;;  %2726 = vmatprep.subr.bf16.mxu1 %v6343_v15  ;;  %v6358_v25 = vld [vmem:[#allocation6 + $0x6a0] ss:$16 sps:$4 sm:$0xff]   ;;  %v6359_v26 = vld [vmem:[#allocation6 + $0xc4] ss:$16 sps:$4 sm:$0xff]   ;;  %v6422_v62 = vld [vmem:[#allocation6 + $0xa8] ss:$16 sps:$4 sm:$0xff]  }
  0x48   :  { %v6361_v27 = vld [vmem:[#allocation6 + $0x6c4] ss:$16 sps:$4 sm:$0xff]   ;;  %v6363_v28 = vld [vmem:[#allocation6 + $0xc0] ss:$16 sps:$4 sm:$0xff]   ;;  %v6431_v63 = vld [vmem:[#allocation6 + $0xcc] ss:$16 sps:$4 sm:$0xff]  }
  0x49   :  { %v6364_v29 = vld [vmem:[#allocation6 + $0x6c0] ss:$16 sps:$4 sm:$0xff]   ;;  %v6365_v30 = vld [vmem:[#allocation6 + $0xe4] ss:$16 sps:$4 sm:$0xff]   ;;  %v6429_v4 = vld [vmem:[#allocation6 + $0xc8] ss:$16 sps:$4 sm:$0xff]  }
  0x4a   :  { %2148 = vmatpush1.bf16.msra.mxu0 %v6345_v16  ;;  %2727 = vmatpush1.bf16.msra.mxu1 %v6346_v17  ;;  %v6367_v31 = vld [vmem:[#allocation6 + $0x6e4] ss:$16 sps:$4 sm:$0xff]   ;;  %v6369_v32 = vld [vmem:[#allocation6 + $0xe0] ss:$16 sps:$4 sm:$0xff]   ;;  %v6438_v5 = vld [vmem:[#allocation6 + $0xec] ss:$16 sps:$4 sm:$0xff]  }
  0x4b   :  { %2149 = vmatprep.subr.bf16.mxu0 %v6347_v18  ;;  %2728 = vmatprep.subr.bf16.mxu1 %v6349_v19  ;;  %v6370_v33 = vld [vmem:[#allocation6 + $0x6e0] ss:$16 sps:$4 sm:$0xff]   ;;  %v6371_v34 = vld [vmem:[#allocation6 + $0x104] ss:$16 sps:$4 sm:$0xff]   ;;  %v6436_v8 = vld [vmem:[#allocation6 + $0xe8] ss:$16 sps:$4 sm:$0xff]  }
  0x4c   :  { %v6373_v36 = vld [vmem:[#allocation3 + $0x18] ss:$28 sps:$4 sm:$0xff]   ;;  %v6377_v38 = vld [vmem:[#allocation6 + $0x100] ss:$16 sps:$4 sm:$0xff]   ;;  %v6393_v55 = vld [vmem:[#allocation3 + $0x88] ss:$28 sps:$4 sm:$0xff]  }
  0x4d   :  { %v6378_v39 = vld [vmem:[#allocation6 + $0x124] ss:$16 sps:$4 sm:$0xff]   ;;  %v6380_v40 = vld [vmem:[#allocation6 + $0x120] ss:$16 sps:$4 sm:$0xff]   ;;  %v6445_v9 = vld [vmem:[#allocation6 + $0x10c] ss:$16 sps:$4 sm:$0xff]  }
  0x4e   :  { %2150 = vmatpush1.bf16.msra.mxu0 %v6351_v20  ;;  %2729 = vmatpush1.bf16.msra.mxu1 %v6352_v21  ;;  %v6381_v42 = vld [vmem:[#allocation6 + $0x144] ss:$16 sps:$4 sm:$0xff]   ;;  %v6383_v45 = vld [vmem:[#allocation3 + $0x50] ss:$28 sps:$4 sm:$0xff]   ;;  %v6403_v0 = vld [vmem:[#allocation3 + $0xc0] ss:$28 sps:$4 sm:$0xff]  }
  0x4f   :  { %2151 = vmatprep.subr.bf16.mxu0 %v6353_v22  ;;  %2730 = vmatprep.subr.bf16.mxu1 %v6355_v23  ;;  %v6387_v46 = vld [vmem:[#allocation6 + $0x140] ss:$16 sps:$4 sm:$0xff]   ;;  %v6388_v47 = vld [vmem:[#allocation6 + $0x164] ss:$16 sps:$4 sm:$0xff]   ;;  %v7136_v11 = vld [vmem:[#allocation3 + $0x3c] ss:$28 sps:$4 sm:$0xff]  }
  0x50   :  { %v7128_v50 = vld [vmem:[#allocation3 + $0x4] ss:$28 sps:$4 sm:$0xff]   ;;  %v6414_v10 = vld [vmem:[#allocation3 + $0xf8] ss:$28 sps:$4 sm:$0xff]   ;;  %v6452_v13 = vld [vmem:[#allocation6 + $0x12c] ss:$16 sps:$4 sm:$0xff]  }
  0x51   :  { %v6390_v51 = vld [vmem:[#allocation6 + $0x160] ss:$16 sps:$4 sm:$0xff]   ;;  %v6391_v52 = vld [vmem:[#allocation6 + $0x184] ss:$16 sps:$4 sm:$0xff]   ;;  %2173 = vmatprep.mubr.bf16.mxu0 %v7128_v50  ;;  %v6443_v12 = vld [vmem:[#allocation6 + $0x108] ss:$16 sps:$4 sm:$0xff]  }
  0x52   :  { %2152 = vmatpush1.bf16.msra.mxu0 %v6357_v24  ;;  %2731 = vmatpush1.bf16.msra.mxu1 %v6358_v25  ;;  %v6397_v56 = vld [vmem:[#allocation6 + $0x180] ss:$16 sps:$4 sm:$0xff]   ;;  %v6398_v57 = vld [vmem:[#allocation6 + $0x1a4] ss:$16 sps:$4 sm:$0xff]   ;;  %v6450_v15 = vld [vmem:[#allocation6 + $0x128] ss:$16 sps:$4 sm:$0xff]  }
  0x53   :  { %2153 = vmatprep.subr.bf16.mxu0 %v6359_v26  ;;  %2732 = vmatprep.subr.bf16.mxu1 %v6361_v27  ;;  %v6400_v60 = vld [vmem:[#allocation6 + $0x1a0] ss:$16 sps:$4 sm:$0xff]   ;;  %v6401_v61 = vld [vmem:[#allocation6 + $0x1c4] ss:$16 sps:$4 sm:$0xff]   ;;  %v6459_v17 = vld [vmem:[#allocation6 + $0x14c] ss:$16 sps:$4 sm:$0xff]  }
  0x54   :  { %v6407_v2 = vld [vmem:[#allocation6 + $0x1c0] ss:$16 sps:$4 sm:$0xff]   ;;  %v6408_v3 = vld [vmem:[#allocation6 + $0x1e4] ss:$16 sps:$4 sm:$0xff]   ;;  %v6457_v19 = vld [vmem:[#allocation6 + $0x148] ss:$16 sps:$4 sm:$0xff]  }
  0x55   :  { %v6410_v6 = vld [vmem:[#allocation6 + $0x1e0] ss:$16 sps:$4 sm:$0xff]   ;;  %v7141_v14 = vld [vmem:[#allocation3 + $0x38] ss:$28 sps:$4 sm:$0xff]   ;;  %v6466_v20 = vld [vmem:[#allocation6 + $0x16c] ss:$16 sps:$4 sm:$0xff]  }
  0x56   :  { %2154 = vmatpush1.bf16.msra.mxu0 %v6363_v28  ;;  %2733 = vmatpush1.bf16.msra.mxu1 %v6364_v29  ;;  %v7134_v7 = vld [vmem:[#allocation3] ss:$28 sps:$4 sm:$0xff]   ;;  %v6421_v16 = vld [vmem:[#allocation3 + $0x130] ss:$28 sps:$4 sm:$0xff]   ;;  %v6472_v21 = vld [vmem:[#allocation6 + $0x204] ss:$16 sps:$4 sm:$0xff]  }
  0x57   :  { %2155 = vmatprep.subr.bf16.mxu0 %v6365_v30  ;;  %2734 = vmatprep.subr.bf16.mxu1 %v6367_v31  ;;  %v7143_v18 = vld [vmem:[#allocation3 + $0x74] ss:$28 sps:$4 sm:$0xff]   ;;  %v6464_v23 = vld [vmem:[#allocation6 + $0x168] ss:$16 sps:$4 sm:$0xff]   ;;  %v6476_v26 = vld [vmem:[#allocation6 + $0x18c] ss:$16 sps:$4 sm:$0xff]  }
  0x58   :  { %v6470_v22 = vld [vmem:[#allocation6 + $0x200] ss:$16 sps:$4 sm:$0xff]   ;;  %v6479_v24 = vld [vmem:[#allocation6 + $0x224] ss:$16 sps:$4 sm:$0xff]   ;;  %v7150_v29 = vld [vmem:[#allocation3 + $0xac] ss:$28 sps:$4 sm:$0xff]  }
  0x59   :  { %v7148_v25 = vld [vmem:[#allocation3 + $0x70] ss:$28 sps:$4 sm:$0xff]   ;;  %v6428_v28 = vld [vmem:[#allocation3 + $0x168] ss:$28 sps:$4 sm:$0xff]  }
  0x5a   :  { %2156 = vmatpush1.bf16.msra.mxu0 %v6369_v32  ;;  %2735 = vmatpush1.bf16.msra.mxu1 %v6370_v33  ;;  %v6477_v27 = vld [vmem:[#allocation6 + $0x220] ss:$16 sps:$4 sm:$0xff]   ;;  %v6474_v30 = vld [vmem:[#allocation6 + $0x188] ss:$16 sps:$4 sm:$0xff]   ;;  %v6485_v32 = vld [vmem:[#allocation6 + $0x244] ss:$16 sps:$4 sm:$0xff]  }
  0x5b   :  { %2157 = vmatprep.subr.bf16.mxu0 %v6371_v34  ;;  %2913 = vmatprep.subr.bf16.mxu1 %v6376_v35  ;;  %v6483_v31 = vld [vmem:[#allocation6 + $0x240] ss:$16 sps:$4 sm:$0xff]   ;;  %v6489_v33 = vld [vmem:[#allocation6 + $0x1ac] ss:$16 sps:$4 sm:$0xff]   ;;  %v6492_v34 = vld [vmem:[#allocation6 + $0x264] ss:$16 sps:$4 sm:$0xff]  }
  0x5c   :  { %v7155_v35 = vld [vmem:[#allocation3 + $0xa8] ss:$28 sps:$4 sm:$0xff]  }
  0x5d   :  { %2753 = vmatmul.mubr.bf16.vlgmr.msra.gmra.mrb[0].mxu1 %v6373_v36  ;;  %v6435_v36 = vld [vmem:[#allocation3 + $0x1a0] ss:$28 sps:$4 sm:$0xff]  }
  0x5e   :  { %2158 = vmatpush1.bf16.msra.mxu0 %v6377_v38  ;;  %2914 = vmatpush1.bf16.msra.mxu1 %v6374_v37  ;;  %v6487_v37 = vld [vmem:[#allocation6 + $0x1a8] ss:$16 sps:$4 sm:$0xff]   ;;  %v6490_v38 = vld [vmem:[#allocation6 + $0x260] ss:$16 sps:$4 sm:$0xff]  }
  0x5f   :  { %2159 = vmatprep.subr.bf16.mxu0 %v6378_v39  ;;  %2762 = vmatprep.mubr.bf16.mxu1 %v7994_v1  ;;  %v7157_v39 = vld [vmem:[#allocation3 + $0xe4] ss:$28 sps:$4 sm:$0xff]  }
  0x60   :  { %2915 = vmatprep.subr.bf16.mxu1 %v6386_v41  ;;  %v6498_v41 = vld [vmem:[#allocation6 + $0x284] ss:$16 sps:$4 sm:$0xff]  }
  0x62   :  { %2160 = vmatpush1.bf16.msra.mxu0 %v6380_v40  ;;  %2916 = vmatpush1.bf16.msra.mxu1 %v6384_v43  ;;  %v6502_v40 = vld [vmem:[#allocation6 + $0x1cc] ss:$16 sps:$4 sm:$0xff]   ;;  %v6496_v43 = vld [vmem:[#allocation6 + $0x280] ss:$16 sps:$4 sm:$0xff]  }
  0x63   :  { %2161 = vmatprep.subr.bf16.mxu0 %v6381_v42  ;;  %2917 = vmatprep.subr.bf16.mxu1 %v6396_v44  ;;  %v6500_v42 = vld [vmem:[#allocation6 + $0x1c8] ss:$16 sps:$4 sm:$0xff]   ;;  %v6505_v44 = vld [vmem:[#allocation6 + $0x2a4] ss:$16 sps:$4 sm:$0xff]  }
  0x65   :  { %2763 = vmatmul.mubr.bf16.gmra.mrb[4].mxu1 %v6383_v45  ;;  %v6503_v45 = vld [vmem:[#allocation6 + $0x2a0] ss:$16 sps:$4 sm:$0xff]  }
  0x66   :  { %2162 = vmatpush1.bf16.msra.mxu0 %v6387_v46  ;;  %2772 = vmatprep.mubr.bf16.mxu1 %v7994_v1  ;;  %v6513_v46 = vld [vmem:[#allocation6 + $0x1e8] ss:$16 sps:$4 sm:$0xff]  }
  0x67   :  { %2163 = vmatprep.subr.bf16.mxu0 %v6388_v47  ;;  %2918 = vmatpush1.bf16.msra.mxu1 %v6394_v48  ;;  %v6515_v47 = vld [vmem:[#allocation6 + $0x1ec] ss:$16 sps:$4 sm:$0xff]  }
  0x68   :  { %2919 = vmatprep.subr.bf16.mxu1 %v6406_v49  ;;  %v7162_v48 = vld [vmem:[#allocation3 + $0xe0] ss:$28 sps:$4 sm:$0xff]   ;;  %v6442_v49 = vld [vmem:[#allocation3 + $0x1d8] ss:$28 sps:$4 sm:$0xff]  }
  0x6a   :  { %2164 = vmatpush1.bf16.msra.mxu0 %v6390_v51  ;;  %v7164_v51 = vld [vmem:[#allocation3 + $0x11c] ss:$28 sps:$4 sm:$0xff]  }
  0x6b   :  { %2165 = vmatprep.subr.bf16.mxu0 %v6391_v52  ;;  %2920 = vmatpush1.bf16.msra.mxu1 %v6404_v53  ;;  %v6511_v52 = vld [vmem:[#allocation6 + $0x2c4] ss:$16 sps:$4 sm:$0xff]   ;;  %v6509_v53 = vld [vmem:[#allocation6 + $0x2c0] ss:$16 sps:$4 sm:$0xff]  }
  0x6c   :  { %2921 = vmatprep.subr.bf16.mxu1 %v6417_v54  ;;  %v6518_v54 = vld [vmem:[#allocation6 + $0x2e4] ss:$16 sps:$4 sm:$0xff]  }
  0x6d   :  { %2773 = vmatmul.mubr.bf16.gmra.mrb[8].mxu1 %v6393_v55  ;;  %v6527_v55 = vld [vmem:[#allocation6 + $0x20c] ss:$16 sps:$4 sm:$0xff]  }
  0x6e   :  { %2166 = vmatpush1.bf16.msra.mxu0 %v6397_v56  ;;  %2782 = vmatprep.mubr.bf16.mxu1 %v7994_v1  ;;  %v6516_v56 = vld [vmem:[#allocation6 + $0x2e0] ss:$16 sps:$4 sm:$0xff]  }
  0x6f   :  { %2167 = vmatprep.subr.bf16.mxu0 %v6398_v57  ;;  %2922 = vmatpush1.bf16.msra.mxu1 %v6415_v58  ;;  %v7169_v57 = vld [vmem:[#allocation3 + $0x118] ss:$28 sps:$4 sm:$0xff]   ;;  %v6449_v58 = vld [vmem:[#allocation3 + $0x210] ss:$28 sps:$4 sm:$0xff]  }
  0x70   :  { %2923 = vmatprep.subr.bf16.mxu1 %v6424_v59  ;;  %v7171_v59 = vld [vmem:[#allocation3 + $0x154] ss:$28 sps:$4 sm:$0xff]  }
  0x72   :  { %2168 = vmatpush1.bf16.msra.mxu0 %v6400_v60  ;;  %v6524_v60 = vld [vmem:[#allocation6 + $0x304] ss:$16 sps:$4 sm:$0xff]  }
  0x73   :  { %2169 = vmatprep.subr.bf16.mxu0 %v6401_v61  ;;  %2924 = vmatpush1.bf16.msra.mxu1 %v6422_v62  ;;  %v6522_v61 = vld [vmem:[#allocation6 + $0x300] ss:$16 sps:$4 sm:$0xff]   ;;  %v6530_v62 = vld [vmem:[#allocation6 + $0x324] ss:$16 sps:$4 sm:$0xff]  }
  0x74   :  { %2925 = vmatprep.subr.bf16.mxu1 %v6431_v63  ;;  %v6528_v63 = vld [vmem:[#allocation6 + $0x320] ss:$16 sps:$4 sm:$0xff]  }
  0x75   :  { %2783 = vmatmul.mubr.bf16.gmra.mrb[12].mxu1 %v6403_v0  ;;  %v7176_v0 = vld [vmem:[#allocation3 + $0x150] ss:$28 sps:$4 sm:$0xff]  }
  0x76   :  { %2170 = vmatpush1.bf16.msra.mxu0 %v6407_v2  ;;  %2792 = vmatprep.mubr.bf16.mxu1 %v7994_v1  ;;  %v6456_v2 = vld [vmem:[#allocation3 + $0x248] ss:$28 sps:$4 sm:$0xff]  }
  0x77   :  { %2171 = vmatprep.subr.bf16.mxu0 %v6408_v3  ;;  %2926 = vmatpush1.bf16.msra.mxu1 %v6429_v4  ;;  %v7178_v3 = vld [vmem:[#allocation3 + $0x18c] ss:$28 sps:$4 sm:$0xff]   ;;  %v6536_v4 = vld [vmem:[#allocation6 + $0x344] ss:$16 sps:$4 sm:$0xff]  }
  0x78   :  { %2927 = vmatprep.subr.bf16.mxu1 %v6438_v5  ;;  %v6534_v5 = vld [vmem:[#allocation6 + $0x340] ss:$16 sps:$4 sm:$0xff]  }
  0x7a   :  { %2172 = vmatpush1.bf16.msra.mxu0 %v6410_v6  ;;  %v6542_v6 = vld [vmem:[#allocation6 + $0x364] ss:$16 sps:$4 sm:$0xff]  }
  0x7b   :  { %2928 = vmatpush1.bf16.msra.mxu1 %v6436_v8  ;;  %2334 = vmatprep.subr.bf16.mxu0 %v6472_v21  ;;  %v6540_v8 = vld [vmem:[#allocation6 + $0x360] ss:$16 sps:$4 sm:$0xff]   ;;  %v7192_v21 = vld [vmem:[#allocation3 + $0x1fc] ss:$28 sps:$4 sm:$0xff]  }
  0x7c   :  { %2929 = vmatprep.subr.bf16.mxu1 %v6445_v9  ;;  %v7183_v9 = vld [vmem:[#allocation3 + $0x188] ss:$28 sps:$4 sm:$0xff]  }
  0x7d   :  { %2174 = vmatmul.mubr.bf16.vlgmr.msra.gmra.mrb[0].mxu0 %v7134_v7  ;;  %2793 = vmatmul.mubr.bf16.gmra.mrb[16].mxu1 %v6414_v10  ;;  %v6463_v10 = vld [vmem:[#allocation3 + $0x280] ss:$28 sps:$4 sm:$0xff]  }
  0x7e   :  { %2183 = vmatprep.mubr.bf16.mxu0 %v7136_v11  ;;  %2802 = vmatprep.mubr.bf16.mxu1 %v7994_v1 }
  0x7f   :  { %2930 = vmatpush1.bf16.msra.mxu1 %v6443_v12  ;;  %2335 = vmatpush1.bf16.msra.mxu0 %v6470_v22  ;;  %v7185_v12 = vld [vmem:[#allocation3 + $0x1c4] ss:$28 sps:$4 sm:$0xff]  }
  0x80   :  { %2931 = vmatprep.subr.bf16.mxu1 %v6452_v13  ;;  %2336 = vmatprep.subr.bf16.mxu0 %v6479_v24  ;;  %v6548_v13 = vld [vmem:[#allocation6 + $0x384] ss:$16 sps:$4 sm:$0xff]  }
  0x81   :  { %v6560_v22 = vld [vmem:[#allocation6 + $0x3c4] ss:$16 sps:$4 sm:$0xff]  }
  0x82   :  { %v6566_v24 = vld [vmem:[#allocation6 + $0x3e4] ss:$16 sps:$4 sm:$0xff]  }
  0x83   :  { %2932 = vmatpush1.bf16.msra.mxu1 %v6450_v15  ;;  %2337 = vmatpush1.bf16.msra.mxu0 %v6477_v27  ;;  %v6546_v15 = vld [vmem:[#allocation6 + $0x380] ss:$16 sps:$4 sm:$0xff]   ;;  %v7197_v27 = vld [vmem:[#allocation3 + $0x1f8] ss:$28 sps:$4 sm:$0xff]  }
  0x84   :  { %2933 = vmatprep.subr.bf16.mxu1 %v6459_v17  ;;  %2338 = vmatprep.subr.bf16.mxu0 %v6485_v32  ;;  %v6552_v17 = vld [vmem:[#allocation6 + $0x3a0] ss:$16 sps:$4 sm:$0xff]  }
  0x85   :  { %2184 = vmatmul.mubr.bf16.gmra.mrb[4].mxu0 %v7141_v14  ;;  %2803 = vmatmul.mubr.bf16.gmra.mrb[20].mxu1 %v6421_v16  ;;  %v6554_v16 = vld [vmem:[#allocation6 + $0x3a4] ss:$16 sps:$4 sm:$0xff]   ;;  %v7204_v32 = vld [vmem:[#allocation3 + $0x230] ss:$28 sps:$4 sm:$0xff]  }
  0x86   :  { %2193 = vmatprep.mubr.bf16.mxu0 %v7143_v18  ;;  %2812 = vmatprep.mubr.bf16.mxu1 %v7994_v1 }
  0x87   :  { %2934 = vmatpush1.bf16.msra.mxu1 %v6457_v19  ;;  %2339 = vmatpush1.bf16.msra.mxu0 %v6483_v31  ;;  %v7190_v19 = vld [vmem:[#allocation3 + $0x1c0] ss:$28 sps:$4 sm:$0xff]   ;;  %v6620_v31 = vld [vmem:[#allocation6 + $0x404] ss:$16 sps:$4 sm:$0xff]  }
  0x88   :  { %2935 = vmatprep.subr.bf16.mxu1 %v6466_v20  ;;  %2340 = vmatprep.subr.bf16.mxu0 %v6492_v34  ;;  %v6473_v20 = vld [vmem:[#allocation3 + $0x2b8] ss:$28 sps:$4 sm:$0xff]   ;;  %v7206_v34 = vld [vmem:[#allocation3 + $0x26c] ss:$28 sps:$4 sm:$0xff]  }
  0x8b   :  { %2936 = vmatpush1.bf16.msra.mxu1 %v6464_v23  ;;  %2341 = vmatpush1.bf16.msra.mxu0 %v6490_v38  ;;  %v6558_v23 = vld [vmem:[#allocation6 + $0x3c0] ss:$16 sps:$4 sm:$0xff]  }
  0x8c   :  { %2937 = vmatprep.subr.bf16.mxu1 %v6476_v26  ;;  %2342 = vmatprep.subr.bf16.mxu0 %v6498_v41  ;;  %v6564_v26 = vld [vmem:[#allocation6 + $0x3e0] ss:$16 sps:$4 sm:$0xff]   ;;  %v6525_v41 = vld [vmem:[#allocation6 + $0x208] ss:$16 sps:$4 sm:$0xff]  }
  0x8d   :  { %2194 = vmatmul.mubr.bf16.gmra.mrb[8].mxu0 %v7148_v25  ;;  %2813 = vmatmul.mubr.bf16.gmra.mrb[24].mxu1 %v6428_v28  ;;  %v6486_v28 = vld [vmem:[#allocation3 + $0x2f0] ss:$28 sps:$4 sm:$0xff]   ;;  %v7213_v38 = vld [vmem:[#allocation3 + $0x2a4] ss:$28 sps:$4 sm:$0xff]  }
  0x8e   :  { %2203 = vmatprep.mubr.bf16.mxu0 %v7150_v29  ;;  %2822 = vmatprep.mubr.bf16.mxu1 %v7994_v1 }
  0x8f   :  { %2938 = vmatpush1.bf16.msra.mxu1 %v6474_v30  ;;  %2343 = vmatpush1.bf16.msra.mxu0 %v6496_v43  ;;  %v7199_v30 = vld [vmem:[#allocation3 + $0x234] ss:$28 sps:$4 sm:$0xff]   ;;  %v6539_v43 = vld [vmem:[#allocation6 + $0x22c] ss:$16 sps:$4 sm:$0xff]  }
  0x90   :  { %2939 = vmatprep.subr.bf16.mxu1 %v6489_v33  ;;  %2344 = vmatprep.subr.bf16.mxu0 %v6505_v44  ;;  %v6499_v33 = vld [vmem:[#allocation3 + $0x328] ss:$28 sps:$4 sm:$0xff]  }
  0x91   :  { %v6537_v44 = vld [vmem:[#allocation6 + $0x228] ss:$16 sps:$4 sm:$0xff]  }
  0x93   :  { %2940 = vmatpush1.bf16.msra.mxu1 %v6487_v37  ;;  %2345 = vmatpush1.bf16.msra.mxu0 %v6503_v45  ;;  %v6512_v37 = vld [vmem:[#allocation3 + $0x360] ss:$28 sps:$4 sm:$0xff]  }
  0x94   :  { %2941 = vmatprep.subr.bf16.mxu1 %v6502_v40  ;;  %2346 = vmatprep.subr.bf16.mxu0 %v6511_v52  ;;  %v7218_v40 = vld [vmem:[#allocation3 + $0x2a0] ss:$28 sps:$4 sm:$0xff]  }
  0x95   :  { %2204 = vmatmul.mubr.bf16.gmra.mrb[12].mxu0 %v7155_v35  ;;  %2823 = vmatmul.mubr.bf16.gmra.mrb[28].mxu1 %v6435_v36  ;;  %v7211_v36 = vld [vmem:[#allocation3 + $0x268] ss:$28 sps:$4 sm:$0xff]   ;;  %v6551_v45 = vld [vmem:[#allocation6 + $0x24c] ss:$16 sps:$4 sm:$0xff]  }
  0x96   :  { %2213 = vmatprep.mubr.bf16.mxu0 %v7157_v39  ;;  %2832 = vmatprep.mubr.bf16.mxu1 %v7994_v1  ;;  %v6572_v52 = vld [vmem:[#allocation6 + $0x28c] ss:$16 sps:$4 sm:$0xff]  }
  0x97   :  { %2942 = vmatpush1.bf16.msra.mxu1 %v6500_v42  ;;  %2347 = vmatpush1.bf16.msra.mxu0 %v6509_v53  ;;  %v7220_v42 = vld [vmem:[#allocation3 + $0x2dc] ss:$28 sps:$4 sm:$0xff]   ;;  %v7236_v53 = vld [vmem:[#allocation3 + $0x34c] ss:$28 sps:$4 sm:$0xff]  }
  0x98   :  { %2943 = vmatprep.subr.bf16.mxu1 %v6515_v47  ;;  %2348 = vmatprep.subr.bf16.mxu0 %v6518_v54  ;;  %v6549_v47 = vld [vmem:[#allocation6 + $0x248] ss:$16 sps:$4 sm:$0xff]  }
  0x99   :  { %v6570_v54 = vld [vmem:[#allocation6 + $0x288] ss:$16 sps:$4 sm:$0xff]  }
  0x9b   :  { %2944 = vmatpush1.bf16.msra.mxu1 %v6513_v46  ;;  %2349 = vmatpush1.bf16.msra.mxu0 %v6516_v56  ;;  %v7226_v46 = vld [vmem:[#allocation3 + $0x2d8] ss:$28 sps:$4 sm:$0xff]   ;;  %v6584_v56 = vld [vmem:[#allocation6 + $0x2cc] ss:$16 sps:$4 sm:$0xff]  }
  0x9c   :  { %3106 = vmatprep.subr.bf16.mxu1 %v6527_v55  ;;  %2350 = vmatprep.subr.bf16.mxu0 %v6524_v60  ;;  %v6578_v55 = vld [vmem:[#allocation6 + $0x2ac] ss:$16 sps:$4 sm:$0xff]   ;;  %v6582_v60 = vld [vmem:[#allocation6 + $0x2c8] ss:$16 sps:$4 sm:$0xff]  }
  0x9d   :  { %2214 = vmatmul.mubr.bf16.gmra.mrb[16].mxu0 %v7162_v48  ;;  %2833 = vmatmul.mubr.bf16.gmra.mrb[32].mxu1 %v6442_v49  ;;  %v6563_v49 = vld [vmem:[#allocation6 + $0x26c] ss:$16 sps:$4 sm:$0xff]  }
  0x9e   :  { %2223 = vmatprep.mubr.bf16.mxu0 %v7164_v51  ;;  %2842 = vmatprep.mubr.bf16.mxu1 %v7994_v1 }
  0x9f   :  { %2351 = vmatpush1.bf16.msra.mxu0 %v6522_v61  ;;  %v6590_v61 = vld [vmem:[#allocation6 + $0x2ec] ss:$16 sps:$4 sm:$0xff]  }
  0xa0   :  { %2352 = vmatprep.subr.bf16.mxu0 %v6530_v62  ;;  %v7252_v62 = vld [vmem:[#allocation3 + $0x44] ss:$28 sps:$4 sm:$0xff]  }
  0xa3   :  { %2353 = vmatpush1.bf16.msra.mxu0 %v6528_v63  ;;  %v6596_v63 = vld [vmem:[#allocation6 + $0x30c] ss:$16 sps:$4 sm:$0xff]  }
  0xa4   :  { %2354 = vmatprep.subr.bf16.mxu0 %v6536_v4  ;;  %v6602_v4 = vld [vmem:[#allocation6 + $0x32c] ss:$16 sps:$4 sm:$0xff]  }
  0xa5   :  { %2224 = vmatmul.mubr.bf16.gmra.mrb[20].mxu0 %v7169_v57  ;;  %2843 = vmatmul.mubr.bf16.gmra.mrb[36].mxu1 %v6449_v58  ;;  %v7244_v58 = vld [vmem:[#allocation3 + $0xc] ss:$28 sps:$4 sm:$0xff]  }
  0xa6   :  { %2233 = vmatprep.mubr.bf16.mxu0 %v7171_v59  ;;  %2852 = vmatprep.mubr.bf16.mxu1 %v7994_v1 }
  0xa7   :  { %2355 = vmatpush1.bf16.msra.mxu0 %v6534_v5  ;;  %v6618_v5 = vld [vmem:[#allocation6 + $0x400] ss:$16 sps:$4 sm:$0xff]  }
  0xa8   :  { %2356 = vmatprep.subr.bf16.mxu0 %v6542_v6  ;;  %v6626_v6 = vld [vmem:[#allocation6 + $0x424] ss:$16 sps:$4 sm:$0xff]  }
  0xab   :  { %2357 = vmatpush1.bf16.msra.mxu0 %v6540_v8  ;;  %v6608_v8 = vld [vmem:[#allocation6 + $0x34c] ss:$16 sps:$4 sm:$0xff]  }
  0xac   :  { %2358 = vmatprep.subr.bf16.mxu0 %v6548_v13  ;;  %v7258_v13 = vld [vmem:[#allocation3 + $0x40] ss:$28 sps:$4 sm:$0xff]  }
  0xad   :  { %2234 = vmatmul.mubr.bf16.gmra.mrb[24].mxu0 %v7176_v0  ;;  %2853 = vmatmul.mubr.bf16.gmra.mrb[40].mxu1 %v6456_v2  ;;  %v6594_v2 = vld [vmem:[#allocation6 + $0x308] ss:$16 sps:$4 sm:$0xff]  }
  0xae   :  { %2243 = vmatprep.mubr.bf16.mxu0 %v7178_v3  ;;  %2862 = vmatprep.mubr.bf16.mxu1 %v7994_v1 }
  0xaf   :  { %2359 = vmatpush1.bf16.msra.mxu0 %v6546_v15  ;;  %v7260_v15 = vld [vmem:[#allocation3 + $0x7c] ss:$28 sps:$4 sm:$0xff]  }
  0xb0   :  { %2360 = vmatprep.subr.bf16.mxu0 %v6554_v16  ;;  %v6606_v16 = vld [vmem:[#allocation6 + $0x348] ss:$16 sps:$4 sm:$0xff]  }
  0xb3   :  { %2361 = vmatpush1.bf16.msra.mxu0 %v6552_v17  ;;  %v6614_v17 = vld [vmem:[#allocation6 + $0x36c] ss:$16 sps:$4 sm:$0xff]  }
  0xb4   :  { %2362 = vmatprep.subr.bf16.mxu0 %v6560_v22  ;;  %v6636_v22 = vld [vmem:[#allocation6 + $0x460] ss:$16 sps:$4 sm:$0xff]  }
  0xb5   :  { %2244 = vmatmul.mubr.bf16.gmra.mrb[28].mxu0 %v7183_v9  ;;  %2863 = vmatmul.mubr.bf16.gmra.mrb[44].mxu1 %v6463_v10  ;;  %v6632_v10 = vld [vmem:[#allocation6 + $0x444] ss:$16 sps:$4 sm:$0xff]  }
  0xb6   :  { %2253 = vmatprep.mubr.bf16.mxu0 %v7185_v12  ;;  %2872 = vmatprep.mubr.bf16.mxu1 %v7994_v1 }
  0xb7   :  { %2363 = vmatpush1.bf16.msra.mxu0 %v6558_v23  ;;  %v6623_v23 = vld [vmem:[#allocation6 + $0x38c] ss:$16 sps:$4 sm:$0xff]  }
  0xb8   :  { %2364 = vmatprep.subr.bf16.mxu0 %v6566_v24  ;;  %v6644_v24 = vld [vmem:[#allocation6 + $0x484] ss:$16 sps:$4 sm:$0xff]  }
  0xbb   :  { %2365 = vmatpush1.bf16.msra.mxu0 %v6564_v26  ;;  %v7266_v26 = vld [vmem:[#allocation3 + $0x78] ss:$28 sps:$4 sm:$0xff]  }
  0xbc   :  { %2527 = vmatprep.subr.bf16.mxu0 %v6620_v31  ;;  %v6621_v31 = vld [vmem:[#allocation6 + $0x388] ss:$16 sps:$4 sm:$0xff]  }
  0xbd   :  { %2254 = vmatmul.mubr.bf16.gmra.mrb[32].mxu0 %v7190_v19  ;;  %2873 = vmatmul.mubr.bf16.gmra.mrb[48].mxu1 %v6473_v20  ;;  %v6630_v20 = vld [vmem:[#allocation6 + $0x440] ss:$16 sps:$4 sm:$0xff]  }
  0xbe   :  { %2263 = vmatprep.mubr.bf16.mxu0 %v7192_v21  ;;  %2882 = vmatprep.mubr.bf16.mxu1 %v7994_v1 }
  0xc5   :  { %2264 = vmatmul.mubr.bf16.gmra.mrb[36].mxu0 %v7197_v27  ;;  %2883 = vmatmul.mubr.bf16.gmra.mrb[52].mxu1 %v6486_v28  ;;  %v7268_v28 = vld [vmem:[#allocation3 + $0xb4] ss:$28 sps:$4 sm:$0xff]  }
  0xc6   :  { %2273 = vmatprep.mubr.bf16.mxu0 %v7199_v30  ;;  %2892 = vmatprep.mubr.bf16.mxu1 %v7994_v1 }
  0xcd   :  { %2274 = vmatmul.mubr.bf16.gmra.mrb[40].mxu0 %v7204_v32  ;;  %2893 = vmatmul.mubr.bf16.gmra.mrb[56].mxu1 %v6499_v33  ;;  %v6635_v33 = vld [vmem:[#allocation6 + $0x3ac] ss:$16 sps:$4 sm:$0xff]  }
  0xce   :  { %2283 = vmatprep.mubr.bf16.mxu0 %v7206_v34  ;;  %2902 = vmatprep.mubr.bf16.mxu1 %v7994_v1 }
  0xd5   :  { %2284 = vmatmul.mubr.bf16.gmra.mrb[44].mxu0 %v7211_v36  ;;  %2903 = vmatmul.mubr.bf16.gmra.mrb[60].mxu1 %v6512_v37  ;;  %v6642_v37 = vld [vmem:[#allocation6 + $0x480] ss:$16 sps:$4 sm:$0xff]  }
  0xd6   :  { %2293 = vmatprep.mubr.bf16.mxu0 %v7213_v38  ;;  %2945 = vmatprep.mubr.bf16.mxu1 %v7128_v50  ;;  %v7228_v50 = vld [vmem:[#allocation3 + $0x314] ss:$28 sps:$4 sm:$0xff]  }
  0xdd   :  { %2294 = vmatmul.mubr.bf16.gmra.mrb[48].mxu0 %v7218_v40  ;;  %2946 = vmatmul.mubr.bf16.vlgmr.msra.gmra.mrb[64].mxu1 %v7134_v7  ;;  %v7234_v7 = vld [vmem:[#allocation3 + $0x310] ss:$28 sps:$4 sm:$0xff]  }
  0xde   :  { %3107 = vmatpush1.bf16.msra.mxu1 %v6525_v41  ;;  %2303 = vmatprep.mubr.bf16.mxu0 %v7220_v42  ;;  %v6648_v41 = vld [vmem:[#allocation6 + $0x4a0] ss:$16 sps:$4 sm:$0xff]  }
  0xdf   :  { %2955 = vmatprep.mubr.bf16.mxu1 %v7136_v11  ;;  %3108 = vmatprep.subr.bf16.mxu1 %v6539_v43  ;;  %v6561_v11 = vld [vmem:[#allocation6 + $0x268] ss:$16 sps:$4 sm:$0xff]   ;;  %v6647_v43 = vld [vmem:[#allocation6 + $0x3cc] ss:$16 sps:$4 sm:$0xff]  }
  0xe2   :  { %3109 = vmatpush1.bf16.msra.mxu1 %v6537_v44  ;;  %v6656_v44 = vld [vmem:[#allocation6 + $0x4c4] ss:$16 sps:$4 sm:$0xff]  }
  0xe3   :  { %3110 = vmatprep.subr.bf16.mxu1 %v6551_v45  ;;  %v7274_v45 = vld [vmem:[#allocation3 + $0xb0] ss:$28 sps:$4 sm:$0xff]  }
  0xe5   :  { %2304 = vmatmul.mubr.bf16.gmra.mrb[52].mxu0 %v7226_v46  ;;  %2956 = vmatmul.mubr.bf16.gmra.mrb[68].mxu1 %v7141_v14  ;;  %v7242_v14 = vld [vmem:[#allocation3 + $0x348] ss:$28 sps:$4 sm:$0xff]  }
  0xe6   :  { %2313 = vmatprep.mubr.bf16.mxu0 %v7228_v50  ;;  %2965 = vmatprep.mubr.bf16.mxu1 %v7143_v18  ;;  %v6576_v18 = vld [vmem:[#allocation6 + $0x2a8] ss:$16 sps:$4 sm:$0xff]  }
  0xe7   :  { %3111 = vmatpush1.bf16.msra.mxu1 %v6549_v47  ;;  %v7276_v47 = vld [vmem:[#allocation3 + $0xec] ss:$28 sps:$4 sm:$0xff]  }
  0xe8   :  { %3112 = vmatprep.subr.bf16.mxu1 %v6563_v49  ;;  %v6645_v49 = vld [vmem:[#allocation6 + $0x3c8] ss:$16 sps:$4 sm:$0xff]  }
  0xeb   :  { %3113 = vmatpush1.bf16.msra.mxu1 %v6561_v11  ;;  %v6654_v11 = vld [vmem:[#allocation6 + $0x4c0] ss:$16 sps:$4 sm:$0xff]  }
  0xec   :  { %3114 = vmatprep.subr.bf16.mxu1 %v6572_v52  ;;  %v6659_v52 = vld [vmem:[#allocation6 + $0x3ec] ss:$16 sps:$4 sm:$0xff]  }
  0xed   :  { %2314 = vmatmul.mubr.bf16.gmra.mrb[56].mxu0 %v7234_v7  ;;  %2966 = vmatmul.mubr.bf16.gmra.mrb[72].mxu1 %v7148_v25  ;;  %v7250_v25 = vld [vmem:[#allocation3 + $0x8] ss:$28 sps:$4 sm:$0xff]  }
  0xee   :  { %2323 = vmatprep.mubr.bf16.mxu0 %v7236_v53  ;;  %2975 = vmatprep.mubr.bf16.mxu1 %v7150_v29  ;;  %v6588_v29 = vld [vmem:[#allocation6 + $0x2e8] ss:$16 sps:$4 sm:$0xff]  }
  0xef   :  { %3115 = vmatpush1.bf16.msra.mxu1 %v6570_v54  ;;  %v6660_v54 = vld [vmem:[#allocation6 + $0x4e0] ss:$16 sps:$4 sm:$0xff]  }
  0xf0   :  { %3116 = vmatprep.subr.bf16.mxu1 %v6578_v55  ;;  %v6668_v55 = vld [vmem:[#allocation6 + $0x504] ss:$16 sps:$4 sm:$0xff]  }
  0xf3   :  { %3117 = vmatpush1.bf16.msra.mxu1 %v6576_v18  ;;  %v6671_v18 = vld [vmem:[#allocation6 + $0x40c] ss:$16 sps:$4 sm:$0xff]  }
  0xf4   :  { %3118 = vmatprep.subr.bf16.mxu1 %v6584_v56  ;;  %v7282_v56 = vld [vmem:[#allocation3 + $0xe8] ss:$28 sps:$4 sm:$0xff]  }
  0xf5   :  { %2324 = vmatmul.mubr.bf16.gmra.mrb[60].mxu0 %v7242_v14  ;;  %2976 = vmatmul.mubr.bf16.gmra.mrb[76].mxu1 %v7155_v35  ;;  %v6600_v35 = vld [vmem:[#allocation6 + $0x328] ss:$16 sps:$4 sm:$0xff]  }
  0xf6   :  { %2366 = vmatprep.mubr.bf16.mxu0 %v7244_v58  ;;  %2985 = vmatprep.mubr.bf16.mxu1 %v7157_v39  ;;  %v6624_v39 = vld [vmem:[#allocation6 + $0x420] ss:$16 sps:$4 sm:$0xff]  }
  0xf7   :  { %3119 = vmatpush1.bf16.msra.mxu1 %v6582_v60  ;;  %v7284_v60 = vld [vmem:[#allocation3 + $0x124] ss:$28 sps:$4 sm:$0xff]  }
  0xf8   :  { %3120 = vmatprep.subr.bf16.mxu1 %v6590_v61  ;;  %v6666_v61 = vld [vmem:[#allocation6 + $0x500] ss:$16 sps:$4 sm:$0xff]  }
  0xfb   :  { %3121 = vmatpush1.bf16.msra.mxu1 %v6588_v29  ;;  %v6680_v29 = vld [vmem:[#allocation6 + $0x544] ss:$16 sps:$4 sm:$0xff]  }
  0xfc   :  { %3122 = vmatprep.subr.bf16.mxu1 %v6596_v63  ;;  %v7290_v63 = vld [vmem:[#allocation3 + $0x120] ss:$28 sps:$4 sm:$0xff]  }
  0xfd   :  { %2367 = vmatmul.mubr.bf16.vlgmr.msra.gmra.mrb[0].mxu0 %v7250_v25  ;;  %2986 = vmatmul.mubr.bf16.gmra.mrb[80].mxu1 %v7162_v48  ;;  %v6638_v48 = vld [vmem:[#allocation6 + $0x464] ss:$16 sps:$4 sm:$0xff]  }
  0xfe   :  { %2376 = vmatprep.mubr.bf16.mxu0 %v7252_v62  ;;  %2995 = vmatprep.mubr.bf16.mxu1 %v7164_v51  ;;  %v6612_v51 = vld [vmem:[#allocation6 + $0x368] ss:$16 sps:$4 sm:$0xff]  }
  0xff   :  { %3123 = vmatpush1.bf16.msra.mxu1 %v6594_v2  ;;  %2528 = vmatpush1.bf16.msra.mxu0 %v6618_v5  ;;  %v7292_v2 = vld [vmem:[#allocation3 + $0x15c] ss:$28 sps:$4 sm:$0xff]   ;;  %v6686_v5 = vld [vmem:[#allocation6 + $0x564] ss:$16 sps:$4 sm:$0xff]  }
 0x100   :  { %3124 = vmatprep.subr.bf16.mxu1 %v6602_v4  ;;  %2529 = vmatprep.subr.bf16.mxu0 %v6626_v6  ;;  %v6678_v4 = vld [vmem:[#allocation6 + $0x540] ss:$16 sps:$4 sm:$0xff]   ;;  %v7298_v6 = vld [vmem:[#allocation3 + $0x158] ss:$28 sps:$4 sm:$0xff]  }
 0x103   :  { %3125 = vmatpush1.bf16.msra.mxu1 %v6600_v35  ;;  %2530 = vmatpush1.bf16.msra.mxu0 %v6624_v39  ;;  %v7300_v35 = vld [vmem:[#allocation3 + $0x194] ss:$28 sps:$4 sm:$0xff]  }
 0x104   :  { %3126 = vmatprep.subr.bf16.mxu1 %v6608_v8  ;;  %2531 = vmatprep.subr.bf16.mxu0 %v6632_v10  ;;  %v6690_v39 = vld [vmem:[#allocation6 + $0x580] ss:$16 sps:$4 sm:$0xff]   ;;  %v6698_v8 = vld [vmem:[#allocation6 + $0x5a4] ss:$16 sps:$4 sm:$0xff]  }
 0x105   :  { %2377 = vmatmul.mubr.bf16.gmra.mrb[4].mxu0 %v7258_v13  ;;  %2996 = vmatmul.mubr.bf16.gmra.mrb[84].mxu1 %v7169_v57  ;;  %v6650_v57 = vld [vmem:[#allocation6 + $0x4a4] ss:$16 sps:$4 sm:$0xff]  }
 0x106   :  { %2386 = vmatprep.mubr.bf16.mxu0 %v7260_v15  ;;  %3005 = vmatprep.mubr.bf16.mxu1 %v7171_v59  ;;  %v6633_v59 = vld [vmem:[#allocation6 + $0x3a8] ss:$16 sps:$4 sm:$0xff]   ;;  %v6704_v10 = vld [vmem:[#allocation6 + $0x5c4] ss:$16 sps:$4 sm:$0xff]  }
 0x107   :  { %3127 = vmatpush1.bf16.msra.mxu1 %v6606_v16  ;;  %2532 = vmatpush1.bf16.msra.mxu0 %v6630_v20 }
 0x108   :  { %3128 = vmatprep.subr.bf16.mxu1 %v6614_v17  ;;  %2533 = vmatprep.subr.bf16.mxu0 %v6638_v48  ;;  %v7310_v17 = vld [vmem:[#allocation3 + $0x190] ss:$28 sps:$4 sm:$0xff]  }
 0x109   :  { %v7314_v48 = vld [vmem:[#allocation3 + $0x1cc] ss:$28 sps:$4 sm:$0xff]  }
 0x10b   :  { %3129 = vmatpush1.bf16.msra.mxu1 %v6612_v51  ;;  %2534 = vmatpush1.bf16.msra.mxu0 %v6636_v22  ;;  %v6708_v22 = vld [vmem:[#allocation6 + $0x5e0] ss:$16 sps:$4 sm:$0xff]  }
 0x10c   :  { %3130 = vmatprep.subr.bf16.mxu1 %v6623_v23  ;;  %2535 = vmatprep.subr.bf16.mxu0 %v6644_v24 }
 0x10d   :  { %2387 = vmatmul.mubr.bf16.gmra.mrb[8].mxu0 %v7266_v26  ;;  %3006 = vmatmul.mubr.bf16.gmra.mrb[88].mxu1 %v7176_v0  ;;  %v6662_v0 = vld [vmem:[#allocation6 + $0x4e4] ss:$16 sps:$4 sm:$0xff]  }
 0x10e   :  { %2396 = vmatprep.mubr.bf16.mxu0 %v7268_v28  ;;  %3015 = vmatprep.mubr.bf16.mxu1 %v7178_v3  ;;  %v6657_v3 = vld [vmem:[#allocation6 + $0x3e8] ss:$16 sps:$4 sm:$0xff]  }
 0x10f   :  { %3131 = vmatpush1.bf16.msra.mxu1 %v6621_v31  ;;  %2536 = vmatpush1.bf16.msra.mxu0 %v6642_v37  ;;  %v7326_v31 = vld [vmem:[#allocation3 + $0x1c8] ss:$28 sps:$4 sm:$0xff]  }
 0x110   :  { %3132 = vmatprep.subr.bf16.mxu1 %v6635_v33  ;;  %2537 = vmatprep.subr.bf16.mxu0 %v6650_v57  ;;  %v7330_v37 = vld [vmem:[#allocation3 + $0x204] ss:$28 sps:$4 sm:$0xff]  }
 0x113   :  { %3133 = vmatpush1.bf16.msra.mxu1 %v6633_v59  ;;  %2538 = vmatpush1.bf16.msra.mxu0 %v6648_v41  ;;  %v7342_v59 = vld [vmem:[#allocation3 + $0x200] ss:$28 sps:$4 sm:$0xff]  }
 0x114   :  { %3134 = vmatprep.subr.bf16.mxu1 %v6647_v43  ;;  %2539 = vmatprep.subr.bf16.mxu0 %v6656_v44  ;;  %v7346_v43 = vld [vmem:[#allocation3 + $0x23c] ss:$28 sps:$4 sm:$0xff]  }
 0x115   :  { %2397 = vmatmul.mubr.bf16.gmra.mrb[12].mxu0 %v7274_v45  ;;  %3016 = vmatmul.mubr.bf16.gmra.mrb[92].mxu1 %v7183_v9  ;;  %v6674_v9 = vld [vmem:[#allocation6 + $0x524] ss:$16 sps:$4 sm:$0xff]  }
 0x116   :  { %2406 = vmatprep.mubr.bf16.mxu0 %v7276_v47  ;;  %3025 = vmatprep.mubr.bf16.mxu1 %v7185_v12  ;;  %v6672_v12 = vld [vmem:[#allocation6 + $0x520] ss:$16 sps:$4 sm:$0xff]  }
 0x117   :  { %3135 = vmatpush1.bf16.msra.mxu1 %v6645_v49  ;;  %2540 = vmatpush1.bf16.msra.mxu0 %v6654_v11  ;;  %v7358_v49 = vld [vmem:[#allocation3 + $0x238] ss:$28 sps:$4 sm:$0xff]  }
 0x118   :  { %3136 = vmatprep.subr.bf16.mxu1 %v6659_v52  ;;  %2541 = vmatprep.subr.bf16.mxu0 %v6662_v0  ;;  %v7362_v52 = vld [vmem:[#allocation3 + $0x274] ss:$28 sps:$4 sm:$0xff]  }
 0x11b   :  { %3137 = vmatpush1.bf16.msra.mxu1 %v6657_v3  ;;  %2542 = vmatpush1.bf16.msra.mxu0 %v6660_v54  ;;  %v7374_v3 = vld [vmem:[#allocation3 + $0x270] ss:$28 sps:$4 sm:$0xff]  }
 0x11c   :  { %2543 = vmatprep.subr.bf16.mxu0 %v6668_v55  ;;  %3299 = vmatprep.subr.bf16.mxu1 %v6671_v18  ;;  %v7378_v55 = vld [vmem:[#allocation3 + $0x2ac] ss:$28 sps:$4 sm:$0xff]  }
 0x11d   :  { %2407 = vmatmul.mubr.bf16.gmra.mrb[16].mxu0 %v7282_v56  ;;  %3026 = vmatmul.mubr.bf16.gmra.mrb[96].mxu1 %v7190_v19  ;;  %v6684_v19 = vld [vmem:[#allocation6 + $0x560] ss:$16 sps:$4 sm:$0xff]  }
 0x11e   :  { %2416 = vmatprep.mubr.bf16.mxu0 %v7284_v60  ;;  %3035 = vmatprep.mubr.bf16.mxu1 %v7192_v21  ;;  %v6692_v21 = vld [vmem:[#allocation6 + $0x584] ss:$16 sps:$4 sm:$0xff]  }
 0x11f   :  { %2544 = vmatpush1.bf16.msra.mxu0 %v6666_v61  ;;  %v7390_v61 = vld [vmem:[#allocation3 + $0x2a8] ss:$28 sps:$4 sm:$0xff]  }
 0x120   :  { %2545 = vmatprep.subr.bf16.mxu0 %v6674_v9 }
 0x123   :  { %2546 = vmatpush1.bf16.msra.mxu0 %v6672_v12  ;;  %v6669_v12 = vld [vmem:[#allocation6 + $0x408] ss:$16 sps:$4 sm:$0xff]  }
 0x124   :  { %2547 = vmatprep.subr.bf16.mxu0 %v6680_v29  ;;  %v7394_v29 = vld [vmem:[#allocation3 + $0x2e4] ss:$28 sps:$4 sm:$0xff]  }
 0x125   :  { %2417 = vmatmul.mubr.bf16.gmra.mrb[20].mxu0 %v7290_v63  ;;  %3036 = vmatmul.mubr.bf16.gmra.mrb[100].mxu1 %v7197_v27  ;;  %v6696_v27 = vld [vmem:[#allocation6 + $0x5a0] ss:$16 sps:$4 sm:$0xff]  }
 0x126   :  { %2426 = vmatprep.mubr.bf16.mxu0 %v7292_v2  ;;  %3045 = vmatprep.mubr.bf16.mxu1 %v7199_v30 }
 0x127   :  { %2548 = vmatpush1.bf16.msra.mxu0 %v6678_v4 }
 0x128   :  { %2549 = vmatprep.subr.bf16.mxu0 %v6686_v5  ;;  %v6683_v5 = vld [vmem:[#allocation6 + $0x42c] ss:$16 sps:$4 sm:$0xff]  }
 0x12b   :  { %2550 = vmatpush1.bf16.msra.mxu0 %v6684_v19 }
 0x12c   :  { %2551 = vmatprep.subr.bf16.mxu0 %v6692_v21 }
 0x12d   :  { %2427 = vmatmul.mubr.bf16.gmra.mrb[24].mxu0 %v7298_v6  ;;  %3046 = vmatmul.mubr.bf16.gmra.mrb[104].mxu1 %v7204_v32  ;;  %v6702_v32 = vld [vmem:[#allocation6 + $0x5c0] ss:$16 sps:$4 sm:$0xff]  }
 0x12e   :  { %2436 = vmatprep.mubr.bf16.mxu0 %v7300_v35  ;;  %3055 = vmatprep.mubr.bf16.mxu1 %v7206_v34  ;;  %v6710_v34 = vld [vmem:[#allocation6 + $0x5e4] ss:$16 sps:$4 sm:$0xff]  }
 0x12f   :  { %2552 = vmatpush1.bf16.msra.mxu0 %v6690_v39  ;;  %v7406_v39 = vld [vmem:[#allocation3 + $0x2e0] ss:$28 sps:$4 sm:$0xff]  }
 0x130   :  { %v7306_v30 = vpop.f32.mrb[0].mxu1  ;;  %2553 = vmatprep.subr.bf16.mxu0 %v6698_v8 }
 0x131   :  { %v7308_v16 = vpop.f32.mrb[1].mxu1 }
 0x132   :  { %v7312_v20 = vpop.f32.mrb[2].mxu1 }
 0x133   :  { %v7316_v51 = vpop.f32.mrb[3].mxu1  ;;  %2554 = vmatpush1.bf16.msra.mxu0 %v6696_v27  ;;  %v7410_v27 = vld [vmem:[#allocation3 + $0x31c] ss:$28 sps:$4 sm:$0xff]  }
 0x134   :  { %2555 = vmatprep.subr.bf16.mxu0 %v6704_v10  ;;  %v6693_v10 = vld [vmem:[#allocation6 + $0x448] ss:$16 sps:$4 sm:$0xff]  }
 0x135   :  { %2437 = vmatmul.mubr.bf16.gmra.mrb[28].mxu0 %v7310_v17  ;;  %3056 = vmatmul.mubr.bf16.gmra.mrb[108].mxu1 %v7211_v36 }
 0x136   :  { %2446 = vmatprep.mubr.bf16.mxu0 %v7314_v48  ;;  %3065 = vmatprep.mubr.bf16.mxu1 %v7213_v38 }
 0x137   :  { %2556 = vmatpush1.bf16.msra.mxu0 %v6702_v32  ;;  %v6707_v32 = vld [vmem:[#allocation6 + $0x46c] ss:$16 sps:$4 sm:$0xff]  }
 0x138   :  { %v7322_v23 = vpop.f32.mrb[4].mxu1  ;;  %2557 = vmatprep.subr.bf16.mxu0 %v6710_v34 }
 0x139   :  { %v7324_v24 = vpop.f32.mrb[5].mxu1 }
 0x13a   :  { %v7328_v33 = vpop.f32.mrb[6].mxu1 }
 0x13b   :  { %v7332_v57 = vpop.f32.mrb[7].mxu1  ;;  %2558 = vmatpush1.bf16.msra.mxu0 %v6708_v22  ;;  %v6716_v22 = vld [vmem:[#allocation6 + $0x48c] ss:$16 sps:$4 sm:$0xff]  }
 0x13d   :  { %2447 = vmatmul.mubr.bf16.gmra.mrb[32].mxu0 %v7326_v31  ;;  %3066 = vmatmul.mubr.bf16.gmra.mrb[112].mxu1 %v7218_v40 }
 0x13e   :  { %2456 = vmatprep.mubr.bf16.mxu0 %v7330_v37  ;;  %3075 = vmatprep.mubr.bf16.mxu1 %v7220_v42 }
 0x140   :  { %v7338_v36 = vpop.f32.mrb[8].mxu1 }
 0x141   :  { %v7340_v38 = vpop.f32.mrb[9].mxu1 }
 0x142   :  { %v7344_v41 = vpop.f32.mrb[10].mxu1 }
 0x143   :  { %v7348_v44 = vpop.f32.mrb[11].mxu1 }
 0x145   :  { %2457 = vmatmul.mubr.bf16.gmra.mrb[36].mxu0 %v7342_v59  ;;  %3076 = vmatmul.mubr.bf16.gmra.mrb[116].mxu1 %v7226_v46 }
 0x146   :  { %2466 = vmatprep.mubr.bf16.mxu0 %v7346_v43  ;;  %3085 = vmatprep.mubr.bf16.mxu1 %v7228_v50 }
 0x148   :  { %v7354_v40 = vpop.f32.mrb[12].mxu1 }
 0x149   :  { %v7356_v42 = vpop.f32.mrb[13].mxu1 }
 0x14a   :  { %v7360_v11 = vpop.f32.mrb[14].mxu1 }
 0x14b   :  { %v7364_v0 = vpop.f32.mrb[15].mxu1 }
 0x14d   :  { %2467 = vmatmul.mubr.bf16.gmra.mrb[40].mxu0 %v7358_v49  ;;  %3086 = vmatmul.mubr.bf16.gmra.mrb[120].mxu1 %v7234_v7 }
 0x14e   :  { %2476 = vmatprep.mubr.bf16.mxu0 %v7362_v52  ;;  %3095 = vmatprep.mubr.bf16.mxu1 %v7236_v53 }
 0x150   :  { %v7370_v46 = vpop.f32.mrb[16].mxu1 }
 0x151   :  { %v7372_v50 = vpop.f32.mrb[17].mxu1 }
 0x152   :  { %v7376_v54 = vpop.f32.mrb[18].mxu1 }
 0x153   :  { %v7380_v18 = vpop.f32.mrb[19].mxu1 }
 0x155   :  { %2477 = vmatmul.mubr.bf16.gmra.mrb[44].mxu0 %v7374_v3  ;;  %3096 = vmatmul.mubr.bf16.gmra.mrb[124].mxu1 %v7242_v14  ;;  %v6681_v14 = vld [vmem:[#allocation6 + $0x428] ss:$16 sps:$4 sm:$0xff]  }
 0x156   :  { %2486 = vmatprep.mubr.bf16.mxu0 %v7378_v55  ;;  %3138 = vmatprep.mubr.bf16.mxu1 %v7244_v58  ;;  %v6695_v58 = vld [vmem:[#allocation6 + $0x44c] ss:$16 sps:$4 sm:$0xff]  }
 0x158   :  { %v7386_v7 = vpop.f32.mrb[20].mxu1 }
 0x159   :  { %v7388_v53 = vpop.f32.mrb[21].mxu1 }
 0x15a   :  { %v7392_v9 = vpop.f32.mrb[22].mxu1 }
 0x15b   :  { %v7396_v4 = vpop.f32.mrb[23].mxu1 }
 0x15d   :  { %2487 = vmatmul.mubr.bf16.gmra.mrb[48].mxu0 %v7390_v61  ;;  %3139 = vmatmul.mubr.bf16.vlgmr.msra.gmra.mrb[64].mxu1 %v7250_v25 }
 0x15e   :  { %3300 = vmatpush1.bf16.msra.mxu1 %v6669_v12  ;;  %2496 = vmatprep.mubr.bf16.mxu0 %v7394_v29 }
 0x15f   :  { %3148 = vmatprep.mubr.bf16.mxu1 %v7252_v62  ;;  %3301 = vmatprep.subr.bf16.mxu1 %v6683_v5  ;;  %v6705_v62 = vld [vmem:[#allocation6 + $0x468] ss:$16 sps:$4 sm:$0xff]  }
 0x160   :  { %v7402_v19 = vpop.f32.mrb[24].mxu1  ;;  %v7422_v5 = vld [vmem:[#allocation3 + $0x318] ss:$28 sps:$4 sm:$0xff]  }
 0x161   :  { %v7404_v21 = vpop.f32.mrb[25].mxu1 }
 0x162   :  { %v7408_v8 = vpop.f32.mrb[26].mxu1  ;;  %3302 = vmatpush1.bf16.msra.mxu1 %v6681_v14 }
 0x163   :  { %v7412_v25 = vpop.f32.mrb[27].mxu1  ;;  %3303 = vmatprep.subr.bf16.mxu1 %v6695_v58  ;;  %v7426_v58 = vld [vmem:[#allocation3 + $0x354] ss:$28 sps:$4 sm:$0xff]  }
 0x165   :  { %2497 = vmatmul.mubr.bf16.gmra.mrb[52].mxu0 %v7406_v39  ;;  %3149 = vmatmul.mubr.bf16.gmra.mrb[68].mxu1 %v7258_v13  ;;  %v6714_v13 = vld [vmem:[#allocation6 + $0x488] ss:$16 sps:$4 sm:$0xff]  }
 0x166   :  { %2506 = vmatprep.mubr.bf16.mxu0 %v7410_v27  ;;  %3158 = vmatprep.mubr.bf16.mxu1 %v7260_v15  ;;  %v6722_v15 = vld [vmem:[#allocation6 + $0x4ac] ss:$16 sps:$4 sm:$0xff]  }
 0x167   :  { %3304 = vmatpush1.bf16.msra.mxu1 %v6693_v10  ;;  %v6720_v10 = vld [vmem:[#allocation6 + $0x4a8] ss:$16 sps:$4 sm:$0xff]  }
 0x168   :  { %v7418_v34 = vpop.f32.mrb[28].mxu1  ;;  %3305 = vmatprep.subr.bf16.mxu1 %v6707_v32 }
 0x169   :  { %7996 = vst [vmem:[#allocation13_spill] sm:$0xff] %v7418_v34  ;;  %v7420_v12 = vpop.f32.mrb[29].mxu1 }
 0x16a   :  { %7997 = vst [vmem:[#allocation14_spill] sm:$0xff] %v7420_v12  ;;  %v7424_v14 = vpop.f32.mrb[30].mxu1 }
 0x16b   :  { %7998 = vst [vmem:[#allocation15_spill] sm:$0xff] %v7424_v14  ;;  %v7428_v1 = vpop.f32.mrb[31].mxu1  ;;  %3306 = vmatpush1.bf16.msra.mxu1 %v6705_v62  ;;  %v6728_v14 = vld [vmem:[#allocation6 + $0x4cc] ss:$16 sps:$4 sm:$0xff]  }
 0x16c   :  { %7999 = vst [vmem:[#allocation16_spill] sm:$0xff] %v7428_v1  ;;  %3307 = vmatprep.subr.bf16.mxu1 %v6716_v22  ;;  %v7438_v62 = vld [vmem:[#allocation3 + $0x350] ss:$28 sps:$4 sm:$0xff]  }
 0x16d   :  { %2507 = vmatmul.mubr.bf16.gmra.mrb[56].mxu0 %v7422_v5  ;;  %3159 = vmatmul.mubr.bf16.gmra.mrb[72].mxu1 %v7266_v26  ;;  %v7442_v1 = vld [vmem:[#allocation3 + $0x14] ss:$28 sps:$4 sm:$0xff]   ;;  %v6726_v26 = vld [vmem:[#allocation6 + $0x4c8] ss:$16 sps:$4 sm:$0xff]  }
 0x16e   :  { %2516 = vmatprep.mubr.bf16.mxu0 %v7426_v58  ;;  %3168 = vmatprep.mubr.bf16.mxu1 %v7268_v28  ;;  %v6734_v28 = vld [vmem:[#allocation6 + $0x4ec] ss:$16 sps:$4 sm:$0xff]  }
 0x16f   :  { %3308 = vmatpush1.bf16.msra.mxu1 %v6714_v13  ;;  %v6732_v13 = vld [vmem:[#allocation6 + $0x4e8] ss:$16 sps:$4 sm:$0xff]  }
 0x170   :  { %v7434_v32 = vpop.f32.mrb[32].mxu1  ;;  %3309 = vmatprep.subr.bf16.mxu1 %v6722_v15 }
 0x171   :  { %8000 = vst [vmem:[#allocation17_spill] sm:$0xff] %v7434_v32  ;;  %v7436_v12 = vpop.f32.mrb[33].mxu1 }
 0x172   :  { %8001 = vst [vmem:[#allocation18_spill] sm:$0xff] %v7436_v12  ;;  %v7440_v22 = vpop.f32.mrb[34].mxu1 }
 0x173   :  { %8002 = vst [vmem:[#allocation19_spill] sm:$0xff] %v7440_v22  ;;  %v7444_v34 = vpop.f32.mrb[35].mxu1  ;;  %3310 = vmatpush1.bf16.msra.mxu1 %v6720_v10  ;;  %v6740_v22 = vld [vmem:[#allocation6 + $0x50c] ss:$16 sps:$4 sm:$0xff]  }
 0x174   :  { %8003 = vst [vmem:[#allocation20_spill] sm:$0xff] %v7444_v34  ;;  %3311 = vmatprep.subr.bf16.mxu1 %v6728_v14  ;;  %v7454_v10 = vld [vmem:[#allocation3 + $0x10] ss:$28 sps:$4 sm:$0xff]  }
 0x175   :  { %2517 = vmatmul.mubr.bf16.gmra.mrb[60].mxu0 %v7438_v62  ;;  %3169 = vmatmul.mubr.bf16.gmra.mrb[76].mxu1 %v7274_v45  ;;  %v7458_v34 = vld [vmem:[#allocation3 + $0x4c] ss:$28 sps:$4 sm:$0xff]  }
 0x176   :  { %2559 = vmatprep.mubr.bf16.mxu0 %v7442_v1  ;;  %3178 = vmatprep.mubr.bf16.mxu1 %v7276_v47  ;;  %v6738_v45 = vld [vmem:[#allocation6 + $0x508] ss:$16 sps:$4 sm:$0xff]   ;;  %v6746_v47 = vld [vmem:[#allocation6 + $0x52c] ss:$16 sps:$4 sm:$0xff]  }
 0x177   :  { %3312 = vmatpush1.bf16.msra.mxu1 %v6726_v26  ;;  %v6744_v26 = vld [vmem:[#allocation6 + $0x528] ss:$16 sps:$4 sm:$0xff]  }
 0x178   :  { %v7450_v15 = vpop.f32.mrb[36].mxu1  ;;  %3313 = vmatprep.subr.bf16.mxu1 %v6734_v28 }
 0x179   :  { %8004 = vst [vmem:[#allocation21_spill] sm:$0xff] %v7450_v15  ;;  %v7452_v12 = vpop.f32.mrb[37].mxu1 }
 0x17a   :  { %8005 = vst [vmem:[#allocation22_spill] sm:$0xff] %v7452_v12  ;;  %v7456_v14 = vpop.f32.mrb[38].mxu1 }
 0x17b   :  { %8006 = vst [vmem:[#allocation23_spill] sm:$0xff] %v7456_v14  ;;  %v7460_v32 = vpop.f32.mrb[39].mxu1  ;;  %3314 = vmatpush1.bf16.msra.mxu1 %v6732_v13  ;;  %v6752_v14 = vld [vmem:[#allocation6 + $0x54c] ss:$16 sps:$4 sm:$0xff]   ;;  %v7470_v13 = vld [vmem:[#allocation3 + $0x48] ss:$28 sps:$4 sm:$0xff]  }
 0x17c   :  { %8007 = vst [vmem:[#allocation24_spill] sm:$0xff] %v7460_v32  ;;  %3315 = vmatprep.subr.bf16.mxu1 %v6740_v22  ;;  %v7474_v32 = vld [vmem:[#allocation3 + $0x84] ss:$28 sps:$4 sm:$0xff]  }
 0x17d   :  { %2560 = vmatmul.mubr.bf16.vlgmr.msra.gmra.mrb[0].mxu0 %v7454_v10  ;;  %3179 = vmatmul.mubr.bf16.gmra.mrb[80].mxu1 %v7282_v56  ;;  %v6750_v56 = vld [vmem:[#allocation6 + $0x548] ss:$16 sps:$4 sm:$0xff]  }
 0x17e   :  { %2569 = vmatprep.mubr.bf16.mxu0 %v7458_v34  ;;  %3188 = vmatprep.mubr.bf16.mxu1 %v7284_v60  ;;  %v6758_v60 = vld [vmem:[#allocation6 + $0x56c] ss:$16 sps:$4 sm:$0xff]  }
 0x17f   :  { %3316 = vmatpush1.bf16.msra.mxu1 %v6738_v45  ;;  %v6756_v45 = vld [vmem:[#allocation6 + $0x568] ss:$16 sps:$4 sm:$0xff]  }
 0x180   :  { %v7466_v28 = vpop.f32.mrb[40].mxu1  ;;  %3317 = vmatprep.subr.bf16.mxu1 %v6746_v47 }
 0x181   :  { %8008 = vst [vmem:[#allocation25_spill] sm:$0xff] %v7466_v28  ;;  %v7468_v12 = vpop.f32.mrb[41].mxu1 }
 0x182   :  { %8009 = vst [vmem:[#allocation26_spill] sm:$0xff] %v7468_v12  ;;  %v7472_v22 = vpop.f32.mrb[42].mxu1 }
 0x183   :  { %8010 = vst [vmem:[#allocation27_spill] sm:$0xff] %v7472_v22  ;;  %v7476_v15 = vpop.f32.mrb[43].mxu1  ;;  %3318 = vmatpush1.bf16.msra.mxu1 %v6744_v26  ;;  %v6764_v22 = vld [vmem:[#allocation6 + $0x58c] ss:$16 sps:$4 sm:$0xff]  }
 0x184   :  { %8011 = vst [vmem:[#allocation28_spill] sm:$0xff] %v7476_v15  ;;  %3319 = vmatprep.subr.bf16.mxu1 %v6752_v14  ;;  %v7486_v26 = vld [vmem:[#allocation3 + $0x80] ss:$28 sps:$4 sm:$0xff]  }
 0x185   :  { %2570 = vmatmul.mubr.bf16.gmra.mrb[4].mxu0 %v7470_v13  ;;  %3189 = vmatmul.mubr.bf16.gmra.mrb[84].mxu1 %v7290_v63  ;;  %v7490_v15 = vld [vmem:[#allocation3 + $0xbc] ss:$28 sps:$4 sm:$0xff]  }
 0x186   :  { %2579 = vmatprep.mubr.bf16.mxu0 %v7474_v32  ;;  %3198 = vmatprep.mubr.bf16.mxu1 %v7292_v2  ;;  %v6762_v63 = vld [vmem:[#allocation6 + $0x588] ss:$16 sps:$4 sm:$0xff]   ;;  %v6770_v2 = vld [vmem:[#allocation6 + $0x5ac] ss:$16 sps:$4 sm:$0xff]  }
 0x187   :  { %3320 = vmatpush1.bf16.msra.mxu1 %v6750_v56  ;;  %v6768_v56 = vld [vmem:[#allocation6 + $0x5a8] ss:$16 sps:$4 sm:$0xff]  }
 0x188   :  { %v7482_v47 = vpop.f32.mrb[44].mxu1  ;;  %3321 = vmatprep.subr.bf16.mxu1 %v6758_v60 }
 0x189   :  { %8012 = vst [vmem:[#allocation29_spill] sm:$0xff] %v7482_v47  ;;  %v7484_v12 = vpop.f32.mrb[45].mxu1 }
 0x18a   :  { %8013 = vst [vmem:[#allocation30_spill] sm:$0xff] %v7484_v12  ;;  %v7488_v14 = vpop.f32.mrb[46].mxu1 }
 0x18b   :  { %8014 = vst [vmem:[#allocation31_spill] sm:$0xff] %v7488_v14  ;;  %v7492_v28 = vpop.f32.mrb[47].mxu1  ;;  %3322 = vmatpush1.bf16.msra.mxu1 %v6756_v45  ;;  %v6776_v14 = vld [vmem:[#allocation6 + $0x5cc] ss:$16 sps:$4 sm:$0xff]   ;;  %v7502_v45 = vld [vmem:[#allocation3 + $0xb8] ss:$28 sps:$4 sm:$0xff]  }
 0x18c   :  { %8015 = vst [vmem:[#allocation32_spill] sm:$0xff] %v7492_v28  ;;  %3323 = vmatprep.subr.bf16.mxu1 %v6764_v22  ;;  %v7506_v28 = vld [vmem:[#allocation3 + $0xf4] ss:$28 sps:$4 sm:$0xff]  }
 0x18d   :  { %2580 = vmatmul.mubr.bf16.gmra.mrb[8].mxu0 %v7486_v26  ;;  %3199 = vmatmul.mubr.bf16.gmra.mrb[88].mxu1 %v7298_v6  ;;  %v6774_v6 = vld [vmem:[#allocation6 + $0x5c8] ss:$16 sps:$4 sm:$0xff]  }
 0x18e   :  { %2589 = vmatprep.mubr.bf16.mxu0 %v7490_v15  ;;  %3208 = vmatprep.mubr.bf16.mxu1 %v7300_v35  ;;  %v6782_v35 = vld [vmem:[#allocation6 + $0x5ec] ss:$16 sps:$4 sm:$0xff]  }
 0x18f   :  { %3324 = vmatpush1.bf16.msra.mxu1 %v6762_v63  ;;  %v6780_v63 = vld [vmem:[#allocation6 + $0x5e8] ss:$16 sps:$4 sm:$0xff]  }
 0x190   :  { %v7498_v60 = vpop.f32.mrb[48].mxu1  ;;  %3325 = vmatprep.subr.bf16.mxu1 %v6770_v2 }
 0x191   :  { %8016 = vst [vmem:[#allocation33_spill] sm:$0xff] %v7498_v60  ;;  %v7500_v12 = vpop.f32.mrb[49].mxu1 }
 0x192   :  { %8017 = vst [vmem:[#allocation34_spill] sm:$0xff] %v7500_v12  ;;  %v7504_v22 = vpop.f32.mrb[50].mxu1 }
 0x193   :  { %8018 = vst [vmem:[#allocation35_spill] sm:$0xff] %v7504_v22  ;;  %v7508_v47 = vpop.f32.mrb[51].mxu1  ;;  %3326 = vmatpush1.bf16.msra.mxu1 %v6768_v56  ;;  %v6788_v22 = vld [vmem:[#allocation6 + $0x60c] ss:$16 sps:$4 sm:$0xff]  }
 0x194   :  { %8019 = vst [vmem:[#allocation36_spill] sm:$0xff] %v7508_v47  ;;  %3327 = vmatprep.subr.bf16.mxu1 %v6776_v14  ;;  %v7518_v56 = vld [vmem:[#allocation3 + $0xf0] ss:$28 sps:$4 sm:$0xff]  }
 0x195   :  { %2590 = vmatmul.mubr.bf16.gmra.mrb[12].mxu0 %v7502_v45  ;;  %3209 = vmatmul.mubr.bf16.gmra.mrb[92].mxu1 %v7310_v17  ;;  %v7522_v47 = vld [vmem:[#allocation3 + $0x12c] ss:$28 sps:$4 sm:$0xff]  }
 0x196   :  { %2599 = vmatprep.mubr.bf16.mxu0 %v7506_v28  ;;  %3218 = vmatprep.mubr.bf16.mxu1 %v7314_v48  ;;  %v6812_v17 = vld [vmem:[#allocation8 + $0x4] ss:$8 sps:$4 sm:$0xff]   ;;  %v6810_v48 = vld [vmem:[#allocation8] ss:$8 sps:$4 sm:$0xff]  }
 0x197   :  { %3328 = vmatpush1.bf16.msra.mxu1 %v6774_v6  ;;  %v6815_v6 = vld [vmem:[#allocation8 + $0x14] ss:$8 sps:$4 sm:$0xff]   ;;  %4529 = vmatprep.subr.bf16.mxu0 %v6812_v17 }
 0x198   :  { %v7514_v2 = vpop.f32.mrb[52].mxu1  ;;  %3329 = vmatprep.subr.bf16.mxu1 %v6782_v35  ;;  %4530 = vmatpush1.bf16.msra.mxu0 %v6810_v48  ;;  %v6821_v17 = vld [vmem:[#allocation8 + $0x34] ss:$8 sps:$4 sm:$0xff]  }
 0x199   :  { %8020 = vst [vmem:[#allocation37_spill] sm:$0xff] %v7514_v2  ;;  %v7516_v12 = vpop.f32.mrb[53].mxu1  ;;  %4531 = vmatprep.subr.bf16.mxu0 %v6815_v6  ;;  %v6818_v2 = vld [vmem:[#allocation8 + $0x24] ss:$8 sps:$4 sm:$0xff]   ;;  %v6819_v6 = vld [vmem:[#allocation8 + $0x30] ss:$8 sps:$4 sm:$0xff]  }
 0x19a   :  { %8021 = vst [vmem:[#allocation38_spill] sm:$0xff] %v7516_v12  ;;  %v7520_v14 = vpop.f32.mrb[54].mxu1 }
 0x19b   :  { %8022 = vst [vmem:[#allocation39_spill] sm:$0xff] %v7520_v14  ;;  %v7524_v60 = vpop.f32.mrb[55].mxu1  ;;  %3330 = vmatpush1.bf16.msra.mxu1 %v6780_v63  ;;  %v6813_v14 = vld [vmem:[#allocation8 + $0x10] ss:$8 sps:$4 sm:$0xff]   ;;  %v7534_v63 = vld [vmem:[#allocation3 + $0x128] ss:$28 sps:$4 sm:$0xff]  }
 0x19c   :  { %8023 = vst [vmem:[#allocation40_spill] sm:$0xff] %v7524_v60  ;;  %3492 = vmatprep.subr.bf16.mxu1 %v6788_v22  ;;  %v7538_v60 = vld [vmem:[#allocation3 + $0x164] ss:$28 sps:$4 sm:$0xff]   ;;  %4532 = vmatpush1.bf16.msra.mxu0 %v6813_v14 }
 0x19d   :  { %2600 = vmatmul.mubr.bf16.gmra.mrb[16].mxu0 %v7518_v56  ;;  %3219 = vmatmul.mubr.bf16.gmra.mrb[96].mxu1 %v7326_v31 }
 0x19e   :  { %2609 = vmatprep.mubr.bf16.mxu0 %v7522_v47  ;;  %3228 = vmatprep.mubr.bf16.mxu1 %v7330_v37  ;;  %v6816_v37 = vld [vmem:[#allocation8 + $0x20] ss:$8 sps:$4 sm:$0xff]  }
 0x19f   :  { %4533 = vmatprep.subr.bf16.mxu0 %v6818_v2  ;;  %v6830_v2 = vld [vmem:[#allocation8 + $0x54] ss:$8 sps:$4 sm:$0xff]  }
 0x1a0   :  { %v7530_v35 = vpop.f32.mrb[56].mxu1  ;;  %4534 = vmatpush1.bf16.msra.mxu0 %v6816_v37  ;;  %v6828_v37 = vld [vmem:[#allocation8 + $0x50] ss:$8 sps:$4 sm:$0xff]  }
 0x1a1   :  { %8024 = vst [vmem:[#allocation41_spill] sm:$0xff] %v7530_v35  ;;  %v7532_v12 = vpop.f32.mrb[57].mxu1  ;;  %4535 = vmatprep.subr.bf16.mxu0 %v6821_v17  ;;  %v6827_v35 = vld [vmem:[#allocation8 + $0x44] ss:$8 sps:$4 sm:$0xff]   ;;  %v7562_v17 = vld [vmem:[#allocation3 + $0x198] ss:$28 sps:$4 sm:$0xff]  }
 0x1a2   :  { %8025 = vst [vmem:[#allocation42_spill] sm:$0xff] %v7532_v12  ;;  %v7536_v22 = vpop.f32.mrb[58].mxu1  ;;  %v7554_v12 = vld [vmem:[#allocation3 + $0x19c] ss:$28 sps:$4 sm:$0xff]  }
 0x1a3   :  { %8026 = vst [vmem:[#allocation43_spill] sm:$0xff] %v7536_v22  ;;  %v7540_v31 = vpop.f32.mrb[59].mxu1 }
 0x1a4   :  { %8027 = vst [vmem:[#allocation44_spill] sm:$0xff] %v7540_v31  ;;  %v7550_v31 = vld [vmem:[#allocation3 + $0x160] ss:$28 sps:$4 sm:$0xff]   ;;  %4536 = vmatpush1.bf16.msra.mxu0 %v6819_v6  ;;  %v6833_v6 = vld [vmem:[#allocation8 + $0x64] ss:$8 sps:$4 sm:$0xff]  }
 0x1a5   :  { %2610 = vmatmul.mubr.bf16.gmra.mrb[20].mxu0 %v7534_v63  ;;  %3229 = vmatmul.mubr.bf16.gmra.mrb[100].mxu1 %v7342_v59 }
 0x1a6   :  { %2619 = vmatprep.mubr.bf16.mxu0 %v7538_v60  ;;  %3238 = vmatprep.mubr.bf16.mxu1 %v7346_v43  ;;  %v6825_v43 = vld [vmem:[#allocation8 + $0x40] ss:$8 sps:$4 sm:$0xff]  }
 0x1a7   :  { %4537 = vmatprep.subr.bf16.mxu0 %v6827_v35  ;;  %v7570_v35 = vld [vmem:[#allocation3 + $0x1d0] ss:$28 sps:$4 sm:$0xff]  }
 0x1a8   :  { %v7546_v48 = vpop.f32.mrb[60].mxu1  ;;  %4538 = vmatpush1.bf16.msra.mxu0 %v6825_v43  ;;  %v7572_v43 = vld [vmem:[#allocation3 + $0x20c] ss:$28 sps:$4 sm:$0xff]  }
 0x1a9   :  { %8028 = vst [vmem:[#allocation45_spill] sm:$0xff] %v7546_v48  ;;  %v7548_v22 = vpop.f32.mrb[61].mxu1  ;;  %4539 = vmatprep.subr.bf16.mxu0 %v6830_v2  ;;  %v6842_v2 = vld [vmem:[#allocation8 + $0x84] ss:$8 sps:$4 sm:$0xff]  }
 0x1aa   :  { %8029 = vst [vmem:[#allocation46_spill] sm:$0xff] %v7548_v22  ;;  %v7552_v14 = vpop.f32.mrb[62].mxu1  ;;  %v7604_v22 = vld [vmem:[#allocation3 + $0x2ec] ss:$28 sps:$4 sm:$0xff]  }
 0x1ab   :  { %8030 = vst [vmem:[#allocation47_spill] sm:$0xff] %v7552_v14  ;;  %v7556_v59 = vpop.f32.mrb[63].mxu1  ;;  %v7564_v14 = vld [vmem:[#allocation3 + $0x1d4] ss:$28 sps:$4 sm:$0xff]   ;;  %v6824_v48 = vld [vmem:[#allocation6 + $0x6ac] ss:$16 sps:$4 sm:$0xff]  }
 0x1ac   :  { %8031 = vst [vmem:[#allocation48_spill] sm:$0xff] %v7556_v59  ;;  %4540 = vmatpush1.bf16.msra.mxu0 %v6828_v37  ;;  %v6836_v59 = vld [vmem:[#allocation8 + $0x74] ss:$8 sps:$4 sm:$0xff]   ;;  %v6843_v37 = vld [vmem:[#allocation8 + $0x90] ss:$8 sps:$4 sm:$0xff]  }
 0x1ad   :  { %2620 = vmatmul.mubr.bf16.gmra.mrb[24].mxu0 %v7550_v31  ;;  %3239 = vmatmul.mubr.bf16.gmra.mrb[104].mxu1 %v7358_v49  ;;  %v6831_v49 = vld [vmem:[#allocation8 + $0x60] ss:$8 sps:$4 sm:$0xff]  }
 0x1ae   :  { %2629 = vmatprep.mubr.bf16.mxu0 %v7554_v12  ;;  %3248 = vmatprep.mubr.bf16.mxu1 %v7362_v52  ;;  %v6834_v52 = vld [vmem:[#allocation8 + $0x70] ss:$8 sps:$4 sm:$0xff]  }
 0x1af   :  { %4541 = vmatprep.subr.bf16.mxu0 %v6833_v6  ;;  %v7578_v6 = vld [vmem:[#allocation3 + $0x208] ss:$28 sps:$4 sm:$0xff]  }
 0x1b0   :  { %4542 = vmatpush1.bf16.msra.mxu0 %v6831_v49  ;;  %v6848_v49 = vld [vmem:[#allocation8 + $0xa4] ss:$8 sps:$4 sm:$0xff]  }
 0x1b1   :  { %4543 = vmatprep.subr.bf16.mxu0 %v6836_v59  ;;  %v7580_v59 = vld [vmem:[#allocation3 + $0x244] ss:$28 sps:$4 sm:$0xff]  }
 0x1b4   :  { %4544 = vmatpush1.bf16.msra.mxu0 %v6834_v52  ;;  %v6851_v52 = vld [vmem:[#allocation8 + $0xb4] ss:$8 sps:$4 sm:$0xff]  }
 0x1b5   :  { %2630 = vmatmul.mubr.bf16.gmra.mrb[28].mxu0 %v7562_v17  ;;  %3249 = vmatmul.mubr.bf16.gmra.mrb[108].mxu1 %v7374_v3  ;;  %v6840_v3 = vld [vmem:[#allocation8 + $0x80] ss:$8 sps:$4 sm:$0xff]  }
 0x1b6   :  { %2639 = vmatprep.mubr.bf16.mxu0 %v7564_v14  ;;  %3258 = vmatprep.mubr.bf16.mxu1 %v7378_v55  ;;  %v6845_v55 = vld [vmem:[#allocation8 + $0x94] ss:$8 sps:$4 sm:$0xff]  }
 0x1b7   :  { %4545 = vmatprep.subr.bf16.mxu0 %v6842_v2  ;;  %v7586_v2 = vld [vmem:[#allocation3 + $0x240] ss:$28 sps:$4 sm:$0xff]  }
 0x1b8   :  { %4546 = vmatpush1.bf16.msra.mxu0 %v6840_v3  ;;  %v7588_v3 = vld [vmem:[#allocation3 + $0x27c] ss:$28 sps:$4 sm:$0xff]  }
 0x1b9   :  { %4547 = vmatprep.subr.bf16.mxu0 %v6845_v55  ;;  %v6857_v55 = vld [vmem:[#allocation8 + $0xc4] ss:$8 sps:$4 sm:$0xff]  }
 0x1bc   :  { %4548 = vmatpush1.bf16.msra.mxu0 %v6843_v37  ;;  %v7594_v37 = vld [vmem:[#allocation3 + $0x278] ss:$28 sps:$4 sm:$0xff]  }
 0x1bd   :  { %2640 = vmatmul.mubr.bf16.gmra.mrb[32].mxu0 %v7570_v35  ;;  %3259 = vmatmul.mubr.bf16.gmra.mrb[112].mxu1 %v7390_v61  ;;  %v6846_v61 = vld [vmem:[#allocation8 + $0xa0] ss:$8 sps:$4 sm:$0xff]  }
 0x1be   :  { %2649 = vmatprep.mubr.bf16.mxu0 %v7572_v43  ;;  %3268 = vmatprep.mubr.bf16.mxu1 %v7394_v29  ;;  %v6849_v29 = vld [vmem:[#allocation8 + $0xb0] ss:$8 sps:$4 sm:$0xff]  }
 0x1bf   :  { %4549 = vmatprep.subr.bf16.mxu0 %v6848_v49  ;;  %v6858_v49 = vld [vmem:[#allocation8 + $0xd0] ss:$8 sps:$4 sm:$0xff]  }
 0x1c0   :  { %4550 = vmatpush1.bf16.msra.mxu0 %v6846_v61  ;;  %v7596_v61 = vld [vmem:[#allocation3 + $0x2b4] ss:$28 sps:$4 sm:$0xff]  }
 0x1c1   :  { %4551 = vmatprep.subr.bf16.mxu0 %v6851_v52  ;;  %v6863_v52 = vld [vmem:[#allocation8 + $0xe4] ss:$8 sps:$4 sm:$0xff]  }
 0x1c4   :  { %4552 = vmatpush1.bf16.msra.mxu0 %v6849_v29  ;;  %v7602_v29 = vld [vmem:[#allocation3 + $0x2b0] ss:$28 sps:$4 sm:$0xff]  }
 0x1c5   :  { %2650 = vmatmul.mubr.bf16.gmra.mrb[36].mxu0 %v7578_v6  ;;  %3269 = vmatmul.mubr.bf16.gmra.mrb[116].mxu1 %v7406_v39  ;;  %v6855_v39 = vld [vmem:[#allocation8 + $0xc0] ss:$8 sps:$4 sm:$0xff]  }
 0x1c6   :  { %2659 = vmatprep.mubr.bf16.mxu0 %v7580_v59  ;;  %3278 = vmatprep.mubr.bf16.mxu1 %v7410_v27  ;;  %v6860_v27 = vld [vmem:[#allocation8 + $0xd4] ss:$8 sps:$4 sm:$0xff]  }
 0x1c7   :  { %4553 = vmatprep.subr.bf16.mxu0 %v6857_v55  ;;  %v6864_v55 = vld [vmem:[#allocation8 + $0xf0] ss:$8 sps:$4 sm:$0xff]  }
 0x1c8   :  { %4554 = vmatpush1.bf16.msra.mxu0 %v6855_v39  ;;  %v6786_v39 = vld [vmem:[#allocation6 + $0x608] ss:$16 sps:$4 sm:$0xff]  }
 0x1c9   :  { %4555 = vmatprep.subr.bf16.mxu0 %v6860_v27  ;;  %v6797_v27 = vld [vmem:[#allocation6 + $0x62c] ss:$16 sps:$4 sm:$0xff]  }
 0x1cc   :  { %4556 = vmatpush1.bf16.msra.mxu0 %v6858_v49  ;;  %v6791_v49 = vld [vmem:[#allocation3 + $0x2e8] ss:$28 sps:$4 sm:$0xff]  }
 0x1cd   :  { %2660 = vmatmul.mubr.bf16.gmra.mrb[40].mxu0 %v7586_v2  ;;  %3279 = vmatmul.mubr.bf16.gmra.mrb[120].mxu1 %v7422_v5  ;;  %v6861_v5 = vld [vmem:[#allocation8 + $0xe0] ss:$8 sps:$4 sm:$0xff]  }
 0x1ce   :  { %2669 = vmatprep.mubr.bf16.mxu0 %v7588_v3  ;;  %3288 = vmatprep.mubr.bf16.mxu1 %v7426_v58  ;;  %v6866_v58 = vld [vmem:[#allocation8 + $0xf4] ss:$8 sps:$4 sm:$0xff]  }
 0x1cf   :  { %4557 = vmatprep.subr.bf16.mxu0 %v6863_v52  ;;  %v6792_v52 = vld [vmem:[#allocation3 + $0x324] ss:$28 sps:$4 sm:$0xff]  }
 0x1d0   :  { %4558 = vmatpush1.bf16.msra.mxu0 %v6861_v5  ;;  %v6801_v5 = vld [vmem:[#allocation6 + $0x648] ss:$16 sps:$4 sm:$0xff]  }
 0x1d1   :  { %4559 = vmatprep.subr.bf16.mxu0 %v6866_v58  ;;  %v6806_v58 = vld [vmem:[#allocation6 + $0x66c] ss:$16 sps:$4 sm:$0xff]  }
 0x1d4   :  { %4560 = vmatpush1.bf16.msra.mxu0 %v6864_v55  ;;  %v6809_v55 = vld [vmem:[#allocation6 + $0x68c] ss:$16 sps:$4 sm:$0xff]  }
 0x1d5   :  { %2670 = vmatmul.mubr.bf16.gmra.mrb[44].mxu0 %v7594_v37  ;;  %3289 = vmatmul.mubr.bf16.gmra.mrb[124].mxu1 %v7438_v62  ;;  %v6803_v62 = vld [vmem:[#allocation6 + $0x64c] ss:$16 sps:$4 sm:$0xff]  }
 0x1d6   :  { %2679 = vmatprep.mubr.bf16.mxu0 %v7596_v61  ;;  %3331 = vmatprep.mubr.bf16.mxu1 %v7442_v1  ;;  %v6795_v1 = vld [vmem:[#allocation6 + $0x628] ss:$16 sps:$4 sm:$0xff]  }
 0x1dd   :  { %2680 = vmatmul.mubr.bf16.gmra.mrb[48].mxu0 %v7602_v29  ;;  %3332 = vmatmul.mubr.bf16.vlgmr.msra.gmra.mrb[64].mxu1 %v7454_v10  ;;  %v6804_v10 = vld [vmem:[#allocation6 + $0x668] ss:$16 sps:$4 sm:$0xff]  }
 0x1de   :  { %3493 = vmatpush1.bf16.msra.mxu1 %v6786_v39  ;;  %2689 = vmatprep.mubr.bf16.mxu0 %v7604_v22  ;;  %v6794_v39 = vld [vmem:[#allocation3 + $0x320] ss:$28 sps:$4 sm:$0xff]  }
 0x1df   :  { %3341 = vmatprep.mubr.bf16.mxu1 %v7458_v34  ;;  %3494 = vmatprep.subr.bf16.mxu1 %v6797_v27  ;;  %v6798_v34 = vld [vmem:[#allocation3 + $0x35c] ss:$28 sps:$4 sm:$0xff]  }
 0x1e0   :  { %v6807_v27 = vld [vmem:[#allocation6 + $0x688] ss:$16 sps:$4 sm:$0xff]  }
 0x1e2   :  { %3495 = vmatpush1.bf16.msra.mxu1 %v6795_v1  ;;  %v6800_v1 = vld [vmem:[#allocation3 + $0x358] ss:$28 sps:$4 sm:$0xff]  }
 0x1e3   :  { %3496 = vmatprep.subr.bf16.mxu1 %v6803_v62  ;;  %v6837_v62 = vld [vmem:[#allocation6 + $0x6c8] ss:$16 sps:$4 sm:$0xff]  }
 0x1e5   :  { %2690 = vmatmul.mubr.bf16.gmra.mrb[52].mxu0 %v6791_v49  ;;  %3342 = vmatmul.mubr.bf16.gmra.mrb[68].mxu1 %v7470_v13  ;;  %v6822_v13 = vld [vmem:[#allocation6 + $0x6a8] ss:$16 sps:$4 sm:$0xff]  }
 0x1e6   :  { %2699 = vmatprep.mubr.bf16.mxu0 %v6792_v52  ;;  %3351 = vmatprep.mubr.bf16.mxu1 %v7474_v32  ;;  %v6839_v32 = vld [vmem:[#allocation6 + $0x6cc] ss:$16 sps:$4 sm:$0xff]  }
 0x1e7   :  { %3497 = vmatpush1.bf16.msra.mxu1 %v6801_v5  ;;  %v6854_v5 = vld [vmem:[#allocation6 + $0x6ec] ss:$16 sps:$4 sm:$0xff]  }
 0x1e8   :  { %3498 = vmatprep.subr.bf16.mxu1 %v6806_v58  ;;  %v6852_v58 = vld [vmem:[#allocation6 + $0x6e8] ss:$16 sps:$4 sm:$0xff]  }
 0x1eb   :  { %3499 = vmatpush1.bf16.msra.mxu1 %v6804_v10 }
 0x1ec   :  { %3500 = vmatprep.subr.bf16.mxu1 %v6809_v55 }
 0x1ed   :  { %2700 = vmatmul.mubr.bf16.gmra.mrb[56].mxu0 %v6794_v39  ;;  %3352 = vmatmul.mubr.bf16.gmra.mrb[72].mxu1 %v7486_v26  ;;  %v423_v26 = vld [vmem:[%s7988_s2] sm:$0xf] }
 0x1ee   :  { %2709 = vmatprep.mubr.bf16.mxu0 %v6798_v34  ;;  %3361 = vmatprep.mubr.bf16.mxu1 %v7490_v15  ;;  %v425_v15 = vlaneseq }
 0x1ef   :  { %3501 = vmatpush1.bf16.msra.mxu1 %v6807_v27 }
 0x1f0   :  { %3502 = vmatprep.subr.bf16.mxu1 %v6824_v48 }
 0x1f3   :  { %3503 = vmatpush1.bf16.msra.mxu1 %v6822_v13 }
 0x1f4   :  { %3504 = vmatprep.subr.bf16.mxu1 %v6839_v32 }
 0x1f5   :  { %2710 = vmatmul.mubr.bf16.gmra.mrb[60].mxu0 %v6800_v1  ;;  %3362 = vmatmul.mubr.bf16.gmra.mrb[76].mxu1 %v7502_v45 }
 0x1f6   :  { %3371 = vmatprep.mubr.bf16.mxu1 %v7506_v28  ;;  %v7635_v28 = vshrl.u32 %v425_v15, 7 }
 0x1f7   :  { %3505 = vmatpush1.bf16.msra.mxu1 %v6837_v62 }
 0x1f8   :  { %3506 = vmatprep.subr.bf16.mxu1 %v6854_v5 }
 0x1fb   :  { %3507 = vmatpush1.bf16.msra.mxu1 %v6852_v58  ;;  %v6867_v58 = vld [vmem:[#allocation8 + $0x100] ss:$8 sps:$4 sm:$0xff]  }
 0x1fd   :  { %3372 = vmatmul.mubr.bf16.gmra.mrb[80].mxu1 %v7518_v56 }
 0x1fe   :  { %3381 = vmatprep.mubr.bf16.mxu1 %v7522_v47  ;;  %v7638_v47 = vsub.s32 0, %v7635_v28 }
 0x200   :  { %v7645_v45 = vrot.slane %v423_v26, %v7638_v47 }
 0x205   :  { %3382 = vmatmul.mubr.bf16.gmra.mrb[84].mxu1 %v7534_v63 }
 0x206   :  { %3391 = vmatprep.mubr.bf16.mxu1 %v7538_v60  ;;  %v431_v60 = vsub.s32 1, %v7635_v28 }
 0x208   :  { %v7649_v56 = vrot.slane %v423_v26, %v431_v60 }
 0x20d   :  { %3392 = vmatmul.mubr.bf16.gmra.mrb[88].mxu1 %v7550_v31 }
 0x20e   :  { %3401 = vmatprep.mubr.bf16.mxu1 %v7554_v12  ;;  %v6869_v12 = vld [vmem:[#allocation8 + $0x104] ss:$8 sps:$4 sm:$0xff]  }
 0x20f   :  { %4722 = vmatprep.subr.bf16.mxu0 %v6869_v12 }
 0x215   :  { %3402 = vmatmul.mubr.bf16.gmra.mrb[92].mxu1 %v7562_v17 }
 0x216   :  { %3411 = vmatprep.mubr.bf16.mxu1 %v7564_v14 }
 0x21d   :  { %3412 = vmatmul.mubr.bf16.gmra.mrb[96].mxu1 %v7570_v35 }
 0x21e   :  { %3421 = vmatprep.mubr.bf16.mxu1 %v7572_v43 }
 0x225   :  { %3422 = vmatmul.mubr.bf16.gmra.mrb[100].mxu1 %v7578_v6 }
 0x226   :  { %3431 = vmatprep.mubr.bf16.mxu1 %v7580_v59 }
 0x22d   :  { %3432 = vmatmul.mubr.bf16.gmra.mrb[104].mxu1 %v7586_v2 }
 0x22e   :  { %3441 = vmatprep.mubr.bf16.mxu1 %v7588_v3 }
 0x235   :  { %3442 = vmatmul.mubr.bf16.gmra.mrb[108].mxu1 %v7594_v37 }
 0x236   :  { %3451 = vmatprep.mubr.bf16.mxu1 %v7596_v61 }
 0x23d   :  { %3452 = vmatmul.mubr.bf16.gmra.mrb[112].mxu1 %v7602_v29  ;;  %v8032_v29 = vmov 0  }
 0x23e   :  { %3461 = vmatprep.mubr.bf16.mxu1 %v7604_v22 }
 0x245   :  { %3462 = vmatmul.mubr.bf16.gmra.mrb[116].mxu1 %v6791_v49 }
 0x246   :  { %3471 = vmatprep.mubr.bf16.mxu1 %v6792_v52 }
 0x24d   :  { %3472 = vmatmul.mubr.bf16.gmra.mrb[120].mxu1 %v6794_v39 }
 0x24e   :  { %3481 = vmatprep.mubr.bf16.mxu1 %v6798_v34 }
 0x250   :  { %v2561_v63 = vpop.f32.mrb[0].mxu0 }
 0x251   :  { %v5670_v22 = vadd.f32 %v2561_v63, %v7645_v45  ;;  %v2563_v31 = vpop.f32.mrb[1].mxu0  ;;  %v6872_v63 = vld [vmem:[#allocation8 + $0x114] ss:$8 sps:$4 sm:$0xff]  }
 0x252   :  { %v5672_v48 = vadd.f32 %v2563_v31, %v7649_v56  ;;  %v2565_v14 = vpop.f32.mrb[2].mxu0 }
 0x253   :  { %v5671_v17 = vadd.f32 %v5670_v22, %v7306_v30  ;;  %v5674_v35 = vadd.f32 %v2565_v14, %v7645_v45  ;;  %v2567_v43 = vpop.f32.mrb[3].mxu0 }
 0x254   :  { %v5673_v6 = vadd.f32 %v5672_v48, %v7308_v16  ;;  %v5676_v59 = vadd.f32 %v2567_v43, %v7649_v56  ;;  %v6923_v48 = vld [vmem:[#allocation3 + $0x18] ss:$28 sps:$4 sm:$0xff]  }
 0x255   :  { %v3813_v2 = vmul.f32 0.2, %v5671_v17  ;;  %v5675_v3 = vadd.f32 %v5674_v35, %v7312_v20  ;;  %3482 = vmatmul.mubr.bf16.gmra.mrb[124].mxu1 %v6800_v1  ;;  %vm3685_vm0 = vcmp.gt.f32.partialorder %v5671_v17, 0.0 }
 0x256   :  { %v3814_v37 = vmul.f32 0.2, %v5673_v6  ;;  %v5677_v61 = vadd.f32 %v5676_v59, %v7316_v51  ;;  %3524 = vmatprep.mubr.bf16.mxu1 %v8032_v29  ;;  %vm3686_vm1 = vcmp.gt.f32.partialorder %v5673_v6, 0.0 }
 0x257   :  { %vm3689_vm2 = vcmp.gt.f32.partialorder %v5675_v3, 0.0  ;;  %v3817_v30 = vmul.f32 0.2, %v5675_v3  ;;  %v3941_v10 = vsel %vm3685_vm0, %v5671_v17, %v3813_v2 }
 0x258   :  { %vm3690_vm3 = vcmp.gt.f32.partialorder %v5677_v61, 0.0  ;;  %v3818_v49 = vmul.f32 0.2, %v5677_v61  ;;  %v2571_v52 = vpop.f32.mrb[4].mxu0  ;;  %v3942_v13 = vsel %vm3686_vm1, %v5673_v6, %v3814_v37 }
 0x259   :  { %v3945_v16 = vsel %vm3689_vm2, %v5675_v3, %v3817_v30  ;;  %v5678_v55 = vadd.f32 %v2571_v52, %v7645_v45  ;;  %v2573_v39 = vpop.f32.mrb[5].mxu0 }
 0x25a   :  { %v4069_v34 = vpack.c.bf16 %v3945_v16, %v3941_v10  ;;  %v5680_v20 = vadd.f32 %v2573_v39, %v7649_v56  ;;  %v2575_v27 = vpop.f32.mrb[6].mxu0  ;;  %v3946_v32 = vsel %vm3690_vm3, %v5677_v61, %v3818_v49  ;;  %v6873_v39 = vld [vmem:[#allocation8 + $0x120] ss:$8 sps:$4 sm:$0xff]  }
 0x25b   :  { %v5679_v51 = vadd.f32 %v5678_v55, %v7322_v23  ;;  %v5682_v1 = vadd.f32 %v2575_v27, %v7645_v45  ;;  %v2577_v62 = vpop.f32.mrb[7].mxu0  ;;  %v4070_v5 = vpack.c.bf16 %v3946_v32, %v3942_v13  ;;  %v6878_v27 = vld [vmem:[#allocation8 + $0x134] ss:$8 sps:$4 sm:$0xff]  }
 0x25c   :  { %v5681_v12 = vadd.f32 %v5680_v20, %v7324_v24  ;;  %v5684_v26 = vadd.f32 %v2577_v62, %v7649_v56  ;;  %v6870_v24 = vld [vmem:[#allocation8 + $0x110] ss:$8 sps:$4 sm:$0xff]  }
 0x25d   :  { %v3821_v22 = vmul.f32 0.2, %v5679_v51  ;;  %v5683_v31 = vadd.f32 %v5682_v1, %v7328_v33  ;;  %3525 = vmatmul.mubr.bf16.vlgmr.msra.gmra.mrb[64].mxu1 %v6923_v48  ;;  %4561 = vmatprep.mubr.bf16.mxu0 %v4070_v5  ;;  %vm3693_vm4 = vcmp.gt.f32.partialorder %v5679_v51, 0.0  ;;  %v6875_v33 = vld [vmem:[#allocation8 + $0x124] ss:$8 sps:$4 sm:$0xff]  }
 0x25e   :  { %v3822_v14 = vmul.f32 0.2, %v5681_v12  ;;  %v5685_v23 = vadd.f32 %v5684_v26, %v7332_v57  ;;  %4562 = vmatmul.mubr.bf16.vlgmr.msra.gmra.mrb[64].mxu0 %v4069_v34  ;;  %3534 = vmatprep.mubr.bf16.mxu1 %v8032_v29  ;;  %vm3694_vm5 = vcmp.gt.f32.partialorder %v5681_v12, 0.0  ;;  %v6876_v62 = vld [vmem:[#allocation8 + $0x130] ss:$8 sps:$4 sm:$0xff]  }
 0x25f   :  { %vm3697_vm6 = vcmp.gt.f32.partialorder %v5683_v31, 0.0  ;;  %v3825_v17 = vmul.f32 0.2, %v5683_v31  ;;  %4723 = vmatpush1.bf16.msra.mxu0 %v6867_v58  ;;  %v3949_v2 = vsel %vm3693_vm4, %v5679_v51, %v3821_v22  ;;  %v6924_v51 = vld [vmem:[#allocation3 + $0x50] ss:$28 sps:$4 sm:$0xff]  }
 0x260   :  { %vm3698_vm7 = vcmp.gt.f32.partialorder %v5685_v23, 0.0  ;;  %v3826_v35 = vmul.f32 0.2, %v5685_v23  ;;  %v2581_v43 = vpop.f32.mrb[8].mxu0  ;;  %4724 = vmatprep.subr.bf16.mxu0 %v6872_v63  ;;  %v3950_v61 = vsel %vm3694_vm5, %v5681_v12, %v3822_v14 }
 0x261   :  { %v5686_v6 = vadd.f32 %v2581_v43, %v7645_v45  ;;  %v2583_v59 = vpop.f32.mrb[9].mxu0  ;;  %v3953_v3 = vsel %vm3697_vm6, %v5683_v31, %v3825_v17 }
 0x262   :  { %v5688_v57 = vadd.f32 %v2583_v59, %v7649_v56  ;;  %v2585_v37 = vpop.f32.mrb[10].mxu0  ;;  %v3954_v30 = vsel %vm3698_vm7, %v5685_v23, %v3826_v35  ;;  %v4073_v49 = vpack.c.bf16 %v3953_v3, %v3949_v2  ;;  %v6884_v2 = vld [vmem:[#allocation8 + $0x154] ss:$8 sps:$4 sm:$0xff]  }
 0x263   :  { %v5687_v52 = vadd.f32 %v5686_v6, %v7338_v36  ;;  %v5690_v10 = vadd.f32 %v2585_v37, %v7645_v45  ;;  %v2587_v16 = vpop.f32.mrb[11].mxu0  ;;  %v4074_v55 = vpack.c.bf16 %v3954_v30, %v3950_v61  ;;  %4725 = vmatpush1.bf16.msra.mxu0 %v6870_v24  ;;  %v6925_v37 = vld [vmem:[#allocation3 + $0x88] ss:$28 sps:$4 sm:$0xff]   ;;  %v6882_v30 = vld [vmem:[#allocation8 + $0x150] ss:$8 sps:$4 sm:$0xff]  }
 0x264   :  { %v5689_v34 = vadd.f32 %v5688_v57, %v7340_v38  ;;  %v5692_v20 = vadd.f32 %v2587_v16, %v7649_v56  ;;  %4726 = vmatprep.subr.bf16.mxu0 %v6875_v33  ;;  %v6879_v33 = vld [vmem:[#allocation8 + $0x140] ss:$8 sps:$4 sm:$0xff]  }
 0x265   :  { %v3829_v13 = vmul.f32 0.2, %v5687_v52  ;;  %v5691_v32 = vadd.f32 %v5690_v10, %v7344_v41  ;;  %3535 = vmatmul.mubr.bf16.gmra.mrb[68].mxu1 %v6924_v51  ;;  %4571 = vmatprep.mubr.bf16.mxu0 %v4074_v55  ;;  %vm3701_vm8 = vcmp.gt.f32.partialorder %v5687_v52, 0.0  ;;  %v6881_v41 = vld [vmem:[#allocation8 + $0x144] ss:$8 sps:$4 sm:$0xff]  }
 0x266   :  { %v3830_v36 = vmul.f32 0.2, %v5689_v34  ;;  %v5693_v1 = vadd.f32 %v5692_v20, %v7348_v44  ;;  %4572 = vmatmul.mubr.bf16.gmra.mrb[68].mxu0 %v4073_v49  ;;  %3544 = vmatprep.mubr.bf16.mxu1 %v8032_v29  ;;  %vm3702_vm9 = vcmp.gt.f32.partialorder %v5689_v34, 0.0 }
 0x267   :  { %vm3705_vm10 = vcmp.gt.f32.partialorder %v5691_v32, 0.0  ;;  %v3833_v38 = vmul.f32 0.2, %v5691_v32  ;;  %4727 = vmatpush1.bf16.msra.mxu0 %v6873_v39  ;;  %v3957_v63 = vsel %vm3701_vm8, %v5687_v52, %v3829_v13 }
 0x268   :  { %vm3706_vm11 = vcmp.gt.f32.partialorder %v5693_v1, 0.0  ;;  %v3834_v5 = vmul.f32 0.2, %v5693_v1  ;;  %v2591_v58 = vpop.f32.mrb[12].mxu0  ;;  %4728 = vmatprep.subr.bf16.mxu0 %v6878_v27  ;;  %v3958_v48 = vsel %vm3702_vm9, %v5689_v34, %v3830_v36 }
 0x269   :  { %v5694_v12 = vadd.f32 %v2591_v58, %v7645_v45  ;;  %v2593_v26 = vpop.f32.mrb[13].mxu0  ;;  %v3961_v22 = vsel %vm3705_vm10, %v5691_v32, %v3833_v38  ;;  %v6885_v38 = vld [vmem:[#allocation8 + $0x160] ss:$8 sps:$4 sm:$0xff]   ;;  %v6890_v58 = vld [vmem:[#allocation8 + $0x174] ss:$8 sps:$4 sm:$0xff]  }
 0x26a   :  { %v5696_v44 = vadd.f32 %v2593_v26, %v7649_v56  ;;  %v2595_v31 = vpop.f32.mrb[14].mxu0  ;;  %v3962_v14 = vsel %vm3706_vm11, %v5693_v1, %v3834_v5  ;;  %v4077_v23 = vpack.c.bf16 %v3961_v22, %v3957_v63  ;;  %v6926_v26 = vld [vmem:[#allocation3 + $0xc0] ss:$28 sps:$4 sm:$0xff]   ;;  %v6888_v22 = vld [vmem:[#allocation8 + $0x170] ss:$8 sps:$4 sm:$0xff]  }
 0x26b   :  { %v5695_v17 = vadd.f32 %v5694_v12, %v7354_v40  ;;  %v5698_v24 = vadd.f32 %v2595_v31, %v7645_v45  ;;  %v2597_v35 = vpop.f32.mrb[15].mxu0  ;;  %v4078_v43 = vpack.c.bf16 %v3962_v14, %v3958_v48  ;;  %4729 = vmatpush1.bf16.msra.mxu0 %v6876_v62 }
 0x26c   :  { %v5697_v6 = vadd.f32 %v5696_v44, %v7356_v42  ;;  %v5700_v59 = vadd.f32 %v2597_v35, %v7649_v56  ;;  %4730 = vmatprep.subr.bf16.mxu0 %v6881_v41 }
 0x26d   :  { %v3837_v3 = vmul.f32 0.2, %v5695_v17  ;;  %v5699_v57 = vadd.f32 %v5698_v24, %v7360_v11  ;;  %3545 = vmatmul.mubr.bf16.gmra.mrb[72].mxu1 %v6925_v37  ;;  %4581 = vmatprep.mubr.bf16.mxu0 %v4078_v43  ;;  %vm3709_vm12 = vcmp.gt.f32.partialorder %v5695_v17, 0.0  ;;  %v6887_v11 = vld [vmem:[#allocation8 + $0x164] ss:$8 sps:$4 sm:$0xff]  }
 0x26e   :  { %v3838_v40 = vmul.f32 0.2, %v5697_v6  ;;  %v5701_v61 = vadd.f32 %v5700_v59, %v7364_v0  ;;  %4582 = vmatmul.mubr.bf16.gmra.mrb[72].mxu0 %v4077_v23  ;;  %3554 = vmatprep.mubr.bf16.mxu1 %v8032_v29  ;;  %vm3710_vm13 = vcmp.gt.f32.partialorder %v5697_v6, 0.0 }
 0x26f   :  { %vm3713_vm14 = vcmp.gt.f32.partialorder %v5699_v57, 0.0  ;;  %v3841_v42 = vmul.f32 0.2, %v5699_v57  ;;  %4731 = vmatpush1.bf16.msra.mxu0 %v6879_v33  ;;  %v3965_v55 = vsel %vm3709_vm12, %v5695_v17, %v3837_v3 }
 0x270   :  { %vm3714_vm15 = vcmp.gt.f32.partialorder %v5701_v61, 0.0  ;;  %v3842_v49 = vmul.f32 0.2, %v5701_v61  ;;  %v2601_v52 = vpop.f32.mrb[16].mxu0  ;;  %4732 = vmatprep.subr.bf16.mxu0 %v6884_v2  ;;  %v3966_v20 = vsel %vm3710_vm13, %v5697_v6, %v3838_v40 }
 0x271   :  { %v5702_v10 = vadd.f32 %v2601_v52, %v7645_v45  ;;  %v2603_v16 = vpop.f32.mrb[17].mxu0  ;;  %v3969_v39 = vsel %vm3713_vm14, %v5699_v57, %v3841_v42  ;;  %v6891_v57 = vld [vmem:[#allocation8 + $0x180] ss:$8 sps:$4 sm:$0xff]  }
 0x272   :  { %v5704_v0 = vadd.f32 %v2603_v16, %v7649_v56  ;;  %v2605_v34 = vpop.f32.mrb[18].mxu0  ;;  %v3970_v27 = vsel %vm3714_vm15, %v5701_v61, %v3842_v49  ;;  %v4081_v13 = vpack.c.bf16 %v3969_v39, %v3965_v55  ;;  %v6896_v61 = vld [vmem:[#allocation8 + $0x194] ss:$8 sps:$4 sm:$0xff]  }
 0x273   :  { %v5703_v32 = vadd.f32 %v5702_v10, %v7370_v46  ;;  %v5706_v51 = vadd.f32 %v2605_v34, %v7645_v45  ;;  %v2607_v36 = vpop.f32.mrb[19].mxu0  ;;  %v4082_v1 = vpack.c.bf16 %v3970_v27, %v3966_v20  ;;  %4733 = vmatpush1.bf16.msra.mxu0 %v6882_v30  ;;  %v6927_v49 = vld [vmem:[#allocation3 + $0xf8] ss:$28 sps:$4 sm:$0xff]  }
 0x274   :  { %v5705_v62 = vadd.f32 %v5704_v0, %v7372_v50  ;;  %v5708_v5 = vadd.f32 %v2607_v36, %v7649_v56  ;;  %4734 = vmatprep.subr.bf16.mxu0 %v6887_v11  ;;  %v6894_v11 = vld [vmem:[#allocation8 + $0x190] ss:$8 sps:$4 sm:$0xff]  }
 0x275   :  { %v3845_v41 = vmul.f32 0.2, %v5703_v32  ;;  %v5707_v12 = vadd.f32 %v5706_v51, %v7376_v54  ;;  %3555 = vmatmul.mubr.bf16.gmra.mrb[76].mxu1 %v6926_v26  ;;  %4591 = vmatprep.mubr.bf16.mxu0 %v4082_v1  ;;  %vm3717_vm0 = vcmp.gt.f32.partialorder %v5703_v32, 0.0  ;;  %v6893_v54 = vld [vmem:[#allocation8 + $0x184] ss:$8 sps:$4 sm:$0xff]  }
 0x276   :  { %v3846_v46 = vmul.f32 0.2, %v5705_v62  ;;  %v5709_v63 = vadd.f32 %v5708_v5, %v7380_v18  ;;  %4592 = vmatmul.mubr.bf16.gmra.mrb[76].mxu0 %v4081_v13  ;;  %3564 = vmatprep.mubr.bf16.mxu1 %v8032_v29  ;;  %vm3718_vm1 = vcmp.gt.f32.partialorder %v5705_v62, 0.0 }
 0x277   :  { %vm3721_vm2 = vcmp.gt.f32.partialorder %v5707_v12, 0.0  ;;  %v3849_v50 = vmul.f32 0.2, %v5707_v12  ;;  %4735 = vmatpush1.bf16.msra.mxu0 %v6885_v38  ;;  %v3973_v23 = vsel %vm3717_vm0, %v5703_v32, %v3845_v41  ;;  %v6902_v41 = vld [vmem:[#allocation8 + $0x1b4] ss:$8 sps:$4 sm:$0xff]  }
 0x278   :  { %vm3722_vm3 = vcmp.gt.f32.partialorder %v5709_v63, 0.0  ;;  %v3850_v44 = vmul.f32 0.2, %v5709_v63  ;;  %v2611_v31 = vpop.f32.mrb[20].mxu0  ;;  %4736 = vmatprep.subr.bf16.mxu0 %v6890_v58  ;;  %v3974_v35 = vsel %vm3718_vm1, %v5705_v62, %v3846_v46  ;;  %v6897_v62 = vld [vmem:[#allocation8 + $0x1a0] ss:$8 sps:$4 sm:$0xff]  }
 0x279   :  { %v5710_v48 = vadd.f32 %v2611_v31, %v7645_v45  ;;  %v2613_v14 = vpop.f32.mrb[21].mxu0  ;;  %v3977_v17 = vsel %vm3721_vm2, %v5707_v12, %v3849_v50  ;;  %v6928_v46 = vld [vmem:[#allocation3 + $0x130] ss:$28 sps:$4 sm:$0xff]  }
 0x27a   :  { %v5712_v18 = vadd.f32 %v2613_v14, %v7649_v56  ;;  %v2615_v24 = vpop.f32.mrb[22].mxu0  ;;  %v3978_v43 = vsel %vm3722_vm3, %v5709_v63, %v3850_v44  ;;  %v4085_v33 = vpack.c.bf16 %v3977_v17, %v3973_v23  ;;  %v6900_v50 = vld [vmem:[#allocation8 + $0x1b0] ss:$8 sps:$4 sm:$0xff]  }
 0x27b   :  { %v5711_v6 = vadd.f32 %v5710_v48, %v7386_v7  ;;  %v5714_v59 = vadd.f32 %v2615_v24, %v7645_v45  ;;  %v2617_v2 = vpop.f32.mrb[23].mxu0  ;;  %v4086_v3 = vpack.c.bf16 %v3978_v43, %v3974_v35  ;;  %4737 = vmatpush1.bf16.msra.mxu0 %v6888_v22  ;;  %v8033_v35 = vld [vmem:[#allocation13_spill] sm:$0xff] }
 0x27c   :  { %v5713_v37 = vadd.f32 %v5712_v18, %v7388_v53  ;;  %v5716_v40 = vadd.f32 %v2617_v2, %v7649_v56  ;;  %4738 = vmatprep.subr.bf16.mxu0 %v6893_v54  ;;  %v6903_v2 = vld [vmem:[#allocation8 + $0x1c0] ss:$8 sps:$4 sm:$0xff]  }
 0x27d   :  { %v3853_v42 = vmul.f32 0.2, %v5711_v6  ;;  %v5715_v30 = vadd.f32 %v5714_v59, %v7392_v9  ;;  %3565 = vmatmul.mubr.bf16.gmra.mrb[80].mxu1 %v6927_v49  ;;  %4601 = vmatprep.mubr.bf16.mxu0 %v4086_v3  ;;  %vm3725_vm4 = vcmp.gt.f32.partialorder %v5711_v6, 0.0  ;;  %v6899_v9 = vld [vmem:[#allocation8 + $0x1a4] ss:$8 sps:$4 sm:$0xff]  }
 0x27e   :  { %v3854_v7 = vmul.f32 0.2, %v5713_v37  ;;  %v5717_v52 = vadd.f32 %v5716_v40, %v7396_v4  ;;  %4602 = vmatmul.mubr.bf16.gmra.mrb[80].mxu0 %v4085_v33  ;;  %3574 = vmatprep.mubr.bf16.mxu1 %v8032_v29  ;;  %vm3726_vm5 = vcmp.gt.f32.partialorder %v5713_v37, 0.0  ;;  %v8034_v3 = vld [vmem:[#allocation14_spill] sm:$0xff]  ;;  %v6908_v40 = vld [vmem:[#allocation8 + $0x1d4] ss:$8 sps:$4 sm:$0xff]  }
 0x27f   :  { %vm3729_vm6 = vcmp.gt.f32.partialorder %v5715_v30, 0.0  ;;  %v3857_v53 = vmul.f32 0.2, %v5715_v30  ;;  %4739 = vmatpush1.bf16.msra.mxu0 %v6891_v57  ;;  %v3981_v0 = vsel %vm3725_vm4, %v5711_v6, %v3853_v42  ;;  %v8035_v42 = vld [vmem:[#allocation15_spill] sm:$0xff]  ;;  %v6929_v49 = vld [vmem:[#allocation3 + $0x168] ss:$28 sps:$4 sm:$0xff]  }
 0x280   :  { %vm3730_vm7 = vcmp.gt.f32.partialorder %v5717_v52, 0.0  ;;  %v3858_v10 = vmul.f32 0.2, %v5717_v52  ;;  %v2621_v16 = vpop.f32.mrb[24].mxu0  ;;  %4740 = vmatprep.subr.bf16.mxu0 %v6896_v61  ;;  %v3982_v27 = vsel %vm3726_vm5, %v5713_v37, %v3854_v7 }
 0x281   :  { %v5718_v55 = vadd.f32 %v2621_v16, %v7645_v45  ;;  %v2623_v39 = vpop.f32.mrb[25].mxu0  ;;  %v3985_v34 = vsel %vm3729_vm6, %v5715_v30, %v3857_v53 }
 0x282   :  { %v5720_v4 = vadd.f32 %v2623_v39, %v7649_v56  ;;  %v2625_v20 = vpop.f32.mrb[26].mxu0  ;;  %v3986_v13 = vsel %vm3730_vm7, %v5717_v52, %v3858_v10  ;;  %v4089_v32 = vpack.c.bf16 %v3985_v34, %v3981_v0  ;;  %v8036_v52 = vld [vmem:[#allocation16_spill] sm:$0xff] }
 0x283   :  { %v5719_v51 = vadd.f32 %v5718_v55, %v7402_v19  ;;  %v5722_v36 = vadd.f32 %v2625_v20, %v7645_v45  ;;  %v2627_v1 = vpop.f32.mrb[27].mxu0  ;;  %v4090_v38 = vpack.c.bf16 %v3986_v13, %v3982_v27  ;;  %4741 = vmatpush1.bf16.msra.mxu0 %v6894_v11  ;;  %v6906_v10 = vld [vmem:[#allocation8 + $0x1d0] ss:$8 sps:$4 sm:$0xff]   ;;  %v6911_v55 = vld [vmem:[#allocation8 + $0x1e4] ss:$8 sps:$4 sm:$0xff]  }
 0x284   :  { %v5721_v5 = vadd.f32 %v5720_v4, %v7404_v21  ;;  %v5724_v58 = vadd.f32 %v2627_v1, %v7649_v56  ;;  %4742 = vmatprep.subr.bf16.mxu0 %v6899_v9 }
 0x285   :  { %v3861_v12 = vmul.f32 0.2, %v5719_v51  ;;  %v5723_v26 = vadd.f32 %v5722_v36, %v7408_v8  ;;  %3575 = vmatmul.mubr.bf16.gmra.mrb[84].mxu1 %v6928_v46  ;;  %4611 = vmatprep.mubr.bf16.mxu0 %v4090_v38  ;;  %vm3733_vm8 = vcmp.gt.f32.partialorder %v5719_v51, 0.0  ;;  %v6905_v8 = vld [vmem:[#allocation8 + $0x1c4] ss:$8 sps:$4 sm:$0xff]  }
 0x286   :  { %v3862_v19 = vmul.f32 0.2, %v5721_v5  ;;  %v5725_v63 = vadd.f32 %v5724_v58, %v7412_v25  ;;  %4612 = vmatmul.mubr.bf16.gmra.mrb[84].mxu0 %v4089_v32  ;;  %3584 = vmatprep.mubr.bf16.mxu1 %v8032_v29  ;;  %vm3734_vm9 = vcmp.gt.f32.partialorder %v5721_v5, 0.0  ;;  %v8037_v36 = vld [vmem:[#allocation17_spill] sm:$0xff] }
 0x287   :  { %vm3737_vm10 = vcmp.gt.f32.partialorder %v5723_v26, 0.0  ;;  %v3865_v21 = vmul.f32 0.2, %v5723_v26  ;;  %4743 = vmatpush1.bf16.msra.mxu0 %v6897_v62  ;;  %v3989_v48 = vsel %vm3733_vm8, %v5719_v51, %v3861_v12  ;;  %v6909_v58 = vld [vmem:[#allocation8 + $0x1e0] ss:$8 sps:$4 sm:$0xff]  }
 0x288   :  { %vm3738_vm11 = vcmp.gt.f32.partialorder %v5725_v63, 0.0  ;;  %v3866_v22 = vmul.f32 0.2, %v5725_v63  ;;  %v2631_v44 = vpop.f32.mrb[28].mxu0  ;;  %4744 = vmatprep.subr.bf16.mxu0 %v6902_v41  ;;  %v3990_v17 = vsel %vm3734_vm9, %v5721_v5, %v3862_v19  ;;  %v8038_v41 = vld [vmem:[#allocation18_spill] sm:$0xff]  ;;  %v8039_v19 = vld [vmem:[#allocation19_spill] sm:$0xff] }
 0x289   :  { %v5726_v31 = vadd.f32 %v2631_v44, %v7645_v45  ;;  %v2633_v54 = vpop.f32.mrb[29].mxu0  ;;  %v3993_v14 = vsel %vm3737_vm10, %v5723_v26, %v3865_v21  ;;  %v6930_v21 = vld [vmem:[#allocation3 + $0x1a0] ss:$28 sps:$4 sm:$0xff]  }
 0x28a   :  { %v5728_v25 = vadd.f32 %v2633_v54, %v7649_v56  ;;  %v2635_v23 = vpop.f32.mrb[30].mxu0  ;;  %v3994_v18 = vsel %vm3738_vm11, %v5725_v63, %v3866_v22  ;;  %v4093_v24 = vpack.c.bf16 %v3993_v14, %v3989_v48  ;;  %v8040_v22 = vld [vmem:[#allocation20_spill] sm:$0xff] }
 0x28b   :  { %v5727_v43 = vadd.f32 %v5726_v31, %v8033_v35  ;;  %v5730_v33 = vadd.f32 %v2635_v23, %v7645_v45  ;;  %v2637_v6 = vpop.f32.mrb[31].mxu0  ;;  %v4094_v59 = vpack.c.bf16 %v3994_v18, %v3990_v17  ;;  %4745 = vmatpush1.bf16.msra.mxu0 %v6900_v50 }
 0x28c   :  { %v5729_v57 = vadd.f32 %v5728_v25, %v8034_v3  ;;  %v5732_v37 = vadd.f32 %v2637_v6, %v7649_v56  ;;  %4746 = vmatprep.subr.bf16.mxu0 %v6905_v8 }
 0x28d   :  { %v3869_v61 = vmul.f32 0.2, %v5727_v43  ;;  %v5731_v30 = vadd.f32 %v5730_v33, %v8035_v42  ;;  %3585 = vmatmul.mubr.bf16.gmra.mrb[88].mxu1 %v6929_v49  ;;  %4621 = vmatprep.mubr.bf16.mxu0 %v4094_v59  ;;  %vm3741_vm12 = vcmp.gt.f32.partialorder %v5727_v43, 0.0  ;;  %v8041_v33 = vld [vmem:[#allocation21_spill] sm:$0xff]  ;;  %v8043_v42 = vld [vmem:[#allocation23_spill] sm:$0xff] }
 0x28e   :  { %v3870_v7 = vmul.f32 0.2, %v5729_v57  ;;  %v5733_v53 = vadd.f32 %v5732_v37, %v8036_v52  ;;  %4622 = vmatmul.mubr.bf16.gmra.mrb[88].mxu0 %v4093_v24  ;;  %3594 = vmatprep.mubr.bf16.mxu1 %v8032_v29  ;;  %vm3742_vm13 = vcmp.gt.f32.partialorder %v5729_v57, 0.0  ;;  %v6931_v49 = vld [vmem:[#allocation3 + $0x1d8] ss:$28 sps:$4 sm:$0xff]  }
 0x28f   :  { %vm3745_vm14 = vcmp.gt.f32.partialorder %v5731_v30, 0.0  ;;  %v3873_v11 = vmul.f32 0.2, %v5731_v30  ;;  %4747 = vmatpush1.bf16.msra.mxu0 %v6903_v2  ;;  %v3997_v34 = vsel %vm3741_vm12, %v5727_v43, %v3869_v61  ;;  %v8044_v52 = vld [vmem:[#allocation24_spill] sm:$0xff] }
 0x290   :  { %vm3746_vm15 = vcmp.gt.f32.partialorder %v5733_v53, 0.0  ;;  %v3874_v16 = vmul.f32 0.2, %v5733_v53  ;;  %v2641_v9 = vpop.f32.mrb[32].mxu0  ;;  %4748 = vmatprep.subr.bf16.mxu0 %v6908_v40  ;;  %v3998_v13 = vsel %vm3742_vm13, %v5729_v57, %v3870_v7  ;;  %v8042_v57 = vld [vmem:[#allocation22_spill] sm:$0xff] }
 0x291   :  { %v5734_v39 = vadd.f32 %v2641_v9, %v7645_v45  ;;  %v2643_v0 = vpop.f32.mrb[33].mxu0  ;;  %v4001_v4 = vsel %vm3745_vm14, %v5731_v30, %v3873_v11 }
 0x292   :  { %v5736_v20 = vadd.f32 %v2643_v0, %v7649_v56  ;;  %v2645_v27 = vpop.f32.mrb[34].mxu0  ;;  %v4002_v32 = vsel %vm3746_vm15, %v5733_v53, %v3874_v16  ;;  %v4097_v51 = vpack.c.bf16 %v4001_v4, %v3997_v34 }
 0x293   :  { %v5735_v1 = vadd.f32 %v5734_v39, %v8037_v36  ;;  %v5738_v38 = vadd.f32 %v2645_v27, %v7645_v45  ;;  %v2647_v62 = vpop.f32.mrb[35].mxu0  ;;  %v4098_v5 = vpack.c.bf16 %v4002_v32, %v3998_v13  ;;  %4749 = vmatpush1.bf16.msra.mxu0 %v6906_v10  ;;  %v8045_v32 = vld [vmem:[#allocation25_spill] sm:$0xff] }
 0x294   :  { %v5737_v12 = vadd.f32 %v5736_v20, %v8038_v41  ;;  %v5740_v26 = vadd.f32 %v2647_v62, %v7649_v56  ;;  %4750 = vmatprep.subr.bf16.mxu0 %v6911_v55  ;;  %v8046_v62 = vld [vmem:[#allocation26_spill] sm:$0xff] }
 0x295   :  { %v3877_v46 = vmul.f32 0.2, %v5735_v1  ;;  %v5739_v63 = vadd.f32 %v5738_v38, %v8039_v19  ;;  %3595 = vmatmul.mubr.bf16.gmra.mrb[92].mxu1 %v6930_v21  ;;  %4631 = vmatprep.mubr.bf16.mxu0 %v4098_v5  ;;  %vm3749_vm0 = vcmp.gt.f32.partialorder %v5735_v1, 0.0 }
 0x296   :  { %v3878_v50 = vmul.f32 0.2, %v5737_v12  ;;  %v5741_v44 = vadd.f32 %v5740_v26, %v8040_v22  ;;  %4632 = vmatmul.mubr.bf16.gmra.mrb[92].mxu0 %v4097_v51  ;;  %3604 = vmatprep.mubr.bf16.mxu1 %v8032_v29  ;;  %vm3750_vm1 = vcmp.gt.f32.partialorder %v5737_v12, 0.0 }
 0x297   :  { %vm3753_vm2 = vcmp.gt.f32.partialorder %v5739_v63, 0.0  ;;  %v3881_v8 = vmul.f32 0.2, %v5739_v63  ;;  %4751 = vmatpush1.bf16.msra.mxu0 %v6909_v58  ;;  %v4005_v25 = vsel %vm3749_vm0, %v5735_v1, %v3877_v46  ;;  %v6932_v46 = vld [vmem:[#allocation3 + $0x210] ss:$28 sps:$4 sm:$0xff]  }
 0x298   :  { %vm3754_vm3 = vcmp.gt.f32.partialorder %v5741_v44, 0.0  ;;  %v3882_v31 = vmul.f32 0.2, %v5741_v44  ;;  %v2651_v54 = vpop.f32.mrb[36].mxu0  ;;  %v4006_v24 = vsel %vm3750_vm1, %v5737_v12, %v3878_v50  ;;  %v8047_v12 = vld [vmem:[#allocation27_spill] sm:$0xff] }
 0x299   :  { %v5742_v48 = vadd.f32 %v2651_v54, %v7645_v45  ;;  %v2653_v14 = vpop.f32.mrb[37].mxu0  ;;  %v4009_v23 = vsel %vm3753_vm2, %v5739_v63, %v3881_v8  ;;  %v8048_v63 = vld [vmem:[#allocation28_spill] sm:$0xff] }
 0x29a   :  { %v5744_v17 = vadd.f32 %v2653_v14, %v7649_v56  ;;  %v2655_v18 = vpop.f32.mrb[38].mxu0  ;;  %v4010_v35 = vsel %vm3754_vm3, %v5741_v44, %v3882_v31  ;;  %v4101_v43 = vpack.c.bf16 %v4009_v23, %v4005_v25 }
 0x29b   :  { %v5743_v6 = vadd.f32 %v5742_v48, %v8041_v33  ;;  %v5746_v59 = vadd.f32 %v2655_v18, %v7645_v45  ;;  %v2657_v2 = vpop.f32.mrb[39].mxu0  ;;  %v4102_v3 = vpack.c.bf16 %v4010_v35, %v4006_v24  ;;  %v8049_v24 = vld [vmem:[#allocation29_spill] sm:$0xff] }
 0x29c   :  { %v5745_v37 = vadd.f32 %v5744_v17, %v8042_v57  ;;  %v5748_v40 = vadd.f32 %v2657_v2, %v7649_v56 }
 0x29d   :  { %v3885_v61 = vmul.f32 0.2, %v5743_v6  ;;  %v5747_v30 = vadd.f32 %v5746_v59, %v8043_v42  ;;  %3605 = vmatmul.mubr.bf16.gmra.mrb[96].mxu1 %v6931_v49  ;;  %4641 = vmatprep.mubr.bf16.mxu0 %v4102_v3  ;;  %vm3757_vm4 = vcmp.gt.f32.partialorder %v5743_v6, 0.0  ;;  %v8050_v59 = vld [vmem:[#allocation30_spill] sm:$0xff] }
 0x29e   :  { %v3886_v7 = vmul.f32 0.2, %v5745_v37  ;;  %v5749_v53 = vadd.f32 %v5748_v40, %v8044_v52  ;;  %4642 = vmatmul.mubr.bf16.gmra.mrb[96].mxu0 %v4101_v43  ;;  %3614 = vmatprep.mubr.bf16.mxu1 %v8032_v29  ;;  %vm3758_vm5 = vcmp.gt.f32.partialorder %v5745_v37, 0.0 }
 0x29f   :  { %vm3761_vm6 = vcmp.gt.f32.partialorder %v5747_v30, 0.0  ;;  %v3889_v11 = vmul.f32 0.2, %v5747_v30  ;;  %v4013_v39 = vsel %vm3757_vm4, %v5743_v6, %v3885_v61  ;;  %v6933_v61 = vld [vmem:[#allocation3 + $0x248] ss:$28 sps:$4 sm:$0xff]  }
 0x2a0   :  { %vm3762_vm7 = vcmp.gt.f32.partialorder %v5749_v53, 0.0  ;;  %v3890_v10 = vmul.f32 0.2, %v5749_v53  ;;  %v2661_v16 = vpop.f32.mrb[40].mxu0  ;;  %v4014_v20 = vsel %vm3758_vm5, %v5745_v37, %v3886_v7  ;;  %v8051_v37 = vld [vmem:[#allocation31_spill] sm:$0xff] }
 0x2a1   :  { %v5750_v9 = vadd.f32 %v2661_v16, %v7645_v45  ;;  %v2663_v55 = vpop.f32.mrb[41].mxu0  ;;  %v4017_v0 = vsel %vm3761_vm6, %v5747_v30, %v3889_v11  ;;  %v8052_v30 = vld [vmem:[#allocation32_spill] sm:$0xff] }
 0x2a2   :  { %v5752_v34 = vadd.f32 %v2663_v55, %v7649_v56  ;;  %v2665_v4 = vpop.f32.mrb[42].mxu0  ;;  %v4018_v27 = vsel %vm3762_vm7, %v5749_v53, %v3890_v10  ;;  %v4105_v13 = vpack.c.bf16 %v4017_v0, %v4013_v39 }
 0x2a3   :  { %v5751_v51 = vadd.f32 %v5750_v9, %v8045_v32  ;;  %v5754_v36 = vadd.f32 %v2665_v4, %v7645_v45  ;;  %v2667_v1 = vpop.f32.mrb[43].mxu0  ;;  %v4106_v38 = vpack.c.bf16 %v4018_v27, %v4014_v20  ;;  %v8053_v20 = vld [vmem:[#allocation33_spill] sm:$0xff] }
 0x2a4   :  { %v5753_v5 = vadd.f32 %v5752_v34, %v8046_v62  ;;  %v5756_v58 = vadd.f32 %v2667_v1, %v7649_v56 }
 0x2a5   :  { %v3893_v41 = vmul.f32 0.2, %v5751_v51  ;;  %v5755_v26 = vadd.f32 %v5754_v36, %v8047_v12  ;;  %3615 = vmatmul.mubr.bf16.gmra.mrb[100].mxu1 %v6932_v46  ;;  %4651 = vmatprep.mubr.bf16.mxu0 %v4106_v38  ;;  %vm3765_vm8 = vcmp.gt.f32.partialorder %v5751_v51, 0.0  ;;  %v8054_v36 = vld [vmem:[#allocation34_spill] sm:$0xff] }
 0x2a6   :  { %v3894_v19 = vmul.f32 0.2, %v5753_v5  ;;  %v5757_v21 = vadd.f32 %v5756_v58, %v8048_v63  ;;  %4652 = vmatmul.mubr.bf16.gmra.mrb[100].mxu0 %v4105_v13  ;;  %3624 = vmatprep.mubr.bf16.mxu1 %v8032_v29  ;;  %vm3766_vm9 = vcmp.gt.f32.partialorder %v5753_v5, 0.0 }
 0x2a7   :  { %vm3769_vm10 = vcmp.gt.f32.partialorder %v5755_v26, 0.0  ;;  %v3897_v50 = vmul.f32 0.2, %v5755_v26  ;;  %v4021_v54 = vsel %vm3765_vm8, %v5751_v51, %v3893_v41  ;;  %v6934_v41 = vld [vmem:[#allocation3 + $0x280] ss:$28 sps:$4 sm:$0xff]  }
 0x2a8   :  { %vm3770_vm11 = vcmp.gt.f32.partialorder %v5757_v21, 0.0  ;;  %v3898_v22 = vmul.f32 0.2, %v5757_v21  ;;  %v2671_v44 = vpop.f32.mrb[44].mxu0  ;;  %v4022_v23 = vsel %vm3766_vm9, %v5753_v5, %v3894_v19  ;;  %v8055_v5 = vld [vmem:[#allocation35_spill] sm:$0xff] }
 0x2a9   :  { %v5758_v8 = vadd.f32 %v2671_v44, %v7645_v45  ;;  %v2673_v31 = vpop.f32.mrb[45].mxu0  ;;  %v4025_v48 = vsel %vm3769_vm10, %v5755_v26, %v3897_v50  ;;  %v8056_v26 = vld [vmem:[#allocation36_spill] sm:$0xff] }
 0x2aa   :  { %v5760_v14 = vadd.f32 %v2673_v31, %v7649_v56  ;;  %v2675_v25 = vpop.f32.mrb[46].mxu0  ;;  %v4026_v17 = vsel %vm3770_vm11, %v5757_v21, %v3898_v22  ;;  %v4109_v18 = vpack.c.bf16 %v4025_v48, %v4021_v54  ;;  %v6914_v19 = vld [vmem:[#allocation8 + $0x1f4] ss:$8 sps:$4 sm:$0xff]   ;;  %v6912_v21 = vld [vmem:[#allocation8 + $0x1f0] ss:$8 sps:$4 sm:$0xff]  }
 0x2ab   :  { %v5759_v35 = vadd.f32 %v5758_v8, %v8049_v24  ;;  %v5762_v43 = vadd.f32 %v2675_v25, %v7645_v45  ;;  %v2677_v33 = vpop.f32.mrb[47].mxu0  ;;  %v4110_v6 = vpack.c.bf16 %v4026_v17, %v4022_v23  ;;  %4752 = vmatprep.subr.bf16.mxu0 %v6914_v19 }
 0x2ac   :  { %v5761_v2 = vadd.f32 %v5760_v14, %v8050_v59  ;;  %v5764_v3 = vadd.f32 %v2677_v33, %v7649_v56  ;;  %4753 = vmatpush1.bf16.msra.mxu0 %v6912_v21 }
 0x2ad   :  { %v3901_v57 = vmul.f32 0.2, %v5759_v35  ;;  %v5763_v40 = vadd.f32 %v5762_v43, %v8051_v37  ;;  %3625 = vmatmul.mubr.bf16.gmra.mrb[104].mxu1 %v6933_v61  ;;  %4661 = vmatprep.mubr.bf16.mxu0 %v4110_v6  ;;  %vm3773_vm12 = vcmp.gt.f32.partialorder %v5759_v35, 0.0  ;;  %v8058_v6 = vld [vmem:[#allocation38_spill] sm:$0xff] }
 0x2ae   :  { %v3902_v42 = vmul.f32 0.2, %v5761_v2  ;;  %v5765_v49 = vadd.f32 %v5764_v3, %v8052_v30  ;;  %4662 = vmatmul.mubr.bf16.gmra.mrb[104].mxu0 %v4109_v18  ;;  %3634 = vmatprep.mubr.bf16.mxu1 %v8032_v29  ;;  %vm3774_vm13 = vcmp.gt.f32.partialorder %v5761_v2, 0.0  ;;  %v8057_v18 = vld [vmem:[#allocation37_spill] sm:$0xff] }
 0x2af   :  { %vm3777_vm14 = vcmp.gt.f32.partialorder %v5763_v40, 0.0  ;;  %v3905_v7 = vmul.f32 0.2, %v5763_v40  ;;  %v4029_v16 = vsel %vm3773_vm12, %v5759_v35, %v3901_v57  ;;  %v8059_v57 = vld [vmem:[#allocation39_spill] sm:$0xff] }
 0x2b0   :  { %vm3778_vm15 = vcmp.gt.f32.partialorder %v5765_v49, 0.0  ;;  %v3906_v52 = vmul.f32 0.2, %v5765_v49  ;;  %v2681_v53 = vpop.f32.mrb[48].mxu0  ;;  %v4030_v0 = vsel %vm3774_vm13, %v5761_v2, %v3902_v42  ;;  %v8060_v42 = vld [vmem:[#allocation40_spill] sm:$0xff] }
 0x2b1   :  { %v5766_v11 = vadd.f32 %v2681_v53, %v7645_v45  ;;  %v2683_v10 = vpop.f32.mrb[49].mxu0  ;;  %v4033_v9 = vsel %vm3777_vm14, %v5763_v40, %v3905_v7  ;;  %v6935_v40 = vld [vmem:[#allocation3 + $0x2b8] ss:$28 sps:$4 sm:$0xff]  }
 0x2b2   :  { %v5768_v55 = vadd.f32 %v2683_v10, %v7649_v56  ;;  %v2685_v39 = vpop.f32.mrb[50].mxu0  ;;  %v4034_v34 = vsel %vm3778_vm15, %v5765_v49, %v3906_v52  ;;  %v4113_v4 = vpack.c.bf16 %v4033_v9, %v4029_v16 }
 0x2b3   :  { %v5767_v27 = vadd.f32 %v5766_v11, %v8053_v20  ;;  %v5770_v13 = vadd.f32 %v2685_v39, %v7645_v45  ;;  %v2687_v32 = vpop.f32.mrb[51].mxu0  ;;  %v4114_v51 = vpack.c.bf16 %v4034_v34, %v4030_v0 }
 0x2b4   :  { %v5769_v1 = vadd.f32 %v5768_v55, %v8054_v36  ;;  %v5772_v38 = vadd.f32 %v2687_v32, %v7649_v56 }
 0x2b5   :  { %v3909_v62 = vmul.f32 0.2, %v5767_v27  ;;  %v5771_v58 = vadd.f32 %v5770_v13, %v8055_v5  ;;  %3635 = vmatmul.mubr.bf16.gmra.mrb[108].mxu1 %v6934_v41  ;;  %4671 = vmatprep.mubr.bf16.mxu0 %v4114_v51  ;;  %vm3781_vm0 = vcmp.gt.f32.partialorder %v5767_v27, 0.0  ;;  %v8062_v51 = vld [vmem:[#allocation42_spill] sm:$0xff] }
 0x2b6   :  { %v3910_v12 = vmul.f32 0.2, %v5769_v1  ;;  %v5773_v46 = vadd.f32 %v5772_v38, %v8056_v26  ;;  %4672 = vmatmul.mubr.bf16.gmra.mrb[108].mxu0 %v4113_v4  ;;  %3644 = vmatprep.mubr.bf16.mxu1 %v8032_v29  ;;  %vm3782_vm1 = vcmp.gt.f32.partialorder %v5769_v1, 0.0  ;;  %v8061_v4 = vld [vmem:[#allocation41_spill] sm:$0xff] }
 0x2b7   :  { %vm3785_vm2 = vcmp.gt.f32.partialorder %v5771_v58, 0.0  ;;  %v3913_v63 = vmul.f32 0.2, %v5771_v58  ;;  %v4037_v31 = vsel %vm3781_vm0, %v5767_v27, %v3909_v62  ;;  %v8063_v62 = vld [vmem:[#allocation43_spill] sm:$0xff] }
 0x2b8   :  { %vm3786_vm3 = vcmp.gt.f32.partialorder %v5773_v46, 0.0  ;;  %v3914_v50 = vmul.f32 0.2, %v5773_v46  ;;  %v2691_v22 = vpop.f32.mrb[52].mxu0  ;;  %v4038_v25 = vsel %vm3782_vm1, %v5769_v1, %v3910_v12  ;;  %v8064_v12 = vld [vmem:[#allocation44_spill] sm:$0xff] }
 0x2b9   :  { %v5774_v44 = vadd.f32 %v2691_v22, %v7645_v45  ;;  %v2693_v8 = vpop.f32.mrb[53].mxu0  ;;  %v4041_v54 = vsel %vm3785_vm2, %v5771_v58, %v3913_v63  ;;  %v6936_v58 = vld [vmem:[#allocation3 + $0x2f0] ss:$28 sps:$4 sm:$0xff]  }
 0x2ba   :  { %v5776_v48 = vadd.f32 %v2693_v8, %v7649_v56  ;;  %v2695_v14 = vpop.f32.mrb[54].mxu0  ;;  %v4042_v23 = vsel %vm3786_vm3, %v5773_v46, %v3914_v50  ;;  %v4117_v17 = vpack.c.bf16 %v4041_v54, %v4037_v31 }
 0x2bb   :  { %v5775_v24 = vadd.f32 %v5774_v44, %v8057_v18  ;;  %v5778_v35 = vadd.f32 %v2695_v14, %v7645_v45  ;;  %v2697_v43 = vpop.f32.mrb[55].mxu0  ;;  %v4118_v33 = vpack.c.bf16 %v4042_v23, %v4038_v25  ;;  %v8065_v25 = vld [vmem:[#allocation45_spill] sm:$0xff] }
 0x2bc   :  { %v5777_v59 = vadd.f32 %v5776_v48, %v8058_v6  ;;  %v5780_v2 = vadd.f32 %v2697_v43, %v7649_v56 }
 0x2bd   :  { %v3917_v3 = vmul.f32 0.2, %v5775_v24  ;;  %v5779_v37 = vadd.f32 %v5778_v35, %v8059_v57  ;;  %3645 = vmatmul.mubr.bf16.gmra.mrb[112].mxu1 %v6935_v40  ;;  %4681 = vmatprep.mubr.bf16.mxu0 %v4118_v33  ;;  %vm3789_vm4 = vcmp.gt.f32.partialorder %v5775_v24, 0.0  ;;  %v8066_v35 = vld [vmem:[#allocation46_spill] sm:$0xff] }
 0x2be   :  { %v3918_v61 = vmul.f32 0.2, %v5777_v59  ;;  %v5781_v30 = vadd.f32 %v5780_v2, %v8060_v42  ;;  %4682 = vmatmul.mubr.bf16.gmra.mrb[112].mxu0 %v4117_v17  ;;  %3654 = vmatprep.mubr.bf16.mxu1 %v8032_v29  ;;  %vm3790_vm5 = vcmp.gt.f32.partialorder %v5777_v59, 0.0 }
 0x2bf   :  { %vm3793_vm6 = vcmp.gt.f32.partialorder %v5779_v37, 0.0  ;;  %v3921_v49 = vmul.f32 0.2, %v5779_v37  ;;  %v4045_v10 = vsel %vm3789_vm4, %v5775_v24, %v3917_v3  ;;  %v6937_v3 = vld [vmem:[#allocation3 + $0x328] ss:$28 sps:$4 sm:$0xff]  }
 0x2c0   :  { %vm3794_vm7 = vcmp.gt.f32.partialorder %v5781_v30, 0.0  ;;  %v3922_v7 = vmul.f32 0.2, %v5781_v30  ;;  %v2701_v52 = vpop.f32.mrb[56].mxu0  ;;  %v4046_v39 = vsel %vm3790_vm5, %v5777_v59, %v3918_v61  ;;  %v8067_v59 = vld [vmem:[#allocation47_spill] sm:$0xff] }
 0x2c1   :  { %v5782_v53 = vadd.f32 %v2701_v52, %v7645_v45  ;;  %v2703_v11 = vpop.f32.mrb[57].mxu0  ;;  %v4049_v16 = vsel %vm3793_vm6, %v5779_v37, %v3921_v49  ;;  %v8068_v37 = vld [vmem:[#allocation48_spill] sm:$0xff] }
 0x2c2   :  { %v5784_v9 = vadd.f32 %v2703_v11, %v7649_v56  ;;  %v2705_v55 = vpop.f32.mrb[58].mxu0  ;;  %v4050_v0 = vsel %vm3794_vm7, %v5781_v30, %v3922_v7  ;;  %v4121_v34 = vpack.c.bf16 %v4049_v16, %v4045_v10  ;;  %v435_v11 = vsub.s32 2, %v7635_v28 }
 0x2c3   :  { %v5783_v20 = vadd.f32 %v5782_v53, %v8061_v4  ;;  %v5786_v27 = vadd.f32 %v2705_v55, %v7645_v45  ;;  %v2707_v13 = vpop.f32.mrb[59].mxu0  ;;  %v4122_v32 = vpack.c.bf16 %v4050_v0, %v4046_v39  ;;  %v6938_v53 = vld [vmem:[#allocation3 + $0x360] ss:$28 sps:$4 sm:$0xff]   ;;  %v439_v10 = vsub.s32 3, %v7635_v28 }
 0x2c4   :  { %v5785_v36 = vadd.f32 %v5784_v9, %v8062_v51  ;;  %v5788_v1 = vadd.f32 %v2707_v13, %v7649_v56 }
 0x2c5   :  { %v3925_v38 = vmul.f32 0.2, %v5783_v20  ;;  %v5787_v5 = vadd.f32 %v5786_v27, %v8063_v62  ;;  %3655 = vmatmul.mubr.bf16.gmra.mrb[116].mxu1 %v6936_v58  ;;  %4691 = vmatprep.mubr.bf16.mxu0 %v4122_v32  ;;  %vm3797_vm8 = vcmp.gt.f32.partialorder %v5783_v20, 0.0 }
 0x2c6   :  { %v3926_v41 = vmul.f32 0.2, %v5785_v36  ;;  %v5789_v26 = vadd.f32 %v5788_v1, %v8064_v12  ;;  %4692 = vmatmul.mubr.bf16.gmra.mrb[116].mxu0 %v4121_v34  ;;  %3664 = vmatprep.mubr.bf16.mxu1 %v8032_v29  ;;  %vm3798_vm9 = vcmp.gt.f32.partialorder %v5785_v36, 0.0 }
 0x2c7   :  { %vm3801_vm10 = vcmp.gt.f32.partialorder %v5787_v5, 0.0  ;;  %v3929_v46 = vmul.f32 0.2, %v5787_v5  ;;  %v4053_v22 = vsel %vm3797_vm8, %v5783_v20, %v3925_v38 }
 0x2c8   :  { %vm3802_vm11 = vcmp.gt.f32.partialorder %v5789_v26, 0.0  ;;  %v3930_v19 = vmul.f32 0.2, %v5789_v26  ;;  %v2711_v63 = vpop.f32.mrb[60].mxu0  ;;  %v4054_v54 = vsel %vm3798_vm9, %v5785_v36, %v3926_v41 }
 0x2c9   :  { %v5790_v21 = vadd.f32 %v2711_v63, %v7645_v45  ;;  %v2713_v50 = vpop.f32.mrb[61].mxu0  ;;  %v4057_v44 = vsel %vm3801_vm10, %v5787_v5, %v3929_v46 }
 0x2ca   :  { %v5792_v8 = vadd.f32 %v2713_v50, %v7649_v56  ;;  %v2715_v31 = vpop.f32.mrb[62].mxu0  ;;  %v4058_v48 = vsel %vm3802_vm11, %v5789_v26, %v3930_v19  ;;  %v4125_v14 = vpack.c.bf16 %v4057_v44, %v4053_v22 }
 0x2cb   :  { %v5791_v23 = vadd.f32 %v5790_v21, %v8065_v25  ;;  %v5794_v17 = vadd.f32 %v2715_v31, %v7645_v45  ;;  %v2717_v18 = vpop.f32.mrb[63].mxu0  ;;  %v4126_v24 = vpack.c.bf16 %v4058_v48, %v4054_v54 }
 0x2cc   :  { %v5793_v43 = vadd.f32 %v5792_v8, %v8066_v35  ;;  %v5796_v33 = vadd.f32 %v2717_v18, %v7649_v56 }
 0x2cd   :  { %v3933_v6 = vmul.f32 0.2, %v5791_v23  ;;  %v5795_v2 = vadd.f32 %v5794_v17, %v8067_v59  ;;  %3665 = vmatmul.mubr.bf16.gmra.mrb[120].mxu1 %v6937_v3  ;;  %4701 = vmatprep.mubr.bf16.mxu0 %v4126_v24  ;;  %vm3805_vm12 = vcmp.gt.f32.partialorder %v5791_v23, 0.0 }
 0x2ce   :  { %v3934_v57 = vmul.f32 0.2, %v5793_v43  ;;  %v5797_v40 = vadd.f32 %v5796_v33, %v8068_v37  ;;  %4702 = vmatmul.mubr.bf16.gmra.mrb[120].mxu0 %v4125_v14  ;;  %3674 = vmatprep.mubr.bf16.mxu1 %v8032_v29  ;;  %vm3806_vm13 = vcmp.gt.f32.partialorder %v5793_v43, 0.0  ;;  %v6939_v29 = vld [vmem:[%s7988_s2] sm:$0xf] }
 0x2cf   :  { %vm3809_vm14 = vcmp.gt.f32.partialorder %v5795_v2, 0.0  ;;  %v3937_v45 = vmul.f32 0.2, %v5795_v2  ;;  %v4061_v42 = vsel %vm3805_vm12, %v5791_v23, %v3933_v6  ;;  %v7815_v16 = vrot.slane %v6939_v29, %v435_v11 }
 0x2d0   :  { %vm3810_vm15 = vcmp.gt.f32.partialorder %v5797_v40, 0.0  ;;  %v3938_v61 = vmul.f32 0.2, %v5797_v40  ;;  %v4062_v30 = vsel %vm3806_vm13, %v5793_v43, %v3934_v57  ;;  %v7817_v9 = vrot.slane %v6939_v29, %v439_v10 }
 0x2d1   :  { %v4065_v56 = vsel %vm3809_vm14, %v5795_v2, %v3937_v45 }
 0x2d2   :  { %v4066_v49 = vsel %vm3810_vm15, %v5797_v40, %v3938_v61  ;;  %v4129_v7 = vpack.c.bf16 %v4065_v56, %v4061_v42 }
 0x2d3   :  { %v4130_v52 = vpack.c.bf16 %v4066_v49, %v4062_v30 }
 0x2d5   :  { %3675 = vmatmul.mubr.bf16.gmra.mrb[124].mxu1 %v6938_v53  ;;  %4711 = vmatprep.mubr.bf16.mxu0 %v4130_v52 }
 0x2d6   :  { %4712 = vmatmul.mubr.bf16.gmra.mrb[124].mxu0 %v4129_v7 }
 0x330   :  { %v3526_v55 = vpop.f32.mrb[64].mxu1 }
 0x331   :  { %v5798_v39 = vadd.f32 %v3526_v55, %v7815_v16  ;;  %v3528_v0 = vpop.f32.mrb[65].mxu1 }
 0x332   :  { %v5799_v34 = vadd.f32 %v3528_v0, %v7817_v9  ;;  %v3530_v4 = vpop.f32.mrb[66].mxu1 }
 0x333   :  { %v3815_v20 = vmul.f32 0.2, %v5798_v39  ;;  %v5800_v27 = vadd.f32 %v3530_v4, %v7815_v16  ;;  %v3532_v13 = vpop.f32.mrb[67].mxu1  ;;  %vm3687_vm0 = vcmp.gt.f32.partialorder %v5798_v39, 0.0 }
 0x334   :  { %v3816_v32 = vmul.f32 0.2, %v5799_v34  ;;  %v5801_v51 = vadd.f32 %v3532_v13, %v7817_v9  ;;  %vm3688_vm1 = vcmp.gt.f32.partialorder %v5799_v34, 0.0 }
 0x335   :  { %vm3691_vm2 = vcmp.gt.f32.partialorder %v5800_v27, 0.0  ;;  %v3819_v36 = vmul.f32 0.2, %v5800_v27  ;;  %v3943_v38 = vsel %vm3687_vm0, %v5798_v39, %v3815_v20 }
 0x336   :  { %vm3692_vm3 = vcmp.gt.f32.partialorder %v5801_v51, 0.0  ;;  %v3820_v1 = vmul.f32 0.2, %v5801_v51  ;;  %v3944_v41 = vsel %vm3688_vm1, %v5799_v34, %v3816_v32 }
 0x337   :  { %v3947_v62 = vsel %vm3691_vm2, %v5800_v27, %v3819_v36 }
 0x338   :  { %v4071_v5 = vpack.c.bf16 %v3947_v62, %v3943_v38  ;;  %v3536_v58 = vpop.f32.mrb[68].mxu1  ;;  %v3948_v12 = vsel %vm3692_vm3, %v5801_v51, %v3820_v1 }
 0x339   :  { %v5802_v26 = vadd.f32 %v3536_v58, %v7815_v16  ;;  %v3538_v46 = vpop.f32.mrb[69].mxu1  ;;  %v4072_v19 = vpack.c.bf16 %v3948_v12, %v3944_v41 }
 0x33a   :  { %v5803_v63 = vadd.f32 %v3538_v46, %v7817_v9  ;;  %v3540_v21 = vpop.f32.mrb[70].mxu1 }
 0x33b   :  { %v3823_v50 = vmul.f32 0.2, %v5802_v26  ;;  %v5804_v22 = vadd.f32 %v3540_v21, %v7815_v16  ;;  %v3542_v44 = vpop.f32.mrb[71].mxu1  ;;  %4754 = vmatprep.mubr.bf16.mxu0 %v4072_v19  ;;  %vm3695_vm4 = vcmp.gt.f32.partialorder %v5802_v26, 0.0 }
 0x33c   :  { %v3824_v8 = vmul.f32 0.2, %v5803_v63  ;;  %v5805_v31 = vadd.f32 %v3542_v44, %v7817_v9  ;;  %4755 = vmatmul.mubr.bf16.vlgmr.msra.gmra.mrb[64].mxu0 %v4071_v5  ;;  %vm3696_vm5 = vcmp.gt.f32.partialorder %v5803_v63, 0.0 }
 0x33d   :  { %vm3699_vm6 = vcmp.gt.f32.partialorder %v5804_v22, 0.0  ;;  %v3827_v54 = vmul.f32 0.2, %v5804_v22  ;;  %v3951_v14 = vsel %vm3695_vm4, %v5802_v26, %v3823_v50 }
 0x33e   :  { %vm3700_vm7 = vcmp.gt.f32.partialorder %v5805_v31, 0.0  ;;  %v3828_v48 = vmul.f32 0.2, %v5805_v31  ;;  %v3952_v17 = vsel %vm3696_vm5, %v5803_v63, %v3824_v8 }
 0x33f   :  { %v3955_v25 = vsel %vm3699_vm6, %v5804_v22, %v3827_v54 }
 0x340   :  { %v3546_v23 = vpop.f32.mrb[72].mxu1  ;;  %v3956_v18 = vsel %vm3700_vm7, %v5805_v31, %v3828_v48  ;;  %v4075_v24 = vpack.c.bf16 %v3955_v25, %v3951_v14 }
 0x341   :  { %v5806_v35 = vadd.f32 %v3546_v23, %v7815_v16  ;;  %v3548_v43 = vpop.f32.mrb[73].mxu1  ;;  %v4076_v33 = vpack.c.bf16 %v3956_v18, %v3952_v17 }
 0x342   :  { %v5807_v6 = vadd.f32 %v3548_v43, %v7817_v9  ;;  %v3550_v59 = vpop.f32.mrb[74].mxu1 }
 0x343   :  { %v3831_v2 = vmul.f32 0.2, %v5806_v35  ;;  %v5808_v3 = vadd.f32 %v3550_v59, %v7815_v16  ;;  %v3552_v57 = vpop.f32.mrb[75].mxu1  ;;  %4764 = vmatprep.mubr.bf16.mxu0 %v4076_v33  ;;  %vm3703_vm8 = vcmp.gt.f32.partialorder %v5806_v35, 0.0 }
 0x344   :  { %v3832_v37 = vmul.f32 0.2, %v5807_v6  ;;  %v5809_v40 = vadd.f32 %v3552_v57, %v7817_v9  ;;  %4765 = vmatmul.mubr.bf16.gmra.mrb[68].mxu0 %v4075_v24  ;;  %vm3704_vm9 = vcmp.gt.f32.partialorder %v5807_v6, 0.0 }
 0x345   :  { %vm3707_vm10 = vcmp.gt.f32.partialorder %v5808_v3, 0.0  ;;  %v3835_v45 = vmul.f32 0.2, %v5808_v3  ;;  %v3959_v42 = vsel %vm3703_vm8, %v5806_v35, %v3831_v2 }
 0x346   :  { %vm3708_vm11 = vcmp.gt.f32.partialorder %v5809_v40, 0.0  ;;  %v3836_v61 = vmul.f32 0.2, %v5809_v40  ;;  %v3960_v49 = vsel %vm3704_vm9, %v5807_v6, %v3832_v37 }
 0x347   :  { %v3963_v56 = vsel %vm3707_vm10, %v5808_v3, %v3835_v45 }
 0x348   :  { %v3556_v30 = vpop.f32.mrb[76].mxu1  ;;  %v3964_v7 = vsel %vm3708_vm11, %v5809_v40, %v3836_v61  ;;  %v4079_v52 = vpack.c.bf16 %v3963_v56, %v3959_v42 }
 0x349   :  { %v5810_v53 = vadd.f32 %v3556_v30, %v7815_v16  ;;  %v3558_v11 = vpop.f32.mrb[77].mxu1  ;;  %v4080_v10 = vpack.c.bf16 %v3964_v7, %v3960_v49 }
 0x34a   :  { %v5811_v29 = vadd.f32 %v3558_v11, %v7817_v9  ;;  %v3560_v55 = vpop.f32.mrb[78].mxu1 }
 0x34b   :  { %v3839_v39 = vmul.f32 0.2, %v5810_v53  ;;  %v5812_v0 = vadd.f32 %v3560_v55, %v7815_v16  ;;  %v3562_v34 = vpop.f32.mrb[79].mxu1  ;;  %4774 = vmatprep.mubr.bf16.mxu0 %v4080_v10  ;;  %vm3711_vm12 = vcmp.gt.f32.partialorder %v5810_v53, 0.0 }
 0x34c   :  { %v3840_v4 = vmul.f32 0.2, %v5811_v29  ;;  %v5813_v20 = vadd.f32 %v3562_v34, %v7817_v9  ;;  %4775 = vmatmul.mubr.bf16.gmra.mrb[72].mxu0 %v4079_v52  ;;  %vm3712_vm13 = vcmp.gt.f32.partialorder %v5811_v29, 0.0 }
 0x34d   :  { %vm3715_vm14 = vcmp.gt.f32.partialorder %v5812_v0, 0.0  ;;  %v3843_v27 = vmul.f32 0.2, %v5812_v0  ;;  %v3967_v32 = vsel %vm3711_vm12, %v5810_v53, %v3839_v39 }
 0x34e   :  { %vm3716_vm15 = vcmp.gt.f32.partialorder %v5813_v20, 0.0  ;;  %v3844_v13 = vmul.f32 0.2, %v5813_v20  ;;  %v3968_v1 = vsel %vm3712_vm13, %v5811_v29, %v3840_v4 }
 0x34f   :  { %v3971_v51 = vsel %vm3715_vm14, %v5812_v0, %v3843_v27 }
 0x350   :  { %v3566_v36 = vpop.f32.mrb[80].mxu1  ;;  %v3972_v38 = vsel %vm3716_vm15, %v5813_v20, %v3844_v13  ;;  %v4083_v62 = vpack.c.bf16 %v3971_v51, %v3967_v32 }
 0x351   :  { %v5814_v5 = vadd.f32 %v3566_v36, %v7815_v16  ;;  %v3568_v58 = vpop.f32.mrb[81].mxu1  ;;  %v4084_v41 = vpack.c.bf16 %v3972_v38, %v3968_v1 }
 0x352   :  { %v5815_v12 = vadd.f32 %v3568_v58, %v7817_v9  ;;  %v3570_v26 = vpop.f32.mrb[82].mxu1 }
 0x353   :  { %v3847_v46 = vmul.f32 0.2, %v5814_v5  ;;  %v5816_v19 = vadd.f32 %v3570_v26, %v7815_v16  ;;  %v3572_v63 = vpop.f32.mrb[83].mxu1  ;;  %4784 = vmatprep.mubr.bf16.mxu0 %v4084_v41  ;;  %vm3719_vm0 = vcmp.gt.f32.partialorder %v5814_v5, 0.0 }
 0x354   :  { %v3848_v21 = vmul.f32 0.2, %v5815_v12  ;;  %v5817_v50 = vadd.f32 %v3572_v63, %v7817_v9  ;;  %4785 = vmatmul.mubr.bf16.gmra.mrb[76].mxu0 %v4083_v62  ;;  %vm3720_vm1 = vcmp.gt.f32.partialorder %v5815_v12, 0.0 }
 0x355   :  { %vm3723_vm2 = vcmp.gt.f32.partialorder %v5816_v19, 0.0  ;;  %v3851_v22 = vmul.f32 0.2, %v5816_v19  ;;  %v3975_v8 = vsel %vm3719_vm0, %v5814_v5, %v3847_v46 }
 0x356   :  { %vm3724_vm3 = vcmp.gt.f32.partialorder %v5817_v50, 0.0  ;;  %v3852_v44 = vmul.f32 0.2, %v5817_v50  ;;  %v3976_v48 = vsel %vm3720_vm1, %v5815_v12, %v3848_v21 }
 0x357   :  { %v3979_v31 = vsel %vm3723_vm2, %v5816_v19, %v3851_v22 }
 0x358   :  { %v3576_v54 = vpop.f32.mrb[84].mxu1  ;;  %v3980_v14 = vsel %vm3724_vm3, %v5817_v50, %v3852_v44  ;;  %v4087_v25 = vpack.c.bf16 %v3979_v31, %v3975_v8 }
 0x359   :  { %v5818_v23 = vadd.f32 %v3576_v54, %v7815_v16  ;;  %v3578_v17 = vpop.f32.mrb[85].mxu1  ;;  %v4088_v18 = vpack.c.bf16 %v3980_v14, %v3976_v48 }
 0x35a   :  { %v5819_v24 = vadd.f32 %v3578_v17, %v7817_v9  ;;  %v3580_v35 = vpop.f32.mrb[86].mxu1 }
 0x35b   :  { %v3855_v43 = vmul.f32 0.2, %v5818_v23  ;;  %v5820_v33 = vadd.f32 %v3580_v35, %v7815_v16  ;;  %v3582_v6 = vpop.f32.mrb[87].mxu1  ;;  %4794 = vmatprep.mubr.bf16.mxu0 %v4088_v18  ;;  %vm3727_vm4 = vcmp.gt.f32.partialorder %v5818_v23, 0.0 }
 0x35c   :  { %v3856_v59 = vmul.f32 0.2, %v5819_v24  ;;  %v5821_v2 = vadd.f32 %v3582_v6, %v7817_v9  ;;  %4795 = vmatmul.mubr.bf16.gmra.mrb[80].mxu0 %v4087_v25  ;;  %vm3728_vm5 = vcmp.gt.f32.partialorder %v5819_v24, 0.0 }
 0x35d   :  { %vm3731_vm6 = vcmp.gt.f32.partialorder %v5820_v33, 0.0  ;;  %v3859_v3 = vmul.f32 0.2, %v5820_v33  ;;  %v3983_v37 = vsel %vm3727_vm4, %v5818_v23, %v3855_v43 }
 0x35e   :  { %vm3732_vm7 = vcmp.gt.f32.partialorder %v5821_v2, 0.0  ;;  %v3860_v57 = vmul.f32 0.2, %v5821_v2  ;;  %v3984_v61 = vsel %vm3728_vm5, %v5819_v24, %v3856_v59 }
 0x35f   :  { %v3987_v40 = vsel %vm3731_vm6, %v5820_v33, %v3859_v3 }
 0x360   :  { %v3586_v45 = vpop.f32.mrb[88].mxu1  ;;  %v3988_v42 = vsel %vm3732_vm7, %v5821_v2, %v3860_v57  ;;  %v4091_v56 = vpack.c.bf16 %v3987_v40, %v3983_v37 }
 0x361   :  { %v5822_v30 = vadd.f32 %v3586_v45, %v7815_v16  ;;  %v3588_v49 = vpop.f32.mrb[89].mxu1  ;;  %v4092_v7 = vpack.c.bf16 %v3988_v42, %v3984_v61 }
 0x362   :  { %v5823_v52 = vadd.f32 %v3588_v49, %v7817_v9  ;;  %v3590_v53 = vpop.f32.mrb[90].mxu1 }
 0x363   :  { %v3863_v11 = vmul.f32 0.2, %v5822_v30  ;;  %v5824_v10 = vadd.f32 %v3590_v53, %v7815_v16  ;;  %v3592_v29 = vpop.f32.mrb[91].mxu1  ;;  %4804 = vmatprep.mubr.bf16.mxu0 %v4092_v7  ;;  %vm3735_vm8 = vcmp.gt.f32.partialorder %v5822_v30, 0.0 }
 0x364   :  { %v3864_v55 = vmul.f32 0.2, %v5823_v52  ;;  %v5825_v39 = vadd.f32 %v3592_v29, %v7817_v9  ;;  %4805 = vmatmul.mubr.bf16.gmra.mrb[84].mxu0 %v4091_v56  ;;  %vm3736_vm9 = vcmp.gt.f32.partialorder %v5823_v52, 0.0 }
 0x365   :  { %vm3739_vm10 = vcmp.gt.f32.partialorder %v5824_v10, 0.0  ;;  %v3867_v0 = vmul.f32 0.2, %v5824_v10  ;;  %v3991_v4 = vsel %vm3735_vm8, %v5822_v30, %v3863_v11 }
 0x366   :  { %vm3740_vm11 = vcmp.gt.f32.partialorder %v5825_v39, 0.0  ;;  %v3868_v34 = vmul.f32 0.2, %v5825_v39  ;;  %v3992_v13 = vsel %vm3736_vm9, %v5823_v52, %v3864_v55 }
 0x367   :  { %v3995_v20 = vsel %vm3739_vm10, %v5824_v10, %v3867_v0 }
 0x368   :  { %v3596_v27 = vpop.f32.mrb[92].mxu1  ;;  %v3996_v32 = vsel %vm3740_vm11, %v5825_v39, %v3868_v34  ;;  %v4095_v51 = vpack.c.bf16 %v3995_v20, %v3991_v4 }
 0x369   :  { %v5826_v36 = vadd.f32 %v3596_v27, %v7815_v16  ;;  %v3598_v1 = vpop.f32.mrb[93].mxu1  ;;  %v4096_v38 = vpack.c.bf16 %v3996_v32, %v3992_v13 }
 0x36a   :  { %v5827_v62 = vadd.f32 %v3598_v1, %v7817_v9  ;;  %v3600_v5 = vpop.f32.mrb[94].mxu1 }
 0x36b   :  { %v3871_v58 = vmul.f32 0.2, %v5826_v36  ;;  %v5828_v41 = vadd.f32 %v3600_v5, %v7815_v16  ;;  %v3602_v12 = vpop.f32.mrb[95].mxu1  ;;  %4814 = vmatprep.mubr.bf16.mxu0 %v4096_v38  ;;  %vm3743_vm12 = vcmp.gt.f32.partialorder %v5826_v36, 0.0 }
 0x36c   :  { %v3872_v26 = vmul.f32 0.2, %v5827_v62  ;;  %v5829_v46 = vadd.f32 %v3602_v12, %v7817_v9  ;;  %4815 = vmatmul.mubr.bf16.gmra.mrb[88].mxu0 %v4095_v51  ;;  %vm3744_vm13 = vcmp.gt.f32.partialorder %v5827_v62, 0.0 }
 0x36d   :  { %vm3747_vm14 = vcmp.gt.f32.partialorder %v5828_v41, 0.0  ;;  %v3875_v19 = vmul.f32 0.2, %v5828_v41  ;;  %v3999_v21 = vsel %vm3743_vm12, %v5826_v36, %v3871_v58 }
 0x36e   :  { %vm3748_vm15 = vcmp.gt.f32.partialorder %v5829_v46, 0.0  ;;  %v3876_v63 = vmul.f32 0.2, %v5829_v46  ;;  %v4000_v44 = vsel %vm3744_vm13, %v5827_v62, %v3872_v26 }
 0x36f   :  { %v4003_v50 = vsel %vm3747_vm14, %v5828_v41, %v3875_v19 }
 0x370   :  { %v3606_v22 = vpop.f32.mrb[96].mxu1  ;;  %v4004_v8 = vsel %vm3748_vm15, %v5829_v46, %v3876_v63  ;;  %v4099_v31 = vpack.c.bf16 %v4003_v50, %v3999_v21 }
 0x371   :  { %v5830_v54 = vadd.f32 %v3606_v22, %v7815_v16  ;;  %v3608_v48 = vpop.f32.mrb[97].mxu1  ;;  %v4100_v14 = vpack.c.bf16 %v4004_v8, %v4000_v44 }
 0x372   :  { %v5831_v25 = vadd.f32 %v3608_v48, %v7817_v9  ;;  %v3610_v23 = vpop.f32.mrb[98].mxu1 }
 0x373   :  { %v3879_v17 = vmul.f32 0.2, %v5830_v54  ;;  %v5832_v18 = vadd.f32 %v3610_v23, %v7815_v16  ;;  %v3612_v24 = vpop.f32.mrb[99].mxu1  ;;  %4824 = vmatprep.mubr.bf16.mxu0 %v4100_v14  ;;  %vm3751_vm0 = vcmp.gt.f32.partialorder %v5830_v54, 0.0 }
 0x374   :  { %v3880_v35 = vmul.f32 0.2, %v5831_v25  ;;  %v5833_v43 = vadd.f32 %v3612_v24, %v7817_v9  ;;  %4825 = vmatmul.mubr.bf16.gmra.mrb[92].mxu0 %v4099_v31  ;;  %vm3752_vm1 = vcmp.gt.f32.partialorder %v5831_v25, 0.0 }
 0x375   :  { %vm3755_vm2 = vcmp.gt.f32.partialorder %v5832_v18, 0.0  ;;  %v3883_v33 = vmul.f32 0.2, %v5832_v18  ;;  %v4007_v59 = vsel %vm3751_vm0, %v5830_v54, %v3879_v17 }
 0x376   :  { %vm3756_vm3 = vcmp.gt.f32.partialorder %v5833_v43, 0.0  ;;  %v3884_v6 = vmul.f32 0.2, %v5833_v43  ;;  %v4008_v57 = vsel %vm3752_vm1, %v5831_v25, %v3880_v35 }
 0x377   :  { %v4011_v2 = vsel %vm3755_vm2, %v5832_v18, %v3883_v33 }
 0x378   :  { %v3616_v3 = vpop.f32.mrb[100].mxu1  ;;  %v4012_v37 = vsel %vm3756_vm3, %v5833_v43, %v3884_v6  ;;  %v4103_v40 = vpack.c.bf16 %v4011_v2, %v4007_v59 }
 0x379   :  { %v5834_v45 = vadd.f32 %v3616_v3, %v7815_v16  ;;  %v3618_v61 = vpop.f32.mrb[101].mxu1  ;;  %v4104_v42 = vpack.c.bf16 %v4012_v37, %v4008_v57 }
 0x37a   :  { %v5835_v56 = vadd.f32 %v3618_v61, %v7817_v9  ;;  %v3620_v30 = vpop.f32.mrb[102].mxu1 }
 0x37b   :  { %v3887_v49 = vmul.f32 0.2, %v5834_v45  ;;  %v5836_v7 = vadd.f32 %v3620_v30, %v7815_v16  ;;  %v3622_v52 = vpop.f32.mrb[103].mxu1  ;;  %4834 = vmatprep.mubr.bf16.mxu0 %v4104_v42  ;;  %vm3759_vm4 = vcmp.gt.f32.partialorder %v5834_v45, 0.0 }
 0x37c   :  { %v3888_v53 = vmul.f32 0.2, %v5835_v56  ;;  %v5837_v11 = vadd.f32 %v3622_v52, %v7817_v9  ;;  %4835 = vmatmul.mubr.bf16.gmra.mrb[96].mxu0 %v4103_v40  ;;  %vm3760_vm5 = vcmp.gt.f32.partialorder %v5835_v56, 0.0 }
 0x37d   :  { %vm3763_vm6 = vcmp.gt.f32.partialorder %v5836_v7, 0.0  ;;  %v3891_v10 = vmul.f32 0.2, %v5836_v7  ;;  %v4015_v55 = vsel %vm3759_vm4, %v5834_v45, %v3887_v49 }
 0x37e   :  { %vm3764_vm7 = vcmp.gt.f32.partialorder %v5837_v11, 0.0  ;;  %v3892_v29 = vmul.f32 0.2, %v5837_v11  ;;  %v4016_v34 = vsel %vm3760_vm5, %v5835_v56, %v3888_v53 }
 0x37f   :  { %v4019_v39 = vsel %vm3763_vm6, %v5836_v7, %v3891_v10 }
 0x380   :  { %v3626_v0 = vpop.f32.mrb[104].mxu1  ;;  %v4020_v4 = vsel %vm3764_vm7, %v5837_v11, %v3892_v29  ;;  %v4107_v20 = vpack.c.bf16 %v4019_v39, %v4015_v55 }
 0x381   :  { %v5838_v27 = vadd.f32 %v3626_v0, %v7815_v16  ;;  %v3628_v13 = vpop.f32.mrb[105].mxu1  ;;  %v4108_v32 = vpack.c.bf16 %v4020_v4, %v4016_v34 }
 0x382   :  { %v5839_v51 = vadd.f32 %v3628_v13, %v7817_v9  ;;  %v3630_v36 = vpop.f32.mrb[106].mxu1 }
 0x383   :  { %v3895_v1 = vmul.f32 0.2, %v5838_v27  ;;  %v5840_v38 = vadd.f32 %v3630_v36, %v7815_v16  ;;  %v3632_v62 = vpop.f32.mrb[107].mxu1  ;;  %4844 = vmatprep.mubr.bf16.mxu0 %v4108_v32  ;;  %vm3767_vm8 = vcmp.gt.f32.partialorder %v5838_v27, 0.0 }
 0x384   :  { %v3896_v5 = vmul.f32 0.2, %v5839_v51  ;;  %v5841_v58 = vadd.f32 %v3632_v62, %v7817_v9  ;;  %4845 = vmatmul.mubr.bf16.gmra.mrb[100].mxu0 %v4107_v20  ;;  %vm3768_vm9 = vcmp.gt.f32.partialorder %v5839_v51, 0.0 }
 0x385   :  { %vm3771_vm10 = vcmp.gt.f32.partialorder %v5840_v38, 0.0  ;;  %v3899_v41 = vmul.f32 0.2, %v5840_v38  ;;  %v4023_v26 = vsel %vm3767_vm8, %v5838_v27, %v3895_v1 }
 0x386   :  { %vm3772_vm11 = vcmp.gt.f32.partialorder %v5841_v58, 0.0  ;;  %v3900_v12 = vmul.f32 0.2, %v5841_v58  ;;  %v4024_v63 = vsel %vm3768_vm9, %v5839_v51, %v3896_v5 }
 0x387   :  { %v4027_v46 = vsel %vm3771_vm10, %v5840_v38, %v3899_v41 }
 0x388   :  { %v3636_v19 = vpop.f32.mrb[108].mxu1  ;;  %v4028_v21 = vsel %vm3772_vm11, %v5841_v58, %v3900_v12  ;;  %v4111_v50 = vpack.c.bf16 %v4027_v46, %v4023_v26 }
 0x389   :  { %v5842_v22 = vadd.f32 %v3636_v19, %v7815_v16  ;;  %v3638_v44 = vpop.f32.mrb[109].mxu1  ;;  %v4112_v8 = vpack.c.bf16 %v4028_v21, %v4024_v63 }
 0x38a   :  { %v5843_v31 = vadd.f32 %v3638_v44, %v7817_v9  ;;  %v3640_v54 = vpop.f32.mrb[110].mxu1 }
 0x38b   :  { %v3903_v48 = vmul.f32 0.2, %v5842_v22  ;;  %v5844_v14 = vadd.f32 %v3640_v54, %v7815_v16  ;;  %v3642_v25 = vpop.f32.mrb[111].mxu1  ;;  %4854 = vmatprep.mubr.bf16.mxu0 %v4112_v8  ;;  %vm3775_vm12 = vcmp.gt.f32.partialorder %v5842_v22, 0.0 }
 0x38c   :  { %v3904_v23 = vmul.f32 0.2, %v5843_v31  ;;  %v5845_v17 = vadd.f32 %v3642_v25, %v7817_v9  ;;  %4855 = vmatmul.mubr.bf16.gmra.mrb[104].mxu0 %v4111_v50  ;;  %vm3776_vm13 = vcmp.gt.f32.partialorder %v5843_v31, 0.0 }
 0x38d   :  { %vm3779_vm14 = vcmp.gt.f32.partialorder %v5844_v14, 0.0  ;;  %v3907_v18 = vmul.f32 0.2, %v5844_v14  ;;  %v4031_v35 = vsel %vm3775_vm12, %v5842_v22, %v3903_v48 }
 0x38e   :  { %vm3780_vm15 = vcmp.gt.f32.partialorder %v5845_v17, 0.0  ;;  %v3908_v24 = vmul.f32 0.2, %v5845_v17  ;;  %v4032_v6 = vsel %vm3776_vm13, %v5843_v31, %v3904_v23 }
 0x38f   :  { %v4035_v43 = vsel %vm3779_vm14, %v5844_v14, %v3907_v18 }
 0x390   :  { %v3646_v33 = vpop.f32.mrb[112].mxu1  ;;  %v4036_v59 = vsel %vm3780_vm15, %v5845_v17, %v3908_v24  ;;  %v4115_v2 = vpack.c.bf16 %v4035_v43, %v4031_v35 }
 0x391   :  { %v5846_v3 = vadd.f32 %v3646_v33, %v7815_v16  ;;  %v3648_v57 = vpop.f32.mrb[113].mxu1  ;;  %v4116_v37 = vpack.c.bf16 %v4036_v59, %v4032_v6 }
 0x392   :  { %v5847_v40 = vadd.f32 %v3648_v57, %v7817_v9  ;;  %v3650_v45 = vpop.f32.mrb[114].mxu1 }
 0x393   :  { %v3911_v61 = vmul.f32 0.2, %v5846_v3  ;;  %v5848_v42 = vadd.f32 %v3650_v45, %v7815_v16  ;;  %v3652_v56 = vpop.f32.mrb[115].mxu1  ;;  %4864 = vmatprep.mubr.bf16.mxu0 %v4116_v37  ;;  %vm3783_vm0 = vcmp.gt.f32.partialorder %v5846_v3, 0.0 }
 0x394   :  { %v3912_v30 = vmul.f32 0.2, %v5847_v40  ;;  %v5849_v49 = vadd.f32 %v3652_v56, %v7817_v9  ;;  %4865 = vmatmul.mubr.bf16.gmra.mrb[108].mxu0 %v4115_v2  ;;  %vm3784_vm1 = vcmp.gt.f32.partialorder %v5847_v40, 0.0 }
 0x395   :  { %vm3787_vm2 = vcmp.gt.f32.partialorder %v5848_v42, 0.0  ;;  %v3915_v7 = vmul.f32 0.2, %v5848_v42  ;;  %v4039_v53 = vsel %vm3783_vm0, %v5846_v3, %v3911_v61 }
 0x396   :  { %vm3788_vm3 = vcmp.gt.f32.partialorder %v5849_v49, 0.0  ;;  %v3916_v52 = vmul.f32 0.2, %v5849_v49  ;;  %v4040_v29 = vsel %vm3784_vm1, %v5847_v40, %v3912_v30 }
 0x397   :  { %v4043_v11 = vsel %vm3787_vm2, %v5848_v42, %v3915_v7 }
 0x398   :  { %v3656_v10 = vpop.f32.mrb[116].mxu1  ;;  %v4044_v55 = vsel %vm3788_vm3, %v5849_v49, %v3916_v52  ;;  %v4119_v39 = vpack.c.bf16 %v4043_v11, %v4039_v53 }
 0x399   :  { %v5850_v0 = vadd.f32 %v3656_v10, %v7815_v16  ;;  %v3658_v34 = vpop.f32.mrb[117].mxu1  ;;  %v4120_v4 = vpack.c.bf16 %v4044_v55, %v4040_v29 }
 0x39a   :  { %v5851_v20 = vadd.f32 %v3658_v34, %v7817_v9  ;;  %v3660_v27 = vpop.f32.mrb[118].mxu1 }
 0x39b   :  { %v3919_v13 = vmul.f32 0.2, %v5850_v0  ;;  %v5852_v32 = vadd.f32 %v3660_v27, %v7815_v16  ;;  %v3662_v51 = vpop.f32.mrb[119].mxu1  ;;  %4874 = vmatprep.mubr.bf16.mxu0 %v4120_v4  ;;  %vm3791_vm4 = vcmp.gt.f32.partialorder %v5850_v0, 0.0  ;;  %v7044_v4 = vmov 1966171168  }
 0x39c   :  { %v3920_v36 = vmul.f32 0.2, %v5851_v20  ;;  %v5853_v1 = vadd.f32 %v3662_v51, %v7817_v9  ;;  %4875 = vmatmul.mubr.bf16.gmra.mrb[112].mxu0 %v4119_v39  ;;  %vm3792_vm5 = vcmp.gt.f32.partialorder %v5851_v20, 0.0 }
 0x39d   :  { %vm3795_vm6 = vcmp.gt.f32.partialorder %v5852_v32, 0.0  ;;  %v3923_v38 = vmul.f32 0.2, %v5852_v32  ;;  %v4047_v5 = vsel %vm3791_vm4, %v5850_v0, %v3919_v13 }
 0x39e   :  { %vm3796_vm7 = vcmp.gt.f32.partialorder %v5853_v1, 0.0  ;;  %v3924_v62 = vmul.f32 0.2, %v5853_v1  ;;  %v4048_v12 = vsel %vm3792_vm5, %v5851_v20, %v3920_v36  ;;  %v5160_v20 = vunpack.c.l.s4 %v7044_v4 }
 0x39f   :  { %v4051_v58 = vsel %vm3795_vm6, %v5852_v32, %v3923_v38 }
 0x3a0   :  { %v3666_v41 = vpop.f32.mrb[120].mxu1  ;;  %v4052_v26 = vsel %vm3796_vm7, %v5853_v1, %v3924_v62  ;;  %v4123_v46 = vpack.c.bf16 %v4051_v58, %v4047_v5  ;;  %v5161_v1 = vunpack.c.0.s8 %v5160_v20 }
 0x3a1   :  { %v5854_v19 = vadd.f32 %v3666_v41, %v7815_v16  ;;  %v3668_v63 = vpop.f32.mrb[121].mxu1  ;;  %v4124_v21 = vpack.c.bf16 %v4052_v26, %v4048_v12  ;;  %v7903_v41 = vld.sshfl [vmem:[%s7991_s5] sm:$0x11 pattern:$0x75316420]  ;;  %s7045_s5 = smov [#allocation9]  }
 0x3a2   :  { %v5855_v50 = vadd.f32 %v3668_v63, %v7817_v9  ;;  %v3670_v22 = vpop.f32.mrb[122].mxu1  ;;  %v7898_v62 = vsub.s32 %v5161_v1, %v7635_v28  ;;  %v5158_v63 = vcombine.high %v7903_v41, %v7903_v41  ;;  %s5257_s23 = sshll.u32 %s7045_s5, 4  ;;  %s5258_s23 = int_to_ptr.vmem [resolvable:$true] %s5257_s23 }
 0x3a3   :  { %v3927_v44 = vmul.f32 0.2, %v5854_v19  ;;  %v5856_v8 = vadd.f32 %v3670_v22, %v7815_v16  ;;  %v3672_v31 = vpop.f32.mrb[123].mxu1  ;;  %4884 = vmatprep.mubr.bf16.mxu0 %v4124_v21  ;;  %vm3799_vm8 = vcmp.gt.f32.partialorder %v5854_v19, 0.0  ;;  %s7006_s24 = scalar_lea.vmem %s5258_s23, 32  ;;  %p7011_p11 = scmp.lt.s32.totalorder %s5258_s23, %s5258_s23 }
 0x3a4   :  { %v3928_v54 = vmul.f32 0.2, %v5855_v50  ;;  %v5857_v48 = vadd.f32 %v3672_v31, %v7817_v9  ;;  %4885 = vmatmul.mubr.bf16.gmra.mrb[116].mxu0 %v4123_v46  ;;  %vm3800_vm9 = vcmp.gt.f32.partialorder %v5855_v50, 0.0  ;;  %p7007_p10 = scmp.ne.s32.totalorder %s5258_s23, %s7006_s24  ;;  %p7012_p12 = scmp.lt.s32.totalorder %s7006_s24, %s7006_s24 }
 0x3a5   :  { %vm3803_vm10 = vcmp.gt.f32.partialorder %v5856_v8, 0.0  ;;  %v3931_v14 = vmul.f32 0.2, %v5856_v8  ;;  %v4055_v23 = vsel %vm3799_vm8, %v5854_v19, %v3927_v44 }
 0x3a6   :  { %vm3804_vm11 = vcmp.gt.f32.partialorder %v5857_v48, 0.0  ;;  %v3932_v25 = vmul.f32 0.2, %v5857_v48  ;;  %v4056_v24 = vsel %vm3800_vm9, %v5855_v50, %v3928_v54  ;;  %p7013_p13 = por %p7012_p12, %p7011_p11 }
 0x3a7   :  { %v4059_v17 = vsel %vm3803_vm10, %v5856_v8, %v3931_v14  ;;  %v5172_v8 = vrot.slane %v5158_v63, %v7898_v62  ;;  %v5140_v14 = vld [vmem:[#allocation2] sm:$0x1] }
 0x3a8   :  { %v3676_v18 = vpop.f32.mrb[124].mxu1  ;;  %v4060_v35 = vsel %vm3804_vm11, %v5857_v48, %v3932_v25  ;;  %v4127_v43 = vpack.c.bf16 %v4059_v17, %v4055_v23  ;;  %5143 = vperm.xlu0 %6322, %v5140_v14   ;;  %p7014_p0 = pnand %p7013_p13, %p7007_p10 }
 0x3a9   :  { %v5858_v33 = vadd.f32 %v3676_v18, %v7815_v16  ;;  %v3678_v6 = vpop.f32.mrb[125].mxu1  ;;  %v4128_v59 = vpack.c.bf16 %v4060_v35, %v4056_v24  ;;  %5207 = vmatprep.mubr.bf16.mxu1 %v5172_v8 }
 0x3aa   :  { %v5859_v2 = vadd.f32 %v3678_v6, %v7817_v9  ;;  %v3680_v3 = vpop.f32.mrb[126].mxu1 }
 0x3ab   :  { %v3935_v57 = vmul.f32 0.2, %v5858_v33  ;;  %v5860_v37 = vadd.f32 %v3680_v3, %v7815_v16  ;;  %v3682_v40 = vpop.f32.mrb[127].mxu1  ;;  %4894 = vmatprep.mubr.bf16.mxu0 %v4128_v59  ;;  %vm3807_vm12 = vcmp.gt.f32.partialorder %v5858_v33, 0.0  ;;  %v4197_v16 = vld [vmem:[%s7990_s4] sm:$0x3] }
 0x3ac   :  { %v3936_v45 = vmul.f32 0.2, %v5859_v2  ;;  %v5861_v61 = vadd.f32 %v3682_v40, %v7817_v9  ;;  %4895 = vmatmul.mubr.bf16.gmra.mrb[120].mxu0 %v4127_v43  ;;  %vm3808_vm13 = vcmp.gt.f32.partialorder %v5859_v2, 0.0  ;;  %v7887_v9 = vrot.slane %v4197_v16, %v7638_v47 }
 0x3ad   :  { %vm3811_vm14 = vcmp.gt.f32.partialorder %v5860_v37, 0.0  ;;  %v3939_v42 = vmul.f32 0.2, %v5860_v37  ;;  %v4063_v30 = vsel %vm3807_vm12, %v5858_v33, %v3935_v57  ;;  %v7891_v10 = vrot.slane %v4197_v16, %v431_v60 }
 0x3ae   :  { %vm3812_vm15 = vcmp.gt.f32.partialorder %v5861_v61, 0.0  ;;  %v3940_v56 = vmul.f32 0.2, %v5861_v61  ;;  %v4064_v7 = vsel %vm3808_vm13, %v5859_v2, %v3936_v45 }
 0x3af   :  { %v4067_v49 = vsel %vm3811_vm14, %v5860_v37, %v3939_v42 }
 0x3b0   :  { %v4068_v52 = vsel %vm3812_vm15, %v5861_v61, %v3940_v56  ;;  %v4131_v53 = vpack.c.bf16 %v4067_v49, %v4063_v30 }
 0x3b1   :  { %v4132_v11 = vpack.c.bf16 %v4068_v52, %v4064_v7 }
 0x3b3   :  { %4904 = vmatprep.mubr.bf16.mxu0 %v4132_v11 }
 0x3b4   :  { %4905 = vmatmul.mubr.bf16.gmra.mrb[124].mxu0 %v4131_v53 }
 0x40f   :  { %v4756_v29 = vpop.f32.mrb[64].mxu0 }
 0x410   :  { %v5862_v55 = vadd.f32 %v4756_v29, %v7887_v9  ;;  %v4758_v39 = vpop.f32.mrb[65].mxu0 }
 0x411   :  { %v5863_v0 = vadd.f32 %v4758_v39, %v7891_v10  ;;  %v4760_v34 = vpop.f32.mrb[66].mxu0 }
 0x412   :  { %v4979_v27 = vmul.f32 0.2, %v5862_v55  ;;  %v5864_v13 = vadd.f32 %v4760_v34, %v7887_v9  ;;  %v4762_v32 = vpop.f32.mrb[67].mxu0  ;;  %vm4915_vm0 = vcmp.gt.f32.partialorder %v5862_v55, 0.0 }
 0x413   :  { %v4980_v51 = vmul.f32 0.2, %v5863_v0  ;;  %v5865_v36 = vadd.f32 %v4762_v32, %v7891_v10  ;;  %vm4916_vm1 = vcmp.gt.f32.partialorder %v5863_v0, 0.0 }
 0x414   :  { %vm4917_vm2 = vcmp.gt.f32.partialorder %v5864_v13, 0.0  ;;  %v4981_v60 = vmul.f32 0.2, %v5864_v13  ;;  %v5043_v5 = vsel %vm4915_vm0, %v5862_v55, %v4979_v27 }
 0x415   :  { %vm4918_vm3 = vcmp.gt.f32.partialorder %v5865_v36, 0.0  ;;  %v4982_v38 = vmul.f32 0.2, %v5865_v36  ;;  %v5044_v46 = vsel %vm4916_vm1, %v5863_v0, %v4980_v51 }
 0x416   :  { %v5045_v58 = vsel %vm4917_vm2, %v5864_v13, %v4981_v60 }
 0x417   :  { %v5108_v12 = vpack.c.bf16 %v5045_v58, %v5043_v5  ;;  %v4766_v26 = vpop.f32.mrb[68].mxu0  ;;  %v5046_v19 = vsel %vm4918_vm3, %v5865_v36, %v4982_v38 }
 0x418   :  { %v5866_v21 = vadd.f32 %v4766_v26, %v7887_v9  ;;  %v4768_v50 = vpop.f32.mrb[69].mxu0  ;;  %v5109_v22 = vpack.c.bf16 %v5046_v19, %v5044_v46 }
 0x419   :  { %v5867_v28 = vadd.f32 %v4768_v50, %v7891_v10  ;;  %v4770_v44 = vpop.f32.mrb[70].mxu0 }
 0x41a   :  { %v4983_v31 = vmul.f32 0.2, %v5866_v21  ;;  %v5868_v54 = vadd.f32 %v4770_v44, %v7887_v9  ;;  %v4772_v48 = vpop.f32.mrb[71].mxu0  ;;  %5175 = vmatprep.subr.bf16.mxu1 %v5109_v22  ;;  %vm4919_vm4 = vcmp.gt.f32.partialorder %v5866_v21, 0.0 }
 0x41b   :  { %v4984_v25 = vmul.f32 0.2, %v5867_v28  ;;  %v5869_v23 = vadd.f32 %v4772_v48, %v7891_v10  ;;  %5176 = vmatpush1.bf16.xpose.msra.mxu1 %v5108_v12  ;;  %vm4920_vm5 = vcmp.gt.f32.partialorder %v5867_v28, 0.0 }
 0x41c   :  { %vm4921_vm6 = vcmp.gt.f32.partialorder %v5868_v54, 0.0  ;;  %v4985_v17 = vmul.f32 0.2, %v5868_v54  ;;  %v5047_v24 = vsel %vm4919_vm4, %v5866_v21, %v4983_v31 }
 0x41d   :  { %vm4922_vm7 = vcmp.gt.f32.partialorder %v5869_v23, 0.0  ;;  %v4986_v18 = vmul.f32 0.2, %v5869_v23  ;;  %v5048_v6 = vsel %vm4920_vm5, %v5867_v28, %v4984_v25 }
 0x41e   :  { %v5049_v35 = vsel %vm4921_vm6, %v5868_v54, %v4985_v17 }
 0x41f   :  { %v5110_v43 = vpack.c.bf16 %v5049_v35, %v5047_v24  ;;  %v4776_v33 = vpop.f32.mrb[72].mxu0  ;;  %v5050_v59 = vsel %vm4922_vm7, %v5869_v23, %v4986_v18 }
 0x420   :  { %v5870_v2 = vadd.f32 %v4776_v33, %v7887_v9  ;;  %v4778_v3 = vpop.f32.mrb[73].mxu0  ;;  %v5111_v57 = vpack.c.bf16 %v5050_v59, %v5048_v6 }
 0x421   :  { %v5871_v37 = vadd.f32 %v4778_v3, %v7891_v10  ;;  %v4780_v40 = vpop.f32.mrb[74].mxu0 }
 0x422   :  { %v4987_v45 = vmul.f32 0.2, %v5870_v2  ;;  %v5872_v61 = vadd.f32 %v4780_v40, %v7887_v9  ;;  %v4782_v42 = vpop.f32.mrb[75].mxu0  ;;  %5177 = vmatprep.subr.bf16.mxu1 %v5111_v57  ;;  %vm4923_vm8 = vcmp.gt.f32.partialorder %v5870_v2, 0.0 }
 0x423   :  { %v4988_v56 = vmul.f32 0.2, %v5871_v37  ;;  %v5873_v30 = vadd.f32 %v4782_v42, %v7891_v10  ;;  %5178 = vmatpush1.bf16.xpose.msra.mxu1 %v5110_v43  ;;  %vm4924_vm9 = vcmp.gt.f32.partialorder %v5871_v37, 0.0 }
 0x424   :  { %vm4925_vm10 = vcmp.gt.f32.partialorder %v5872_v61, 0.0  ;;  %v4989_v49 = vmul.f32 0.2, %v5872_v61  ;;  %v5051_v52 = vsel %vm4923_vm8, %v5870_v2, %v4987_v45 }
 0x425   :  { %vm4926_vm11 = vcmp.gt.f32.partialorder %v5873_v30, 0.0  ;;  %v4990_v7 = vmul.f32 0.2, %v5873_v30  ;;  %v5052_v29 = vsel %vm4924_vm9, %v5871_v37, %v4988_v56 }
 0x426   :  { %v5053_v53 = vsel %vm4925_vm10, %v5872_v61, %v4989_v49 }
 0x427   :  { %v5112_v11 = vpack.c.bf16 %v5053_v53, %v5051_v52  ;;  %v4786_v16 = vpop.f32.mrb[76].mxu0  ;;  %v5054_v55 = vsel %vm4926_vm11, %v5873_v30, %v4990_v7 }
 0x428   :  { %v5874_v39 = vadd.f32 %v4786_v16, %v7887_v9  ;;  %v4788_v0 = vpop.f32.mrb[77].mxu0  ;;  %v5113_v34 = vpack.c.bf16 %v5054_v55, %v5052_v29 }
 0x429   :  { %v5875_v4 = vadd.f32 %v4788_v0, %v7891_v10  ;;  %v4790_v20 = vpop.f32.mrb[78].mxu0 }
 0x42a   :  { %v4991_v27 = vmul.f32 0.2, %v5874_v39  ;;  %v5876_v13 = vadd.f32 %v4790_v20, %v7887_v9  ;;  %v4792_v32 = vpop.f32.mrb[79].mxu0  ;;  %5179 = vmatprep.subr.bf16.mxu1 %v5113_v34  ;;  %vm4927_vm12 = vcmp.gt.f32.partialorder %v5874_v39, 0.0 }
 0x42b   :  { %v4992_v51 = vmul.f32 0.2, %v5875_v4  ;;  %v5877_v36 = vadd.f32 %v4792_v32, %v7891_v10  ;;  %5180 = vmatpush1.bf16.xpose.msra.mxu1 %v5112_v11  ;;  %vm4928_vm13 = vcmp.gt.f32.partialorder %v5875_v4, 0.0 }
 0x42c   :  { %vm4929_vm14 = vcmp.gt.f32.partialorder %v5876_v13, 0.0  ;;  %v4993_v1 = vmul.f32 0.2, %v5876_v13  ;;  %v5055_v38 = vsel %vm4927_vm12, %v5874_v39, %v4991_v27 }
 0x42d   :  { %vm4930_vm15 = vcmp.gt.f32.partialorder %v5877_v36, 0.0  ;;  %v4994_v60 = vmul.f32 0.2, %v5877_v36  ;;  %v5056_v26 = vsel %vm4928_vm13, %v5875_v4, %v4992_v51 }
 0x42e   :  { %v5057_v5 = vsel %vm4929_vm14, %v5876_v13, %v4993_v1 }
 0x42f   :  { %v5114_v58 = vpack.c.bf16 %v5057_v5, %v5055_v38  ;;  %v4796_v12 = vpop.f32.mrb[80].mxu0  ;;  %v5058_v46 = vsel %vm4930_vm15, %v5877_v36, %v4994_v60 }
 0x430   :  { %v5878_v19 = vadd.f32 %v4796_v12, %v7887_v9  ;;  %v4798_v63 = vpop.f32.mrb[81].mxu0  ;;  %v5115_v21 = vpack.c.bf16 %v5058_v46, %v5056_v26 }
 0x431   :  { %v5879_v50 = vadd.f32 %v4798_v63, %v7891_v10  ;;  %v4800_v22 = vpop.f32.mrb[82].mxu0 }
 0x432   :  { %v4995_v28 = vmul.f32 0.2, %v5878_v19  ;;  %v5880_v44 = vadd.f32 %v4800_v22, %v7887_v9  ;;  %v4802_v8 = vpop.f32.mrb[83].mxu0  ;;  %5181 = vmatprep.subr.bf16.mxu1 %v5115_v21  ;;  %vm4931_vm0 = vcmp.gt.f32.partialorder %v5878_v19, 0.0 }
 0x433   :  { %v4996_v31 = vmul.f32 0.2, %v5879_v50  ;;  %v5881_v54 = vadd.f32 %v4802_v8, %v7891_v10  ;;  %5182 = vmatpush1.bf16.xpose.msra.mxu1 %v5114_v58  ;;  %vm4932_vm1 = vcmp.gt.f32.partialorder %v5879_v50, 0.0 }
 0x434   :  { %vm4933_vm2 = vcmp.gt.f32.partialorder %v5880_v44, 0.0  ;;  %v4997_v48 = vmul.f32 0.2, %v5880_v44  ;;  %v5059_v25 = vsel %vm4931_vm0, %v5878_v19, %v4995_v28 }
 0x435   :  { %vm4934_vm3 = vcmp.gt.f32.partialorder %v5881_v54, 0.0  ;;  %v4998_v14 = vmul.f32 0.2, %v5881_v54  ;;  %v5060_v24 = vsel %vm4932_vm1, %v5879_v50, %v4996_v31 }
 0x436   :  { %v5061_v23 = vsel %vm4933_vm2, %v5880_v44, %v4997_v48 }
 0x437   :  { %v5116_v17 = vpack.c.bf16 %v5061_v23, %v5059_v25  ;;  %v4806_v18 = vpop.f32.mrb[84].mxu0  ;;  %v5062_v35 = vsel %vm4934_vm3, %v5881_v54, %v4998_v14 }
 0x438   :  { %v5882_v43 = vadd.f32 %v4806_v18, %v7887_v9  ;;  %v4808_v33 = vpop.f32.mrb[85].mxu0  ;;  %v5117_v6 = vpack.c.bf16 %v5062_v35, %v5060_v24 }
 0x439   :  { %v5883_v59 = vadd.f32 %v4808_v33, %v7891_v10  ;;  %v4810_v2 = vpop.f32.mrb[86].mxu0 }
 0x43a   :  { %v4999_v3 = vmul.f32 0.2, %v5882_v43  ;;  %v5884_v57 = vadd.f32 %v4810_v2, %v7887_v9  ;;  %v4812_v37 = vpop.f32.mrb[87].mxu0  ;;  %5183 = vmatprep.subr.bf16.mxu1 %v5117_v6  ;;  %vm4935_vm4 = vcmp.gt.f32.partialorder %v5882_v43, 0.0 }
 0x43b   :  { %v5000_v40 = vmul.f32 0.2, %v5883_v59  ;;  %v5885_v45 = vadd.f32 %v4812_v37, %v7891_v10  ;;  %5184 = vmatpush1.bf16.xpose.msra.mxu1 %v5116_v17  ;;  %vm4936_vm5 = vcmp.gt.f32.partialorder %v5883_v59, 0.0 }
 0x43c   :  { %vm4937_vm6 = vcmp.gt.f32.partialorder %v5884_v57, 0.0  ;;  %v5001_v61 = vmul.f32 0.2, %v5884_v57  ;;  %v5063_v56 = vsel %vm4935_vm4, %v5882_v43, %v4999_v3 }
 0x43d   :  { %vm4938_vm7 = vcmp.gt.f32.partialorder %v5885_v45, 0.0  ;;  %v5002_v42 = vmul.f32 0.2, %v5885_v45  ;;  %v5064_v52 = vsel %vm4936_vm5, %v5883_v59, %v5000_v40 }
 0x43e   :  { %v5065_v30 = vsel %vm4937_vm6, %v5884_v57, %v5001_v61 }
 0x43f   :  { %v5118_v49 = vpack.c.bf16 %v5065_v30, %v5063_v56  ;;  %v4816_v7 = vpop.f32.mrb[88].mxu0  ;;  %v5066_v53 = vsel %vm4938_vm7, %v5885_v45, %v5002_v42 }
 0x440   :  { %v5886_v11 = vadd.f32 %v4816_v7, %v7887_v9  ;;  %v4818_v16 = vpop.f32.mrb[89].mxu0  ;;  %v5119_v29 = vpack.c.bf16 %v5066_v53, %v5064_v52 }
 0x441   :  { %v5887_v55 = vadd.f32 %v4818_v16, %v7891_v10  ;;  %v4820_v39 = vpop.f32.mrb[90].mxu0 }
 0x442   :  { %v5003_v0 = vmul.f32 0.2, %v5886_v11  ;;  %v5888_v34 = vadd.f32 %v4820_v39, %v7887_v9  ;;  %v4822_v4 = vpop.f32.mrb[91].mxu0  ;;  %5185 = vmatprep.subr.bf16.mxu1 %v5119_v29  ;;  %vm4939_vm8 = vcmp.gt.f32.partialorder %v5886_v11, 0.0 }
 0x443   :  { %v5004_v20 = vmul.f32 0.2, %v5887_v55  ;;  %v5889_v27 = vadd.f32 %v4822_v4, %v7891_v10  ;;  %5186 = vmatpush1.bf16.xpose.msra.mxu1 %v5118_v49  ;;  %vm4940_vm9 = vcmp.gt.f32.partialorder %v5887_v55, 0.0 }
 0x444   :  { %vm4941_vm10 = vcmp.gt.f32.partialorder %v5888_v34, 0.0  ;;  %v5005_v13 = vmul.f32 0.2, %v5888_v34  ;;  %v5067_v51 = vsel %vm4939_vm8, %v5886_v11, %v5003_v0 }
 0x445   :  { %vm4942_vm11 = vcmp.gt.f32.partialorder %v5889_v27, 0.0  ;;  %v5006_v32 = vmul.f32 0.2, %v5889_v27  ;;  %v5068_v38 = vsel %vm4940_vm9, %v5887_v55, %v5004_v20 }
 0x446   :  { %v5069_v36 = vsel %vm4941_vm10, %v5888_v34, %v5005_v13 }
 0x447   :  { %v5120_v1 = vpack.c.bf16 %v5069_v36, %v5067_v51  ;;  %v4826_v60 = vpop.f32.mrb[92].mxu0  ;;  %v5070_v5 = vsel %vm4942_vm11, %v5889_v27, %v5006_v32 }
 0x448   :  { %v5890_v58 = vadd.f32 %v4826_v60, %v7887_v9  ;;  %v4828_v12 = vpop.f32.mrb[93].mxu0  ;;  %v5121_v26 = vpack.c.bf16 %v5070_v5, %v5068_v38 }
 0x449   :  { %v5891_v46 = vadd.f32 %v4828_v12, %v7891_v10  ;;  %v4830_v19 = vpop.f32.mrb[94].mxu0 }
 0x44a   :  { %v5007_v63 = vmul.f32 0.2, %v5890_v58  ;;  %v5892_v21 = vadd.f32 %v4830_v19, %v7887_v9  ;;  %v4832_v50 = vpop.f32.mrb[95].mxu0  ;;  %5187 = vmatprep.subr.bf16.mxu1 %v5121_v26  ;;  %vm4943_vm12 = vcmp.gt.f32.partialorder %v5890_v58, 0.0 }
 0x44b   :  { %v5008_v22 = vmul.f32 0.2, %v5891_v46  ;;  %v5893_v28 = vadd.f32 %v4832_v50, %v7891_v10  ;;  %5188 = vmatpush1.bf16.xpose.msra.mxu1 %v5120_v1  ;;  %vm4944_vm13 = vcmp.gt.f32.partialorder %v5891_v46, 0.0 }
 0x44c   :  { %vm4945_vm14 = vcmp.gt.f32.partialorder %v5892_v21, 0.0  ;;  %v5009_v44 = vmul.f32 0.2, %v5892_v21  ;;  %v5071_v31 = vsel %vm4943_vm12, %v5890_v58, %v5007_v63 }
 0x44d   :  { %vm4946_vm15 = vcmp.gt.f32.partialorder %v5893_v28, 0.0  ;;  %v5010_v8 = vmul.f32 0.2, %v5893_v28  ;;  %v5072_v25 = vsel %vm4944_vm13, %v5891_v46, %v5008_v22 }
 0x44e   :  { %v5073_v54 = vsel %vm4945_vm14, %v5892_v21, %v5009_v44 }
 0x44f   :  { %v5122_v48 = vpack.c.bf16 %v5073_v54, %v5071_v31  ;;  %v4836_v14 = vpop.f32.mrb[96].mxu0  ;;  %v5074_v23 = vsel %vm4946_vm15, %v5893_v28, %v5010_v8 }
 0x450   :  { %v5894_v17 = vadd.f32 %v4836_v14, %v7887_v9  ;;  %v4838_v18 = vpop.f32.mrb[97].mxu0  ;;  %v5123_v24 = vpack.c.bf16 %v5074_v23, %v5072_v25 }
 0x451   :  { %v5895_v35 = vadd.f32 %v4838_v18, %v7891_v10  ;;  %v4840_v43 = vpop.f32.mrb[98].mxu0 }
 0x452   :  { %v5011_v33 = vmul.f32 0.2, %v5894_v17  ;;  %v5896_v6 = vadd.f32 %v4840_v43, %v7887_v9  ;;  %v4842_v59 = vpop.f32.mrb[99].mxu0  ;;  %5189 = vmatprep.subr.bf16.mxu1 %v5123_v24  ;;  %vm4947_vm0 = vcmp.gt.f32.partialorder %v5894_v17, 0.0 }
 0x453   :  { %v5012_v2 = vmul.f32 0.2, %v5895_v35  ;;  %v5897_v3 = vadd.f32 %v4842_v59, %v7891_v10  ;;  %5190 = vmatpush1.bf16.xpose.msra.mxu1 %v5122_v48  ;;  %vm4948_vm1 = vcmp.gt.f32.partialorder %v5895_v35, 0.0 }
 0x454   :  { %vm4949_vm2 = vcmp.gt.f32.partialorder %v5896_v6, 0.0  ;;  %v5013_v57 = vmul.f32 0.2, %v5896_v6  ;;  %v5075_v40 = vsel %vm4947_vm0, %v5894_v17, %v5011_v33 }
 0x455   :  { %vm4950_vm3 = vcmp.gt.f32.partialorder %v5897_v3, 0.0  ;;  %v5014_v37 = vmul.f32 0.2, %v5897_v3  ;;  %v5076_v56 = vsel %vm4948_vm1, %v5895_v35, %v5012_v2 }
 0x456   :  { %v5077_v45 = vsel %vm4949_vm2, %v5896_v6, %v5013_v57 }
 0x457   :  { %v5124_v61 = vpack.c.bf16 %v5077_v45, %v5075_v40  ;;  %v4846_v42 = vpop.f32.mrb[100].mxu0  ;;  %v5078_v30 = vsel %vm4950_vm3, %v5897_v3, %v5014_v37 }
 0x458   :  { %v5898_v49 = vadd.f32 %v4846_v42, %v7887_v9  ;;  %v4848_v7 = vpop.f32.mrb[101].mxu0  ;;  %v5125_v52 = vpack.c.bf16 %v5078_v30, %v5076_v56 }
 0x459   :  { %v5899_v53 = vadd.f32 %v4848_v7, %v7891_v10  ;;  %v4850_v11 = vpop.f32.mrb[102].mxu0 }
 0x45a   :  { %v5015_v16 = vmul.f32 0.2, %v5898_v49  ;;  %v5900_v29 = vadd.f32 %v4850_v11, %v7887_v9  ;;  %v4852_v55 = vpop.f32.mrb[103].mxu0  ;;  %5191 = vmatprep.subr.bf16.mxu1 %v5125_v52  ;;  %vm4951_vm4 = vcmp.gt.f32.partialorder %v5898_v49, 0.0 }
 0x45b   :  { %v5016_v39 = vmul.f32 0.2, %v5899_v53  ;;  %v5901_v0 = vadd.f32 %v4852_v55, %v7891_v10  ;;  %5192 = vmatpush1.bf16.xpose.msra.mxu1 %v5124_v61  ;;  %vm4952_vm5 = vcmp.gt.f32.partialorder %v5899_v53, 0.0 }
 0x45c   :  { %vm4953_vm6 = vcmp.gt.f32.partialorder %v5900_v29, 0.0  ;;  %v5017_v34 = vmul.f32 0.2, %v5900_v29  ;;  %v5079_v20 = vsel %vm4951_vm4, %v5898_v49, %v5015_v16 }
 0x45d   :  { %vm4954_vm7 = vcmp.gt.f32.partialorder %v5901_v0, 0.0  ;;  %v5018_v4 = vmul.f32 0.2, %v5901_v0  ;;  %v5080_v51 = vsel %vm4952_vm5, %v5899_v53, %v5016_v39 }
 0x45e   :  { %v5081_v27 = vsel %vm4953_vm6, %v5900_v29, %v5017_v34 }
 0x45f   :  { %v5126_v13 = vpack.c.bf16 %v5081_v27, %v5079_v20  ;;  %v4856_v32 = vpop.f32.mrb[104].mxu0  ;;  %v5082_v36 = vsel %vm4954_vm7, %v5901_v0, %v5018_v4 }
 0x460   :  { %v5902_v1 = vadd.f32 %v4856_v32, %v7887_v9  ;;  %v4858_v60 = vpop.f32.mrb[105].mxu0  ;;  %v5127_v38 = vpack.c.bf16 %v5082_v36, %v5080_v51 }
 0x461   :  { %v5903_v5 = vadd.f32 %v4858_v60, %v7891_v10  ;;  %v4860_v58 = vpop.f32.mrb[106].mxu0 }
 0x462   :  { %v5019_v12 = vmul.f32 0.2, %v5902_v1  ;;  %v5904_v26 = vadd.f32 %v4860_v58, %v7887_v9  ;;  %v4862_v46 = vpop.f32.mrb[107].mxu0  ;;  %5193 = vmatprep.subr.bf16.mxu1 %v5127_v38  ;;  %vm4955_vm8 = vcmp.gt.f32.partialorder %v5902_v1, 0.0 }
 0x463   :  { %v5020_v19 = vmul.f32 0.2, %v5903_v5  ;;  %v5905_v63 = vadd.f32 %v4862_v46, %v7891_v10  ;;  %5194 = vmatpush1.bf16.xpose.msra.mxu1 %v5126_v13  ;;  %vm4956_vm9 = vcmp.gt.f32.partialorder %v5903_v5, 0.0 }
 0x464   :  { %vm4957_vm10 = vcmp.gt.f32.partialorder %v5904_v26, 0.0  ;;  %v5021_v21 = vmul.f32 0.2, %v5904_v26  ;;  %v5083_v22 = vsel %vm4955_vm8, %v5902_v1, %v5019_v12 }
 0x465   :  { %vm4958_vm11 = vcmp.gt.f32.partialorder %v5905_v63, 0.0  ;;  %v5022_v50 = vmul.f32 0.2, %v5905_v63  ;;  %v5084_v31 = vsel %vm4956_vm9, %v5903_v5, %v5020_v19 }
 0x466   :  { %v5085_v28 = vsel %vm4957_vm10, %v5904_v26, %v5021_v21 }
 0x467   :  { %v5128_v44 = vpack.c.bf16 %v5085_v28, %v5083_v22  ;;  %v4866_v8 = vpop.f32.mrb[108].mxu0  ;;  %v5086_v54 = vsel %vm4958_vm11, %v5905_v63, %v5022_v50 }
 0x468   :  { %v5906_v48 = vadd.f32 %v4866_v8, %v7887_v9  ;;  %v4868_v14 = vpop.f32.mrb[109].mxu0  ;;  %v5129_v25 = vpack.c.bf16 %v5086_v54, %v5084_v31 }
 0x469   :  { %v5907_v23 = vadd.f32 %v4868_v14, %v7891_v10  ;;  %v4870_v17 = vpop.f32.mrb[110].mxu0 }
 0x46a   :  { %v5023_v18 = vmul.f32 0.2, %v5906_v48  ;;  %v5908_v24 = vadd.f32 %v4870_v17, %v7887_v9  ;;  %v4872_v35 = vpop.f32.mrb[111].mxu0  ;;  %5195 = vmatprep.subr.bf16.mxu1 %v5129_v25  ;;  %vm4959_vm12 = vcmp.gt.f32.partialorder %v5906_v48, 0.0 }
 0x46b   :  { %v5024_v43 = vmul.f32 0.2, %v5907_v23  ;;  %v5909_v33 = vadd.f32 %v4872_v35, %v7891_v10  ;;  %5196 = vmatpush1.bf16.xpose.msra.mxu1 %v5128_v44  ;;  %vm4960_vm13 = vcmp.gt.f32.partialorder %v5907_v23, 0.0 }
 0x46c   :  { %vm4961_vm14 = vcmp.gt.f32.partialorder %v5908_v24, 0.0  ;;  %v5025_v6 = vmul.f32 0.2, %v5908_v24  ;;  %v5087_v2 = vsel %vm4959_vm12, %v5906_v48, %v5023_v18 }
 0x46d   :  { %vm4962_vm15 = vcmp.gt.f32.partialorder %v5909_v33, 0.0  ;;  %v5026_v59 = vmul.f32 0.2, %v5909_v33  ;;  %v5088_v40 = vsel %vm4960_vm13, %v5907_v23, %v5024_v43 }
 0x46e   :  { %v5089_v3 = vsel %vm4961_vm14, %v5908_v24, %v5025_v6 }
 0x46f   :  { %v5130_v57 = vpack.c.bf16 %v5089_v3, %v5087_v2  ;;  %v4876_v37 = vpop.f32.mrb[112].mxu0  ;;  %v5090_v45 = vsel %vm4962_vm15, %v5909_v33, %v5026_v59 }
 0x470   :  { %v5910_v61 = vadd.f32 %v4876_v37, %v7887_v9  ;;  %v4878_v42 = vpop.f32.mrb[113].mxu0  ;;  %v5131_v56 = vpack.c.bf16 %v5090_v45, %v5088_v40 }
 0x471   :  { %v5911_v30 = vadd.f32 %v4878_v42, %v7891_v10  ;;  %v4880_v49 = vpop.f32.mrb[114].mxu0 }
 0x472   :  { %v5027_v7 = vmul.f32 0.2, %v5910_v61  ;;  %v5912_v52 = vadd.f32 %v4880_v49, %v7887_v9  ;;  %v4882_v53 = vpop.f32.mrb[115].mxu0  ;;  %5197 = vmatprep.subr.bf16.mxu1 %v5131_v56  ;;  %vm4963_vm0 = vcmp.gt.f32.partialorder %v5910_v61, 0.0 }
 0x473   :  { %v5028_v11 = vmul.f32 0.2, %v5911_v30  ;;  %v5913_v16 = vadd.f32 %v4882_v53, %v7891_v10  ;;  %5198 = vmatpush1.bf16.xpose.msra.mxu1 %v5130_v57  ;;  %vm4964_vm1 = vcmp.gt.f32.partialorder %v5911_v30, 0.0 }
 0x474   :  { %vm4965_vm2 = vcmp.gt.f32.partialorder %v5912_v52, 0.0  ;;  %v5029_v29 = vmul.f32 0.2, %v5912_v52  ;;  %v5091_v39 = vsel %vm4963_vm0, %v5910_v61, %v5027_v7  ;;  %vm5248_vm0 = vcmp.lt.s32.totalorder %v425_v15, 256 }
 0x475   :  { %vm4966_vm3 = vcmp.gt.f32.partialorder %v5913_v16, 0.0  ;;  %v5030_v55 = vmul.f32 0.2, %v5913_v16  ;;  %v5092_v20 = vsel %vm4964_vm1, %v5911_v30, %v5028_v11 }
 0x476   :  { %v5093_v0 = vsel %vm4965_vm2, %v5912_v52, %v5029_v29 }
 0x477   :  { %v5132_v34 = vpack.c.bf16 %v5093_v0, %v5091_v39  ;;  %v4886_v4 = vpop.f32.mrb[116].mxu0  ;;  %v5094_v27 = vsel %vm4966_vm3, %v5913_v16, %v5030_v55 }
 0x478   :  { %v5914_v13 = vadd.f32 %v4886_v4, %v7887_v9  ;;  %v4888_v32 = vpop.f32.mrb[117].mxu0  ;;  %v5133_v51 = vpack.c.bf16 %v5094_v27, %v5092_v20 }
 0x479   :  { %v5915_v36 = vadd.f32 %v4888_v32, %v7891_v10  ;;  %v4890_v1 = vpop.f32.mrb[118].mxu0 }
 0x47a   :  { %v5031_v60 = vmul.f32 0.2, %v5914_v13  ;;  %v5916_v38 = vadd.f32 %v4890_v1, %v7887_v9  ;;  %v4892_v5 = vpop.f32.mrb[119].mxu0  ;;  %5199 = vmatprep.subr.bf16.mxu1 %v5133_v51  ;;  %vm4967_vm4 = vcmp.gt.f32.partialorder %v5914_v13, 0.0 }
 0x47b   :  { %v5032_v58 = vmul.f32 0.2, %v5915_v36  ;;  %v5917_v12 = vadd.f32 %v4892_v5, %v7891_v10  ;;  %5200 = vmatpush1.bf16.xpose.msra.mxu1 %v5132_v34  ;;  %vm4968_vm5 = vcmp.gt.f32.partialorder %v5915_v36, 0.0  ;;  %v5144_v34 = vpop.permute.xlu0 %5143 }
 0x47c   :  { %vm4969_vm6 = vcmp.gt.f32.partialorder %v5916_v38, 0.0  ;;  %v5033_v26 = vmul.f32 0.2, %v5916_v38  ;;  %v5095_v19 = vsel %vm4967_vm4, %v5914_v13, %v5031_v60 }
 0x47d   :  { %vm4970_vm7 = vcmp.gt.f32.partialorder %v5917_v12, 0.0  ;;  %v5034_v46 = vmul.f32 0.2, %v5917_v12  ;;  %v5096_v22 = vsel %vm4968_vm5, %v5915_v36, %v5032_v58 }
 0x47e   :  { %v5097_v63 = vsel %vm4969_vm6, %v5916_v38, %v5033_v26 }
 0x47f   :  { %v5134_v21 = vpack.c.bf16 %v5097_v63, %v5095_v19  ;;  %v4896_v50 = vpop.f32.mrb[120].mxu0  ;;  %v5098_v28 = vsel %vm4970_vm7, %v5917_v12, %v5034_v46 }
 0x480   :  { %v5918_v44 = vadd.f32 %v4896_v50, %v7887_v9  ;;  %v4898_v8 = vpop.f32.mrb[121].mxu0  ;;  %v5135_v31 = vpack.c.bf16 %v5098_v28, %v5096_v22 }
 0x481   :  { %v5919_v54 = vadd.f32 %v4898_v8, %v7891_v10  ;;  %v4900_v48 = vpop.f32.mrb[122].mxu0 }
 0x482   :  { %v5035_v14 = vmul.f32 0.2, %v5918_v44  ;;  %v5920_v25 = vadd.f32 %v4900_v48, %v7887_v9  ;;  %v4902_v23 = vpop.f32.mrb[123].mxu0  ;;  %5201 = vmatprep.subr.bf16.mxu1 %v5135_v31  ;;  %vm4971_vm8 = vcmp.gt.f32.partialorder %v5918_v44, 0.0 }
 0x483   :  { %v5036_v17 = vmul.f32 0.2, %v5919_v54  ;;  %v5921_v18 = vadd.f32 %v4902_v23, %v7891_v10  ;;  %5202 = vmatpush1.bf16.xpose.msra.mxu1 %v5134_v21  ;;  %vm4972_vm9 = vcmp.gt.f32.partialorder %v5919_v54, 0.0 }
 0x484   :  { %vm4973_vm10 = vcmp.gt.f32.partialorder %v5920_v25, 0.0  ;;  %v5037_v24 = vmul.f32 0.2, %v5920_v25  ;;  %v5099_v43 = vsel %vm4971_vm8, %v5918_v44, %v5035_v14 }
 0x485   :  { %vm4974_vm11 = vcmp.gt.f32.partialorder %v5921_v18, 0.0  ;;  %v5038_v35 = vmul.f32 0.2, %v5921_v18  ;;  %v5100_v2 = vsel %vm4972_vm9, %v5919_v54, %v5036_v17 }
 0x486   :  { %v5101_v33 = vsel %vm4973_vm10, %v5920_v25, %v5037_v24 }
 0x487   :  { %v5136_v6 = vpack.c.bf16 %v5101_v33, %v5099_v43  ;;  %v4906_v59 = vpop.f32.mrb[124].mxu0  ;;  %v5102_v3 = vsel %vm4974_vm11, %v5921_v18, %v5038_v35 }
 0x488   :  { %v5922_v57 = vadd.f32 %v4906_v59, %v7887_v9  ;;  %v4908_v37 = vpop.f32.mrb[125].mxu0  ;;  %v5137_v40 = vpack.c.bf16 %v5102_v3, %v5100_v2 }
 0x489   :  { %v5923_v45 = vadd.f32 %v4908_v37, %v7891_v10  ;;  %v4910_v61 = vpop.f32.mrb[126].mxu0 }
 0x48a   :  { %v5039_v42 = vmul.f32 0.2, %v5922_v57  ;;  %v5924_v56 = vadd.f32 %v4910_v61, %v7887_v9  ;;  %v4912_v30 = vpop.f32.mrb[127].mxu0  ;;  %5203 = vmatprep.subr.bf16.mxu1 %v5137_v40  ;;  %vm4975_vm12 = vcmp.gt.f32.partialorder %v5922_v57, 0.0  ;;  %v5165_v9 = vrot.slane %v7903_v41, %v7898_v62 }
 0x48b   :  { %v5040_v49 = vmul.f32 0.2, %v5923_v45  ;;  %v5925_v7 = vadd.f32 %v4912_v30, %v7891_v10  ;;  %5204 = vmatpush1.bf16.xpose.msra.mxu1 %v5136_v6  ;;  %vm4976_vm13 = vcmp.gt.f32.partialorder %v5923_v45, 0.0  ;;  %v5149_v10 = vrot.slane %v5144_v34, %v7638_v47 }
 0x48c   :  { %vm4977_vm14 = vcmp.gt.f32.partialorder %v5924_v56, 0.0  ;;  %v5041_v52 = vmul.f32 0.2, %v5924_v56  ;;  %v5103_v11 = vsel %vm4975_vm12, %v5922_v57, %v5039_v42 }
 0x48d   :  { %vm4978_vm15 = vcmp.gt.f32.partialorder %v5925_v7, 0.0  ;;  %v5042_v53 = vmul.f32 0.2, %v5925_v7  ;;  %v5104_v55 = vsel %vm4976_vm13, %v5923_v45, %v5040_v49 }
 0x48e   :  { %v5105_v16 = vsel %vm4977_vm14, %v5924_v56, %v5041_v52 }
 0x48f   :  { %v5138_v29 = vpack.c.bf16 %v5105_v16, %v5103_v11  ;;  %v5106_v39 = vsel %vm4978_vm15, %v5925_v7, %v5042_v53 }
 0x490   :  { %v5139_v0 = vpack.c.bf16 %v5106_v39, %v5104_v55 }
 0x492   :  { %5205 = vmatprep.subr.bf16.mxu1 %v5139_v0 }
 0x493   :  { %5206 = vmatpush1.bf16.xpose.msra.mxu1 %v5138_v29 }
 0x49a   :  { %5208 = vmatmul.mubr.bf16.vlgmr.msra.gmra.mrb[128].mxu1 %v5165_v9 }
 0x56d   :  { %v5209_v4 = vpop.f32.mrb[128].mxu1 }
 0x56e   :  { %v5210_v20 = vadd.f32 %v5209_v4, %v5149_v10  ;;  %v5211_v27 = vpop.f32.mrb[129].mxu1 }
 0x56f   :  { %v5212_v13 = vadd.f32 %v5211_v27, %v5149_v10  ;;  %v5213_v32 = vpop.f32.mrb[130].mxu1 }
 0x570   :  { %v5668_v51 = vmul.f32 -1.442695, %v5210_v20  ;;  %v5214_v36 = vpop.f32.mrb[131].mxu1 }
 0x571   :  { %v5669_v1 = vmul.f32 -1.442695, %v5212_v13 }
 0x572   :  { %6915 = vpow2.f32 %v5668_v51 }
 0x573   :  { %6917 = vpow2.f32 %v5669_v1 }
 0x57c   :  { %v6916_v60 = vpop.eup %6915 }
 0x57d   :  { %v6918_v38 = vpop.eup %6917  ;;  %v5222_v5 = vadd.f32 1.0, %v6916_v60 }
 0x57e   :  { %v5223_v58 = vadd.f32 1.0, %v6918_v38 }
 0x57f   :  { %6919 = vrcp.f32 %v5222_v5 }
 0x580   :  { %6921 = vrcp.f32 %v5223_v58 }
 0x589   :  { %v6920_v41 = vpop.eup %6919 }
 0x58a   :  { %v6922_v12 = vpop.eup %6921 }
 0x58b   :  { %v5230_v26 = vcombine.low %v6920_v41, %v6922_v12 }
 0x58d   :  { %v5237_v47 = vrot.slane %v5230_v26, %v7898_v62 }
 0x58f   :  { %v5244_v46 = vrot.slane %v5237_v47, %v7898_v62 }
 0x591   :  { %5250 = vst.msk [vmem:[#allocation9] sm:$0x3] %vm5248_vm0, %v5244_v46 }
 0x592   :  { %7017 = shalt.err (!%p7014_p0)
}
 0x593   :  { %s7018_s26 = scalar_lea.hbm %s7993_s7, 32 }
 0x594   :  { %p7019_p1 = scmp.ne.s32.totalorder %s7993_s7, %s7018_s26  ;;  %p7022_p2 = scmp.lt.u32.totalorder %s7018_s26, %s7993_s7 }
 0x596   :  { %p7024_p3 = pnand %p7022_p2, %p7019_p1 }
 0x598   :  { %7027 = shalt.err (!%p7024_p3)
}
 0x599   :  { %5260 = dma.vmem_to_hbm [thread:$0]  %s5258_s23, 32, %s7993_s7, [#allocation5]  }
 0x59a   :  { %7032 = dma.done.wait [#allocation5], 32  }
 0x59b   :  { %7033 = vsyncadd [#allocation5], 4294967264 }
 0x59c   :  { %5264 = vsyncpa [#allocation4], 1 }
 0x59d   :  { %5265 = vsyncpa [#allocation7], 1 }
 0x59e   :  { %5266 = vsyncpa [#allocation5], 1 }

</bundles_post_ra>
